<compile_context>
chip_gen: v5e
topology: v5e:2x2
jax: 0.10.0
libtpu: 0.0.40
codegen_flags: <defaults>
</compile_context>

<pallas_src>
import functools

import jax
import jax.numpy as jnp
from jax import lax
from jax.experimental import pallas as pl
from jax.experimental.pallas import tpu as pltpu

INNER_DIM = 64          # self.inner_dim in the module
NUM_LABELS = 4          # synthetic num_labels
HIDDEN = 32             # synthetic config.hidden_size
BATCH = 2
SEQ = 8


def _gp_kernel(hm_ref, hn_ref, w1_ref, b1_ref, trig_m_ref, trig_n_ref,
               qmask_ref, w2_ref, b2_ref, out_ref, *, inner_dim, num_labels, bb):
    """One (batch-block, m-tile, n-tile) step of the efficient-global-pointer head.

    hm_ref     : (bb, TM, H)   encoder rows for the output m axis (q rotation / k bias)
    hn_ref     : (bb, TN, H)   encoder rows for the output n axis (k rotation / q bias)
    w1_ref     : (H, 2*D2)     dense1 weights, columns [a-layout | b-layout]
                               a = [qe|ke|qo|ko], b = [ke|qe|ko|qo]   (32-lane blocks)
    b1_ref     : (1, 2*D2)
    trig_m_ref : (TM, 2*D2)    [cos | signed-sin] rows for the m tile
    trig_n_ref : (TN, 2*D2)    [cos | signed-sin] rows for the n tile
    qmask_ref  : (1, D2)       1/sqrt(inner_dim) on q blocks (lanes 0:32, 64:96), 0 on k blocks
    w2_ref     : (D2, 2L)      fused dense2 [q label cols | k label cols], 0.5 folded in
    b2_ref     : (1, 2L)
    out_ref    : (bb, L, TM, TN)
    """
    D2 = 2 * inner_dim
    L = num_labels
    mxu_dtype = w1_ref.dtype                      # f32 by default, bf16 when caller opts in

    cos_m = trig_m_ref[:, :D2]
    sin_m = trig_m_ref[:, D2:]
    cos_n = trig_n_ref[:, :D2]
    sin_n = trig_n_ref[:, D2:]
    qmask = qmask_ref[...]
    w1_a = w1_ref[:, :D2]
    w1_full = w1_ref[...]
    b1_a = b1_ref[:, :D2]
    b1_full = b1_ref[...]
    w2 = w2_ref[...]
    b2 = b2_ref[...]

    for b in range(bb):                           # static; bb is 1 (v7x) or B (v5e/v6e)
        hm = hm_ref[b]                            # (TM, H)
        hn = hn_ref[b]                            # (TN, H)

        # dense1 (MXU).  m rows need only the a-layout half; n rows need both halves.
        om_a = jnp.dot(hm, w1_a, preferred_element_type=jnp.float32) + b1_a        # (TM, D2)
        on_full = jnp.dot(hn, w1_full, preferred_element_type=jnp.float32) + b1_full
        on_a = on_full[:, :D2]                    # [qe|ke|qo|ko]  -> q bias of the n rows
        on_b = on_full[:, D2:]                    # [ke|qe|ko|qo]  -> k rotation of the n rows

        # Full-width RoPE.  The rotation partner is a roll by D2/2 = 64 lanes (XLU),
        # which is direction-invariant, so no roll-direction assumption is needed.
        q_rot = om_a * cos_m + pltpu.roll(om_a, shift=inner_dim, axis=1) * sin_m
        k_rot = on_b * cos_n + pltpu.roll(on_b, shift=inner_dim, axis=1) * sin_n
        # q_rot = [q_re | k_re | q_ro | k_ro],  k_rot = [k_re | q_re | k_ro | q_ro]:
        # the b-layout puts the matching k blocks under the q lanes, so the score is a single
        # K=128 contraction after scaling/zeroing the q blocks (no +-32 lane roll, no vxpose).
        qm = (q_rot * qmask).astype(mxu_dtype)
        score = lax.dot_general(qm, k_rot.astype(mxu_dtype),
                                (((1,), (1,)), ((), ())),
                                preferred_element_type=jnp.float32)                 # (TM, TN)

        # dense2 bias (q/k column split and the 0.5 factor folded into w2/b2 in the wrapper).
        bias_m = jnp.dot(om_a.astype(mxu_dtype), w2, preferred_element_type=jnp.float32) + b2
        bias_n = jnp.dot(on_a.astype(mxu_dtype), w2, preferred_element_type=jnp.float32) + b2
        bq_t = jnp.transpose(bias_n[:, :L])       # (L, TN) -- q bias, indexed by n
        bk = bias_m[:, L:]                        # (TM, L) -- k bias, indexed by m

        # logits[l, m, n] = score[m, n] + bias_q[n, l] + bias_k[m, l]
        # One lane-dense (TM, TN) add+store per label keeps vreg pressure bounded (L tiny).
        for l in range(L):
            out_ref[b, l] = (score + bq_t[l:l + 1, :] + bk[:, l:l + 1]).astype(out_ref.dtype)


def _device_kind() -> str:
    try:
        return jax.devices()[0].device_kind.lower()
    except Exception:
        return ""


def efficient_global_pointer(h, W1, b1, W2, b2, num_labels, inner_dim=INNER_DIM,
                             operand_dtype=jnp.float32, out_dtype=jnp.float32):
    """Parameter re-layout (one-time glue) + pallas_call over a (batch, m-tile, n-tile) grid.

    h  : (B, S, H) float32 encoder output
    W1 : (H, 2*inner_dim), b1: (2*inner_dim,)              -- effcient_dense1 (x @ W1 + b1)
    W2 : (2*inner_dim, 2*num_labels), b2: (2*num_labels,)  -- effcient_dense2
    operand_dtype: set jnp.bfloat16 on v5e to halve MXU passes / DMA (re-validate tolerance).
    out_dtype    : set jnp.bfloat16 to halve the dominant (B,L,S,S) HBM writeback.
    """
    B, S, H = h.shape
    half = inner_dim // 2
    D2 = 2 * inner_dim
    L = num_labels

    # The lane layout (64-lane partner roll, 32-lane q/k blocks, full-lane QMASK) assumes the
    # dense1 output width 2*inner_dim equals one vreg lane width (review correctness concern).
    assert D2 == 128, "efficient_global_pointer kernel assumes 2*inner_dim == 128"

    # Pad the sequence axis to a multiple of 128 so S sits on the lane axis with dense stores
    # and aligned matmuls.  Padded rows/cols hold garbage (b1/RoPE still produce values) and
    # are sliced off below; never consume the padded buffer directly.
    S_pad = ((S + 127) // 128) * 128
    h_p = h if S_pad == S else jnp.pad(h, ((0, 0), (0, S_pad - S), (0, 0)))
    h_p = h_p.astype(operand_dtype)

    # dense1 column permutations.  a-layout [qe|ke|qo|ko] feeds the q rotation and the bias;
    # b-layout [ke|qe|ko|qo] feeds the k rotation so the score needs no +-32 lane roll.
    qe = jnp.arange(0, D2, 4)
    ke = jnp.arange(1, D2, 4)
    qo = jnp.arange(2, D2, 4)
    ko = jnp.arange(3, D2, 4)
    perm_a = jnp.concatenate([qe, ke, qo, ko])
    perm_b = jnp.concatenate([ke, qe, ko, qo])
    W1full = jnp.concatenate([W1[:, perm_a], W1[:, perm_b]], axis=1).astype(operand_dtype)
    b1full = jnp.concatenate([b1[perm_a], b1[perm_b]])[None, :].astype(jnp.float32)

    # RoPE tables (f32): one [cos | signed-sin] slab, shared by both layouts.
    # TODO(synk): at large S_pad store TRIG in bf16 or generate it in-kernel (EUP is idle)
    #             to shrink the per-tile DMA / resident VMEM footprint.
    pos = jnp.arange(S_pad, dtype=jnp.float32)[:, None]
    theta = jnp.power(10000.0, -2.0 * jnp.arange(half, dtype=jnp.float32) / inner_dim)[None, :]
    ang = pos * theta                                                   # (S_pad, half)
    cos = jnp.cos(ang)
    sin = jnp.sin(ang)
    COS = jnp.concatenate([cos, cos, cos, cos], axis=1)                 # (S_pad, D2)
    SINS = jnp.concatenate([-sin, -sin, sin, sin], axis=1)              # (S_pad, D2)
    TRIG = jnp.concatenate([COS, SINS], axis=1)                         # (S_pad, 2*D2)

    # q-block mask with the 1/sqrt(inner_dim) score scale folded in (q blocks at lanes
    # 0:32 and 64:96 of the a-layout).
    scale = 1.0 / (inner_dim ** 0.5)
    blk = jnp.ones((1, half), jnp.float32)
    QMASK = jnp.concatenate([scale * blk, 0.0 * blk, scale * blk, 0.0 * blk], axis=1)

    # Fused dense2: rows in a-layout, columns [q labels | k labels], 0.5 factor folded in.
    W2p = W2[perm_a, :]
    W2qk = (jnp.concatenate([W2p[:, 0::2], W2p[:, 1::2]], axis=1) * 0.5).astype(operand_dtype)
    b2qk = (jnp.concatenate([b2[0::2], b2[1::2]]) * 0.5)[None, :].astype(jnp.float32)

    # ---- grid / tiling choices (generation-aware) --------------------------------------
    kind = _device_kind()
    two_tc = "7" in kind      # v7x family (2 TensorCores/chip); v5e/v6e are single-TC

    # (m, n) output tiling -- the concrete scaling path from the review.  256 on v7x
    # (64 MiB VMEM), 512 on v5e/v6e; clamped to divisors of S_pad (one tile at spec sizes).
    tile_target = 256 if two_tc else 512
    TM = 128
    while TM * 2 <= tile_target and S_pad % (TM * 2) == 0:
        TM *= 2
    TN = TM
    m_tiles = S_pad // TM
    n_tiles = S_pad // TN

    out_itemsize = jnp.dtype(out_dtype).itemsize
    in_itemsize = jnp.dtype(operand_dtype).itemsize

    # Batch handling: on 2-TC chips keep one batch element per grid step so the 'parallel'
    # axis spreads across both TensorCores; on single-TC chips fold the whole batch into one
    # grid step (static loop in the kernel) to avoid the ~0.35us per-step pipeline overhead.
    if two_tc and B > 1:
        bb, bsteps = 1, B
    else:
        bb, bsteps = B, 1
        if B * L * TM * TN * out_itemsize > 8 * 1024 * 1024:   # keep the output block bounded
            bb, bsteps = 1, B

    grid = (bsteps, m_tiles, n_tiles)
    kernel = functools.partial(_gp_kernel, inner_dim=inner_dim, num_labels=L, bb=bb)

    tiles = bsteps * m_tiles * n_tiles
    flops = 2 * tiles * bb * ((TM + TN) * H * 2 * D2          # dense1 per tile
                              + (TM + TN) * D2 * 2 * L        # dense2 bias per tile
                              + TM * TN * D2)                 # score matmul
    bytes_accessed = (tiles * (bb * (TM + TN) * H * in_itemsize + (TM + TN) * 2 * D2 * 4)
                      + (H * 2 * D2 + D2 * 2 * L) * in_itemsize
                      + (2 * D2 + D2 + 2 * L) * 4
                      + B * L * S_pad * S_pad * out_itemsize)

    # Only set an explicit VMEM limit when the blocks are big enough to need it; the spec
    # sizes fit comfortably under the scoped default (matches the previously clean run).
    block_bytes = 2 * (bb * (TM + TN) * H * in_itemsize
                       + (TM + TN) * 2 * D2 * 4
                       + bb * L * TM * TN * out_itemsize)
    temp_bytes = 4 * (6 * max(TM, TN) * D2 + TM * TN)
    vmem_est = block_bytes + temp_bytes
    cp_kwargs = dict(dimension_semantics=("parallel", "parallel", "parallel"))
    if vmem_est > 16 * 1024 * 1024:
        cap = (60 if two_tc else 100) * 1024 * 1024
        cp_kwargs["vmem_limit_bytes"] = int(min(vmem_est * 3 // 2, cap))

    # TODO(synk): a split-output variant (score (B,S,S) + bias (B,2L,S), fused downstream)
    #             would cut the dominant HBM writeback by ~L*4x; left to the caller.
    out = pl.pallas_call(
        kernel,
        out_shape=jax.ShapeDtypeStruct((B, L, S_pad, S_pad), out_dtype),
        grid=grid,
        in_specs=[
            pl.BlockSpec((bb, TM, H), lambda bi, mi, ni: (bi, mi, 0)),     # h, m rows
            pl.BlockSpec((bb, TN, H), lambda bi, mi, ni: (bi, ni, 0)),     # h, n rows
            pl.BlockSpec((H, 2 * D2), lambda bi, mi, ni: (0, 0)),          # W1 [a | b]
            pl.BlockSpec((1, 2 * D2), lambda bi, mi, ni: (0, 0)),          # b1 [a | b]
            pl.BlockSpec((TM, 2 * D2), lambda bi, mi, ni: (mi, 0)),        # trig, m rows
            pl.BlockSpec((TN, 2 * D2), lambda bi, mi, ni: (ni, 0)),        # trig, n rows
            pl.BlockSpec((1, D2), lambda bi, mi, ni: (0, 0)),              # q mask (scaled)
            pl.BlockSpec((D2, 2 * L), lambda bi, mi, ni: (0, 0)),          # dense2 fused
            pl.BlockSpec((1, 2 * L), lambda bi, mi, ni: (0, 0)),           # dense2 bias
        ],
        out_specs=pl.BlockSpec((bb, L, TM, TN), lambda bi, mi, ni: (bi, 0, mi, ni)),
        compiler_params=pltpu.CompilerParams(**cp_kwargs),
        cost_estimate=pl.CostEstimate(flops=flops, transcendentals=0,
                                      bytes_accessed=bytes_accessed),
    )(h_p, h_p, W1full, b1full, TRIG, TRIG, QMASK, W2qk, b2qk)

    return out[:, :, :S, :S]


def reference_jax(h, W1, b1, W2, b2, num_labels, inner_dim=INNER_DIM):
    """Pure-JAX mirror of the PyTorch efficient_global_pointer branch."""
    B, S, _ = h.shape
    outputs = h @ W1 + b1                              # (B, S, 2*inner_dim)
    qw, kw = outputs[..., ::2], outputs[..., 1::2]     # (B, S, inner_dim)

    pos = jnp.arange(S, dtype=jnp.float32)[:, None]
    idx = jnp.arange(inner_dim // 2, dtype=jnp.float32)
    theta = jnp.power(10000.0, -2.0 * idx / inner_dim)
    emb = pos * theta                                  # (S, inner_dim//2)
    pos_emb = jnp.stack([jnp.sin(emb), jnp.cos(emb)], axis=-1).reshape(S, inner_dim)
    pos_emb = jnp.broadcast_to(pos_emb[None], (B, S, inner_dim))
    cos_pos = jnp.repeat(pos_emb[..., 1::2], 2, axis=-1)
    sin_pos = jnp.repeat(pos_emb[..., ::2], 2, axis=-1)

    qw2 = jnp.stack([-qw[..., 1::2], qw[..., ::2]], axis=-1).reshape(qw.shape)
    qw_r = qw * cos_pos + qw2 * sin_pos
    kw2 = jnp.stack([-kw[..., 1::2], kw[..., ::2]], axis=-1).reshape(kw.shape)
    kw_r = kw * cos_pos + kw2 * sin_pos

    logits = jnp.einsum('bmd,bnd->bmn', qw_r, kw_r) / inner_dim ** 0.5
    bias = jnp.swapaxes(outputs @ W2 + b2, 1, 2) / 2.0      # (B, 2L, S)
    logits = logits[:, None] + bias[:, ::2, None] + bias[:, 1::2, :, None]
    return logits


if __name__ == "__main__":
    key = jax.random.PRNGKey(0)
    k_h, k_w1, k_b1, k_w2, k_b2 = jax.random.split(key, 5)

    h = jax.random.normal(k_h, (BATCH, SEQ, HIDDEN), dtype=jnp.float32)
    # effcient_dense1: Linear(hidden_size, inner_dim*2)
    W1 = jax.random.normal(k_w1, (HIDDEN, 2 * INNER_DIM), dtype=jnp.float32) / jnp.sqrt(HIDDEN)
    b1 = jax.random.normal(k_b1, (2 * INNER_DIM,), dtype=jnp.float32) * 0.1
    # effcient_dense2: Linear(inner_dim*2, num_labels*2)
    W2 = jax.random.normal(k_w2, (2 * INNER_DIM, 2 * NUM_LABELS), dtype=jnp.float32) / jnp.sqrt(2 * INNER_DIM)
    b2 = jax.random.normal(k_b2, (2 * NUM_LABELS,), dtype=jnp.float32) * 0.1

    out = jax.block_until_ready(efficient_global_pointer(h, W1, b1, W2, b2, NUM_LABELS))
    ref = jax.block_until_ready(reference_jax(h, W1, b1, W2, b2, NUM_LABELS))

    assert out.shape == (BATCH, NUM_LABELS, SEQ, SEQ)
    assert jnp.allclose(out, ref, atol=2e-3, rtol=2e-3), float(jnp.max(jnp.abs(out - ref)))

    print("KERNEL_OK")
</pallas_src>

<mosaic_0001>
module attributes {stable_mosaic.version = 11 : i64} {
  func.func @_gp_kernel(%arg0: i32, %arg1: i32, %arg2: i32, %arg3: memref<2x128x32xf32, #tpu.memory_space<vmem>>, %arg4: memref<2x128x32xf32, #tpu.memory_space<vmem>>, %arg5: memref<32x256xf32, #tpu.memory_space<vmem>>, %arg6: memref<1x256xf32, #tpu.memory_space<vmem>>, %arg7: memref<128x256xf32, #tpu.memory_space<vmem>>, %arg8: memref<128x256xf32, #tpu.memory_space<vmem>>, %arg9: memref<1x128xf32, #tpu.memory_space<vmem>>, %arg10: memref<128x8xf32, #tpu.memory_space<vmem>>, %arg11: memref<1x8xf32, #tpu.memory_space<vmem>>, %arg12: memref<2x4x128x128xf32, #tpu.memory_space<vmem>>) attributes {dimension_semantics = [#tpu.dimension_semantics<parallel>, #tpu.dimension_semantics<parallel>, #tpu.dimension_semantics<parallel>], iteration_bounds = array<i64: 1, 1, 1>, scalar_prefetch = 0 : i64, scratch_operands = 0 : i64, tpu.core_type = #tpu.core_type<tc>, window_params = [{transform_indices = @transform_0, window_bounds = array<i64: 2, 128, 32>}, {transform_indices = @transform_1, window_bounds = array<i64: 2, 128, 32>}, {pipeline_mode = #tpu.pipeline_mode<synchronous>, transform_indices = @transform_2, window_bounds = array<i64: 32, 256>}, {pipeline_mode = #tpu.pipeline_mode<synchronous>, transform_indices = @transform_3, window_bounds = array<i64: 1, 256>}, {transform_indices = @transform_4, window_bounds = array<i64: 128, 256>}, {transform_indices = @transform_5, window_bounds = array<i64: 128, 256>}, {pipeline_mode = #tpu.pipeline_mode<synchronous>, transform_indices = @transform_6, window_bounds = array<i64: 1, 128>}, {pipeline_mode = #tpu.pipeline_mode<synchronous>, transform_indices = @transform_7, window_bounds = array<i64: 128, 8>}, {pipeline_mode = #tpu.pipeline_mode<synchronous>, transform_indices = @transform_8, window_bounds = array<i64: 1, 8>}, {transform_indices = @transform_9, window_bounds = array<i64: 2, 4, 128, 128>}]} {
    %c0 = arith.constant 0 : index
    %c0_0 = arith.constant 0 : index
    %0 = vector.load %arg7[%c0, %c0_0] : memref<128x256xf32, #tpu.memory_space<vmem>>, vector<128x128xf32>
    %c0_1 = arith.constant 0 : index
    %c128 = arith.constant 128 : index
    %1 = vector.load %arg7[%c0_1, %c128] : memref<128x256xf32, #tpu.memory_space<vmem>>, vector<128x128xf32>
    %c0_2 = arith.constant 0 : index
    %c0_3 = arith.constant 0 : index
    %2 = vector.load %arg8[%c0_2, %c0_3] : memref<128x256xf32, #tpu.memory_space<vmem>>, vector<128x128xf32>
    %c0_4 = arith.constant 0 : index
    %c128_5 = arith.constant 128 : index
    %3 = vector.load %arg8[%c0_4, %c128_5] : memref<128x256xf32, #tpu.memory_space<vmem>>, vector<128x128xf32>
    %c0_6 = arith.constant 0 : index
    %c0_7 = arith.constant 0 : index
    %4 = vector.load %arg9[%c0_6, %c0_7] : memref<1x128xf32, #tpu.memory_space<vmem>>, vector<1x128xf32>
    %c0_8 = arith.constant 0 : index
    %c0_9 = arith.constant 0 : index
    %5 = vector.load %arg5[%c0_8, %c0_9] : memref<32x256xf32, #tpu.memory_space<vmem>>, vector<32x128xf32>
    %c0_10 = arith.constant 0 : index
    %c0_11 = arith.constant 0 : index
    %6 = vector.load %arg5[%c0_10, %c0_11] : memref<32x256xf32, #tpu.memory_space<vmem>>, vector<32x256xf32>
    %c0_12 = arith.constant 0 : index
    %c0_13 = arith.constant 0 : index
    %7 = vector.load %arg6[%c0_12, %c0_13] : memref<1x256xf32, #tpu.memory_space<vmem>>, vector<1x128xf32>
    %c0_14 = arith.constant 0 : index
    %c0_15 = arith.constant 0 : index
    %8 = vector.load %arg6[%c0_14, %c0_15] : memref<1x256xf32, #tpu.memory_space<vmem>>, vector<1x256xf32>
    %c0_16 = arith.constant 0 : index
    %c0_17 = arith.constant 0 : index
    %9 = vector.load %arg10[%c0_16, %c0_17] : memref<128x8xf32, #tpu.memory_space<vmem>>, vector<128x8xf32>
    %c0_18 = arith.constant 0 : index
    %c0_19 = arith.constant 0 : index
    %10 = vector.load %arg11[%c0_18, %c0_19] : memref<1x8xf32, #tpu.memory_space<vmem>>, vector<1x8xf32>
    %c0_20 = arith.constant 0 : index
    %c0_21 = arith.constant 0 : index
    %c0_22 = arith.constant 0 : index
    %11 = vector.load %arg3[%c0_20, %c0_21, %c0_22] : memref<2x128x32xf32, #tpu.memory_space<vmem>>, vector<1x128x32xf32>
    %12 = vector.shape_cast %11 : vector<1x128x32xf32> to vector<128x32xf32>
    %c0_23 = arith.constant 0 : index
    %c0_24 = arith.constant 0 : index
    %c0_25 = arith.constant 0 : index
    %13 = vector.load %arg4[%c0_23, %c0_24, %c0_25] : memref<2x128x32xf32, #tpu.memory_space<vmem>>, vector<1x128x32xf32>
    %14 = vector.shape_cast %13 : vector<1x128x32xf32> to vector<128x32xf32>
    %cst = arith.constant dense<0.000000e+00> : vector<128x128xf32>
    %15 = tpu.matmul %12, %5, %cst {dimension_numbers = #tpu.dot_dimension_numbers<[1], [0], [0], [1], [0, 0, 1, 1], [], []>} : vector<128x32xf32>, vector<32x128xf32>, vector<128x128xf32> -> vector<128x128xf32>
    %16 = vector.broadcast %7 : vector<1x128xf32> to vector<128x128xf32>
    %17 = arith.addf %15, %16 : vector<128x128xf32>
    %cst_26 = arith.constant dense<0.000000e+00> : vector<128x256xf32>
    %18 = tpu.matmul %14, %6, %cst_26 {dimension_numbers = #tpu.dot_dimension_numbers<[1], [0], [0], [1], [0, 0, 1, 1], [], []>} : vector<128x32xf32>, vector<32x256xf32>, vector<128x256xf32> -> vector<128x256xf32>
    %19 = vector.broadcast %8 : vector<1x256xf32> to vector<128x256xf32>
    %20 = arith.addf %18, %19 : vector<128x256xf32>
    %21 = vector.extract_strided_slice %20 {offsets = [0, 0], sizes = [128, 128], strides = [1, 1]} : vector<128x256xf32> to vector<128x128xf32>
    %22 = vector.extract_strided_slice %20 {offsets = [0, 128], sizes = [128, 128], strides = [1, 1]} : vector<128x256xf32> to vector<128x128xf32>
    %23 = arith.mulf %17, %0 : vector<128x128xf32>
    %c64_i32 = arith.constant 64 : i32
    %24 = tpu.dynamic_rotate %17 by %c64_i32 dim 1 : vector<128x128xf32>, i32 -> vector<128x128xf32>
    %25 = arith.mulf %24, %1 : vector<128x128xf32>
    %26 = arith.addf %23, %25 : vector<128x128xf32>
    %27 = arith.mulf %22, %2 : vector<128x128xf32>
    %c64_i32_27 = arith.constant 64 : i32
    %28 = tpu.dynamic_rotate %22 by %c64_i32_27 dim 1 : vector<128x128xf32>, i32 -> vector<128x128xf32>
    %29 = arith.mulf %28, %3 : vector<128x128xf32>
    %30 = arith.addf %27, %29 : vector<128x128xf32>
    %31 = vector.broadcast %4 : vector<1x128xf32> to vector<128x128xf32>
    %32 = arith.mulf %26, %31 : vector<128x128xf32>
    %cst_28 = arith.constant dense<0.000000e+00> : vector<128x128xf32>
    %33 = tpu.matmul %32, %30, %cst_28 {dimension_numbers = #tpu.dot_dimension_numbers<[1], [1], [0], [0], [0, 0, 1, 0], [], []>} : vector<128x128xf32>, vector<128x128xf32>, vector<128x128xf32> -> vector<128x128xf32>
    %cst_29 = arith.constant dense<0.000000e+00> : vector<128x8xf32>
    %34 = tpu.matmul %17, %9, %cst_29 {dimension_numbers = #tpu.dot_dimension_numbers<[1], [0], [0], [1], [0, 0, 1, 1], [], []>} : vector<128x128xf32>, vector<128x8xf32>, vector<128x8xf32> -> vector<128x8xf32>
    %35 = vector.broadcast %10 : vector<1x8xf32> to vector<128x8xf32>
    %36 = arith.addf %34, %35 : vector<128x8xf32>
    %cst_30 = arith.constant dense<0.000000e+00> : vector<128x8xf32>
    %37 = tpu.matmul %21, %9, %cst_30 {dimension_numbers = #tpu.dot_dimension_numbers<[1], [0], [0], [1], [0, 0, 1, 1], [], []>} : vector<128x128xf32>, vector<128x8xf32>, vector<128x8xf32> -> vector<128x8xf32>
    %38 = vector.broadcast %10 : vector<1x8xf32> to vector<128x8xf32>
    %39 = arith.addf %37, %38 : vector<128x8xf32>
    %40 = vector.extract_strided_slice %39 {offsets = [0, 0], sizes = [128, 4], strides = [1, 1]} : vector<128x8xf32> to vector<128x4xf32>
    %41 = tpu.transpose %40, [1, 0] : vector<128x4xf32> -> vector<4x128xf32>
    %42 = vector.extract_strided_slice %36 {offsets = [0, 4], sizes = [128, 4], strides = [1, 1]} : vector<128x8xf32> to vector<128x4xf32>
    %43 = vector.extract_strided_slice %41 {offsets = [0, 0], sizes = [1, 128], strides = [1, 1]} : vector<4x128xf32> to vector<1x128xf32>
    %44 = vector.broadcast %43 : vector<1x128xf32> to vector<128x128xf32>
    %45 = arith.addf %33, %44 : vector<128x128xf32>
    %46 = vector.extract_strided_slice %42 {offsets = [0, 0], sizes = [128, 1], strides = [1, 1]} : vector<128x4xf32> to vector<128x1xf32>
    %47 = vector.broadcast %46 : vector<128x1xf32> to vector<128x128xf32>
    %48 = arith.addf %45, %47 : vector<128x128xf32>
    %c0_31 = arith.constant 0 : index
    %c0_32 = arith.constant 0 : index
    %c0_33 = arith.constant 0 : index
    %c0_34 = arith.constant 0 : index
    %49 = vector.load %arg12[%c0_31, %c0_32, %c0_33, %c0_34] : memref<2x4x128x128xf32, #tpu.memory_space<vmem>>, vector<1x1x128x128xf32>
    %50 = vector.shape_cast %49 : vector<1x1x128x128xf32> to vector<128x128xf32>
    %51 = vector.shape_cast %48 : vector<128x128xf32> to vector<1x1x128x128xf32>
    tpu.vector_store %arg12[%c0_31, %c0_32, %c0_33, %c0_34], %51 {strides = array<i32>} : memref<2x4x128x128xf32, #tpu.memory_space<vmem>>, vector<1x1x128x128xf32>,
    %52 = vector.extract_strided_slice %41 {offsets = [1, 0], sizes = [1, 128], strides = [1, 1]} : vector<4x128xf32> to vector<1x128xf32>
    %53 = vector.broadcast %52 : vector<1x128xf32> to vector<128x128xf32>
    %54 = arith.addf %33, %53 : vector<128x128xf32>
    %55 = vector.extract_strided_slice %42 {offsets = [0, 1], sizes = [128, 1], strides = [1, 1]} : vector<128x4xf32> to vector<128x1xf32>
    %56 = vector.broadcast %55 : vector<128x1xf32> to vector<128x128xf32>
    %57 = arith.addf %54, %56 : vector<128x128xf32>
    %c0_35 = arith.constant 0 : index
    %c1 = arith.constant 1 : index
    %c0_36 = arith.constant 0 : index
    %c0_37 = arith.constant 0 : index
    %58 = vector.load %arg12[%c0_35, %c1, %c0_36, %c0_37] : memref<2x4x128x128xf32, #tpu.memory_space<vmem>>, vector<1x1x128x128xf32>
    %59 = vector.shape_cast %58 : vector<1x1x128x128xf32> to vector<128x128xf32>
    %60 = vector.shape_cast %57 : vector<128x128xf32> to vector<1x1x128x128xf32>
    tpu.vector_store %arg12[%c0_35, %c1, %c0_36, %c0_37], %60 {strides = array<i32>} : memref<2x4x128x128xf32, #tpu.memory_space<vmem>>, vector<1x1x128x128xf32>,
    %61 = vector.extract_strided_slice %41 {offsets = [2, 0], sizes = [1, 128], strides = [1, 1]} : vector<4x128xf32> to vector<1x128xf32>
    %62 = vector.broadcast %61 : vector<1x128xf32> to vector<128x128xf32>
    %63 = arith.addf %33, %62 : vector<128x128xf32>
    %64 = vector.extract_strided_slice %42 {offsets = [0, 2], sizes = [128, 1], strides = [1, 1]} : vector<128x4xf32> to vector<128x1xf32>
    %65 = vector.broadcast %64 : vector<128x1xf32> to vector<128x128xf32>
    %66 = arith.addf %63, %65 : vector<128x128xf32>
    %c0_38 = arith.constant 0 : index
    %c2 = arith.constant 2 : index
    %c0_39 = arith.constant 0 : index
    %c0_40 = arith.constant 0 : index
    %67 = vector.load %arg12[%c0_38, %c2, %c0_39, %c0_40] : memref<2x4x128x128xf32, #tpu.memory_space<vmem>>, vector<1x1x128x128xf32>
    %68 = vector.shape_cast %67 : vector<1x1x128x128xf32> to vector<128x128xf32>
    %69 = vector.shape_cast %66 : vector<128x128xf32> to vector<1x1x128x128xf32>
    tpu.vector_store %arg12[%c0_38, %c2, %c0_39, %c0_40], %69 {strides = array<i32>} : memref<2x4x128x128xf32, #tpu.memory_space<vmem>>, vector<1x1x128x128xf32>,
    %70 = vector.extract_strided_slice %41 {offsets = [3, 0], sizes = [1, 128], strides = [1, 1]} : vector<4x128xf32> to vector<1x128xf32>
    %71 = vector.broadcast %70 : vector<1x128xf32> to vector<128x128xf32>
    %72 = arith.addf %33, %71 : vector<128x128xf32>
    %73 = vector.extract_strided_slice %42 {offsets = [0, 3], sizes = [128, 1], strides = [1, 1]} : vector<128x4xf32> to vector<128x1xf32>
    %74 = vector.broadcast %73 : vector<128x1xf32> to vector<128x128xf32>
    %75 = arith.addf %72, %74 : vector<128x128xf32>
    %c0_41 = arith.constant 0 : index
    %c3 = arith.constant 3 : index
    %c0_42 = arith.constant 0 : index
    %c0_43 = arith.constant 0 : index
    %76 = vector.load %arg12[%c0_41, %c3, %c0_42, %c0_43] : memref<2x4x128x128xf32, #tpu.memory_space<vmem>>, vector<1x1x128x128xf32>
    %77 = vector.shape_cast %76 : vector<1x1x128x128xf32> to vector<128x128xf32>
    %78 = vector.shape_cast %75 : vector<128x128xf32> to vector<1x1x128x128xf32>
    tpu.vector_store %arg12[%c0_41, %c3, %c0_42, %c0_43], %78 {strides = array<i32>} : memref<2x4x128x128xf32, #tpu.memory_space<vmem>>, vector<1x1x128x128xf32>,
    %c1_44 = arith.constant 1 : index
    %c0_45 = arith.constant 0 : index
    %c0_46 = arith.constant 0 : index
    %79 = vector.load %arg3[%c1_44, %c0_45, %c0_46] : memref<2x128x32xf32, #tpu.memory_space<vmem>>, vector<1x128x32xf32>
    %80 = vector.shape_cast %79 : vector<1x128x32xf32> to vector<128x32xf32>
    %c1_47 = arith.constant 1 : index
    %c0_48 = arith.constant 0 : index
    %c0_49 = arith.constant 0 : index
    %81 = vector.load %arg4[%c1_47, %c0_48, %c0_49] : memref<2x128x32xf32, #tpu.memory_space<vmem>>, vector<1x128x32xf32>
    %82 = vector.shape_cast %81 : vector<1x128x32xf32> to vector<128x32xf32>
    %cst_50 = arith.constant dense<0.000000e+00> : vector<128x128xf32>
    %83 = tpu.matmul %80, %5, %cst_50 {dimension_numbers = #tpu.dot_dimension_numbers<[1], [0], [0], [1], [0, 0, 1, 1], [], []>} : vector<128x32xf32>, vector<32x128xf32>, vector<128x128xf32> -> vector<128x128xf32>
    %84 = vector.broadcast %7 : vector<1x128xf32> to vector<128x128xf32>
    %85 = arith.addf %83, %84 : vector<128x128xf32>
    %cst_51 = arith.constant dense<0.000000e+00> : vector<128x256xf32>
    %86 = tpu.matmul %82, %6, %cst_51 {dimension_numbers = #tpu.dot_dimension_numbers<[1], [0], [0], [1], [0, 0, 1, 1], [], []>} : vector<128x32xf32>, vector<32x256xf32>, vector<128x256xf32> -> vector<128x256xf32>
    %87 = vector.broadcast %8 : vector<1x256xf32> to vector<128x256xf32>
    %88 = arith.addf %86, %87 : vector<128x256xf32>
    %89 = vector.extract_strided_slice %88 {offsets = [0, 0], sizes = [128, 128], strides = [1, 1]} : vector<128x256xf32> to vector<128x128xf32>
    %90 = vector.extract_strided_slice %88 {offsets = [0, 128], sizes = [128, 128], strides = [1, 1]} : vector<128x256xf32> to vector<128x128xf32>
    %91 = arith.mulf %85, %0 : vector<128x128xf32>
    %c64_i32_52 = arith.constant 64 : i32
    %92 = tpu.dynamic_rotate %85 by %c64_i32_52 dim 1 : vector<128x128xf32>, i32 -> vector<128x128xf32>
    %93 = arith.mulf %92, %1 : vector<128x128xf32>
    %94 = arith.addf %91, %93 : vector<128x128xf32>
    %95 = arith.mulf %90, %2 : vector<128x128xf32>
    %c64_i32_53 = arith.constant 64 : i32
    %96 = tpu.dynamic_rotate %90 by %c64_i32_53 dim 1 : vector<128x128xf32>, i32 -> vector<128x128xf32>
    %97 = arith.mulf %96, %3 : vector<128x128xf32>
    %98 = arith.addf %95, %97 : vector<128x128xf32>
    %99 = vector.broadcast %4 : vector<1x128xf32> to vector<128x128xf32>
    %100 = arith.mulf %94, %99 : vector<128x128xf32>
    %cst_54 = arith.constant dense<0.000000e+00> : vector<128x128xf32>
    %101 = tpu.matmul %100, %98, %cst_54 {dimension_numbers = #tpu.dot_dimension_numbers<[1], [1], [0], [0], [0, 0, 1, 0], [], []>} : vector<128x128xf32>, vector<128x128xf32>, vector<128x128xf32> -> vector<128x128xf32>
    %cst_55 = arith.constant dense<0.000000e+00> : vector<128x8xf32>
    %102 = tpu.matmul %85, %9, %cst_55 {dimension_numbers = #tpu.dot_dimension_numbers<[1], [0], [0], [1], [0, 0, 1, 1], [], []>} : vector<128x128xf32>, vector<128x8xf32>, vector<128x8xf32> -> vector<128x8xf32>
    %103 = vector.broadcast %10 : vector<1x8xf32> to vector<128x8xf32>
    %104 = arith.addf %102, %103 : vector<128x8xf32>
    %cst_56 = arith.constant dense<0.000000e+00> : vector<128x8xf32>
    %105 = tpu.matmul %89, %9, %cst_56 {dimension_numbers = #tpu.dot_dimension_numbers<[1], [0], [0], [1], [0, 0, 1, 1], [], []>} : vector<128x128xf32>, vector<128x8xf32>, vector<128x8xf32> -> vector<128x8xf32>
    %106 = vector.broadcast %10 : vector<1x8xf32> to vector<128x8xf32>
    %107 = arith.addf %105, %106 : vector<128x8xf32>
    %108 = vector.extract_strided_slice %107 {offsets = [0, 0], sizes = [128, 4], strides = [1, 1]} : vector<128x8xf32> to vector<128x4xf32>
    %109 = tpu.transpose %108, [1, 0] : vector<128x4xf32> -> vector<4x128xf32>
    %110 = vector.extract_strided_slice %104 {offsets = [0, 4], sizes = [128, 4], strides = [1, 1]} : vector<128x8xf32> to vector<128x4xf32>
    %111 = vector.extract_strided_slice %109 {offsets = [0, 0], sizes = [1, 128], strides = [1, 1]} : vector<4x128xf32> to vector<1x128xf32>
    %112 = vector.broadcast %111 : vector<1x128xf32> to vector<128x128xf32>
    %113 = arith.addf %101, %112 : vector<128x128xf32>
    %114 = vector.extract_strided_slice %110 {offsets = [0, 0], sizes = [128, 1], strides = [1, 1]} : vector<128x4xf32> to vector<128x1xf32>
    %115 = vector.broadcast %114 : vector<128x1xf32> to vector<128x128xf32>
    %116 = arith.addf %113, %115 : vector<128x128xf32>
    %c1_57 = arith.constant 1 : index
    %c0_58 = arith.constant 0 : index
    %c0_59 = arith.constant 0 : index
    %c0_60 = arith.constant 0 : index
    %117 = vector.load %arg12[%c1_57, %c0_58, %c0_59, %c0_60] : memref<2x4x128x128xf32, #tpu.memory_space<vmem>>, vector<1x1x128x128xf32>
    %118 = vector.shape_cast %117 : vector<1x1x128x128xf32> to vector<128x128xf32>
    %119 = vector.shape_cast %116 : vector<128x128xf32> to vector<1x1x128x128xf32>
    tpu.vector_store %arg12[%c1_57, %c0_58, %c0_59, %c0_60], %119 {strides = array<i32>} : memref<2x4x128x128xf32, #tpu.memory_space<vmem>>, vector<1x1x128x128xf32>,
    %120 = vector.extract_strided_slice %109 {offsets = [1, 0], sizes = [1, 128], strides = [1, 1]} : vector<4x128xf32> to vector<1x128xf32>
    %121 = vector.broadcast %120 : vector<1x128xf32> to vector<128x128xf32>
    %122 = arith.addf %101, %121 : vector<128x128xf32>
    %123 = vector.extract_strided_slice %110 {offsets = [0, 1], sizes = [128, 1], strides = [1, 1]} : vector<128x4xf32> to vector<128x1xf32>
    %124 = vector.broadcast %123 : vector<128x1xf32> to vector<128x128xf32>
    %125 = arith.addf %122, %124 : vector<128x128xf32>
    %c1_61 = arith.constant 1 : index
    %c1_62 = arith.constant 1 : index
    %c0_63 = arith.constant 0 : index
    %c0_64 = arith.constant 0 : index
    %126 = vector.load %arg12[%c1_61, %c1_62, %c0_63, %c0_64] : memref<2x4x128x128xf32, #tpu.memory_space<vmem>>, vector<1x1x128x128xf32>
    %127 = vector.shape_cast %126 : vector<1x1x128x128xf32> to vector<128x128xf32>
    %128 = vector.shape_cast %125 : vector<128x128xf32> to vector<1x1x128x128xf32>
    tpu.vector_store %arg12[%c1_61, %c1_62, %c0_63, %c0_64], %128 {strides = array<i32>} : memref<2x4x128x128xf32, #tpu.memory_space<vmem>>, vector<1x1x128x128xf32>,
    %129 = vector.extract_strided_slice %109 {offsets = [2, 0], sizes = [1, 128], strides = [1, 1]} : vector<4x128xf32> to vector<1x128xf32>
    %130 = vector.broadcast %129 : vector<1x128xf32> to vector<128x128xf32>
    %131 = arith.addf %101, %130 : vector<128x128xf32>
    %132 = vector.extract_strided_slice %110 {offsets = [0, 2], sizes = [128, 1], strides = [1, 1]} : vector<128x4xf32> to vector<128x1xf32>
    %133 = vector.broadcast %132 : vector<128x1xf32> to vector<128x128xf32>
    %134 = arith.addf %131, %133 : vector<128x128xf32>
    %c1_65 = arith.constant 1 : index
    %c2_66 = arith.constant 2 : index
    %c0_67 = arith.constant 0 : index
    %c0_68 = arith.constant 0 : index
    %135 = vector.load %arg12[%c1_65, %c2_66, %c0_67, %c0_68] : memref<2x4x128x128xf32, #tpu.memory_space<vmem>>, vector<1x1x128x128xf32>
    %136 = vector.shape_cast %135 : vector<1x1x128x128xf32> to vector<128x128xf32>
    %137 = vector.shape_cast %134 : vector<128x128xf32> to vector<1x1x128x128xf32>
    tpu.vector_store %arg12[%c1_65, %c2_66, %c0_67, %c0_68], %137 {strides = array<i32>} : memref<2x4x128x128xf32, #tpu.memory_space<vmem>>, vector<1x1x128x128xf32>,
    %138 = vector.extract_strided_slice %109 {offsets = [3, 0], sizes = [1, 128], strides = [1, 1]} : vector<4x128xf32> to vector<1x128xf32>
    %139 = vector.broadcast %138 : vector<1x128xf32> to vector<128x128xf32>
    %140 = arith.addf %101, %139 : vector<128x128xf32>
    %141 = vector.extract_strided_slice %110 {offsets = [0, 3], sizes = [128, 1], strides = [1, 1]} : vector<128x4xf32> to vector<128x1xf32>
    %142 = vector.broadcast %141 : vector<128x1xf32> to vector<128x128xf32>
    %143 = arith.addf %140, %142 : vector<128x128xf32>
    %c1_69 = arith.constant 1 : index
    %c3_70 = arith.constant 3 : index
    %c0_71 = arith.constant 0 : index
    %c0_72 = arith.constant 0 : index
    %144 = vector.load %arg12[%c1_69, %c3_70, %c0_71, %c0_72] : memref<2x4x128x128xf32, #tpu.memory_space<vmem>>, vector<1x1x128x128xf32>
    %145 = vector.shape_cast %144 : vector<1x1x128x128xf32> to vector<128x128xf32>
    %146 = vector.shape_cast %143 : vector<128x128xf32> to vector<1x1x128x128xf32>
    tpu.vector_store %arg12[%c1_69, %c3_70, %c0_71, %c0_72], %146 {strides = array<i32>} : memref<2x4x128x128xf32, #tpu.memory_space<vmem>>, vector<1x1x128x128xf32>,
    return
  }
  func.func @transform_0(%arg0: i32, %arg1: i32, %arg2: i32) -> (i32, i32, i32) {
    %c0_i32 = arith.constant 0 : i32
    %c0_i32_0 = arith.constant 0 : i32
    return %arg0, %arg1, %c0_i32 : i32, i32, i32
  }
  func.func @transform_1(%arg0: i32, %arg1: i32, %arg2: i32) -> (i32, i32, i32) {
    %c0_i32 = arith.constant 0 : i32
    %c0_i32_0 = arith.constant 0 : i32
    return %arg0, %arg2, %c0_i32 : i32, i32, i32
  }
  func.func @transform_2(%arg0: i32, %arg1: i32, %arg2: i32) -> (i32, i32) {
    %c0_i32 = arith.constant 0 : i32
    %c0_i32_0 = arith.constant 0 : i32
    %c0_i32_1 = arith.constant 0 : i32
    return %c0_i32, %c0_i32_0 : i32, i32
  }
  func.func @transform_3(%arg0: i32, %arg1: i32, %arg2: i32) -> (i32, i32) {
    %c0_i32 = arith.constant 0 : i32
    %c0_i32_0 = arith.constant 0 : i32
    %c0_i32_1 = arith.constant 0 : i32
    return %c0_i32, %c0_i32_0 : i32, i32
  }
  func.func @transform_4(%arg0: i32, %arg1: i32, %arg2: i32) -> (i32, i32) {
    %c0_i32 = arith.constant 0 : i32
    %c0_i32_0 = arith.constant 0 : i32
    return %arg1, %c0_i32 : i32, i32
  }
  func.func @transform_5(%arg0: i32, %arg1: i32, %arg2: i32) -> (i32, i32) {
    %c0_i32 = arith.constant 0 : i32
    %c0_i32_0 = arith.constant 0 : i32
    return %arg2, %c0_i32 : i32, i32
  }
  func.func @transform_6(%arg0: i32, %arg1: i32, %arg2: i32) -> (i32, i32) {
    %c0_i32 = arith.constant 0 : i32
    %c0_i32_0 = arith.constant 0 : i32
    %c0_i32_1 = arith.constant 0 : i32
    return %c0_i32, %c0_i32_0 : i32, i32
  }
  func.func @transform_7(%arg0: i32, %arg1: i32, %arg2: i32) -> (i32, i32) {
    %c0_i32 = arith.constant 0 : i32
    %c0_i32_0 = arith.constant 0 : i32
    %c0_i32_1 = arith.constant 0 : i32
    return %c0_i32, %c0_i32_0 : i32, i32
  }
  func.func @transform_8(%arg0: i32, %arg1: i32, %arg2: i32) -> (i32, i32) {
    %c0_i32 = arith.constant 0 : i32
    %c0_i32_0 = arith.constant 0 : i32
    %c0_i32_1 = arith.constant 0 : i32
    return %c0_i32, %c0_i32_0 : i32, i32
  }
  func.func @transform_9(%arg0: i32, %arg1: i32, %arg2: i32) -> (i32, i32, i32, i32) {
    %c0_i32 = arith.constant 0 : i32
    %c0_i32_0 = arith.constant 0 : i32
    return %arg0, %c0_i32, %arg1, %arg2 : i32, i32, i32, i32
  }
}

</mosaic_0001>

<bundles_post_ra>
// kernel: tpu_custom_call.1
= control target key start
LH: loop header
LB: loop body
LE: loop exit
PB: predicated region body
PF: predicated region fallthrough
CT: control target
= control target key end

     0   :  { %vm164_vm0 = vcmask 261120   ;;  %s5236_s0 = inlined_call_operand.vmem [shape: f32[2,128,32], index: 0, kind: input, shape index: {}]   ;;  %s5237_s1 = inlined_call_operand.vmem [shape: f32[2,128,32], index: 1, kind: input, shape index: {}]   ;;  %s5238_s2 = inlined_call_operand.vmem [shape: f32[32,256], index: 2, kind: input, shape index: {}]   ;;  %s5239_s3 = inlined_call_operand.vmem [shape: f32[1,256], index: 3, kind: input, shape index: {}]   ;;  %s5240_s4 = inlined_call_operand.vmem [shape: f32[128,256], index: 4, kind: input, shape index: {}]   ;;  %s5241_s5 = inlined_call_operand.vmem [shape: f32[128,256], index: 5, kind: input, shape index: {}]   ;;  %s5242_s6 = inlined_call_operand.vmem [shape: f32[1,128], index: 6, kind: input, shape index: {}]   ;;  %s5243_s7 = inlined_call_operand.vmem [shape: f32[128,8], index: 7, kind: input, shape index: {}]   ;;  %s5244_s8 = inlined_call_operand.vmem [shape: f32[1,8], index: 8, kind: input, shape index: {}]   ;;  %s5245_s9 = inlined_call_operand.hbm [shape: f32[2,4,128,128], index: 9, kind: output, shape index: {}]  }
   0x1   :  { %v101_v0 = vld [vmem:[%s5238_s2 + $0x30] sm:$0xff]  ;;  %v100_v1 = vld [vmem:[%s5238_s2 + $0x20] sm:$0xff]  ;;  %v142_v5 = vld [vmem:[%s5236_s0 + $0x68] sm:$0xff] }
   0x2   :  { %225 = vmatpush.msra.mxu0 %v101_v0  ;;  %2687 = vmatpush.msra.mxu1 %v101_v0  ;;  %v99_v2 = vld [vmem:[%s5238_s2 + $0x10] sm:$0xff]  ;;  %v98_v3 = vld [vmem:[%s5238_s2] sm:$0xff]  ;;  %v109_v7 = vld [vmem:[%s5238_s2 + $0x38] sm:$0xff] }
   0x3   :  { %2688 = vmatpush.msra.mxu2 %v101_v0  ;;  %v129_v4 = vld [vmem:[%s5236_s0] sm:$0xff]  ;;  %v143_v6 = vld [vmem:[%s5236_s0 + $0x70] sm:$0xff] }
   0x4   :  { %226 = vmatpush.msra.mxu0 %v100_v1  ;;  %2689 = vmatpush.msra.mxu1 %v100_v1 }
   0x5   :  { %2690 = vmatpush.msra.mxu2 %v100_v1 }
   0x6   :  { %227 = vmatpush.msra.mxu0 %v99_v2  ;;  %2691 = vmatpush.msra.mxu1 %v99_v2 }
   0x7   :  { %2692 = vmatpush.msra.mxu2 %v99_v2 }
   0x8   :  { %228 = vmatpush.msra.mxu0 %v98_v3  ;;  %2693 = vmatpush.msra.mxu1 %v98_v3 }
   0x9   :  { %14 = vsyncpa [#allocation3], 0  ;;  %2694 = vmatpush.msra.mxu2 %v98_v3  ;;  %2559 = vmatmul.msk.f32.vlgmr.msra.gmra.mxu0 %vm164_vm0, %v129_v4  ;;  %v107_v8 = vld [vmem:[%s5238_s2 + $0x28] sm:$0xff]  ;;  %v105_v9 = vld [vmem:[%s5238_s2 + $0x18] sm:$0xff]  ;;  %s2869_s26 = smov 64   ;;  %s2547_s17 = sshll.u32 %s5245_s9, 4  ;;  %s2548_s17 = int_to_ptr.hbm [resolvable:$true] %s2547_s17 }
   0xa   :  { %2572 = vmatmul.msk.f32.vlgmr.msra.gmra.mxu1 %vm164_vm0, %v142_v5  ;;  %2573 = vmatmul.msk.f32.vlgmr.msra.gmra.mxu2 %vm164_vm0, %v143_v6  ;;  %v130_v10 = vld [vmem:[%s5236_s0 + $0x8] sm:$0xff]  ;;  %v144_v12 = vld [vmem:[%s5236_s0 + $0x78] sm:$0xff]  ;;  %v145_v13 = vld [vmem:[%s5237_s1] sm:$0xff]  ;;  %s2875_s18 = smov 128  }
   0xb   :  { %408 = vmatpush.msrb.mxu2 %v109_v7  ;;  %343 = vmatpush.msrb.mxu1 %v101_v0  ;;  %v103_v11 = vld [vmem:[%s5238_s2 + $0x8] sm:$0xff]  ;;  %v131_v14 = vld [vmem:[%s5236_s0 + $0x10] sm:$0xff]  ;;  %v132_v16 = vld [vmem:[%s5236_s0 + $0x18] sm:$0xff] }
   0xc   :  { %v146_v15 = vld [vmem:[%s5237_s1 + $0x8] sm:$0xff]  ;;  %v147_v17 = vld [vmem:[%s5237_s1 + $0x10] sm:$0xff]  ;;  %v133_v18 = vld [vmem:[%s5236_s0 + $0x20] sm:$0xff] }
   0xd   :  { %409 = vmatpush.msrb.mxu2 %v107_v8  ;;  %344 = vmatpush.msrb.mxu1 %v100_v1  ;;  %v148_v19 = vld [vmem:[%s5237_s1 + $0x18] sm:$0xff]  ;;  %v134_v20 = vld [vmem:[%s5236_s0 + $0x28] sm:$0xff]  ;;  %v149_v21 = vld [vmem:[%s5237_s1 + $0x20] sm:$0xff] }
   0xe   :  { %v135_v22 = vld [vmem:[%s5236_s0 + $0x30] sm:$0xff]  ;;  %v150_v23 = vld [vmem:[%s5237_s1 + $0x28] sm:$0xff]  ;;  %v136_v24 = vld [vmem:[%s5236_s0 + $0x38] sm:$0xff] }
   0xf   :  { %410 = vmatpush.msrb.mxu2 %v105_v9  ;;  %345 = vmatpush.msrb.mxu1 %v99_v2  ;;  %v151_v25 = vld [vmem:[%s5237_s1 + $0x30] sm:$0xff]  ;;  %v137_v26 = vld [vmem:[%s5236_s0 + $0x40] sm:$0xff]  ;;  %v152_v27 = vld [vmem:[%s5237_s1 + $0x38] sm:$0xff] }
  0x10   :  { %v138_v28 = vld [vmem:[%s5236_s0 + $0x48] sm:$0xff]  ;;  %v153_v29 = vld [vmem:[%s5237_s1 + $0x40] sm:$0xff]  ;;  %v139_v30 = vld [vmem:[%s5236_s0 + $0x50] sm:$0xff] }
  0x11   :  { %2560 = vmatmul.msk.f32.gmra.mxu0 %vm164_vm0, %v130_v10  ;;  %411 = vmatpush.msrb.mxu2 %v103_v11  ;;  %v154_v31 = vld [vmem:[%s5237_s1 + $0x48] sm:$0xff]  ;;  %v140_v32 = vld [vmem:[%s5236_s0 + $0x58] sm:$0xff]  ;;  %v155_v33 = vld [vmem:[%s5237_s1 + $0x50] sm:$0xff] }
  0x12   :  { %2574 = vmatmul.msk.f32.gmra.mxu2 %vm164_vm0, %v144_v12  ;;  %346 = vmatpush.msrb.mxu1 %v98_v3  ;;  %v141_v34 = vld [vmem:[%s5236_s0 + $0x60] sm:$0xff]  ;;  %v156_v35 = vld [vmem:[%s5237_s1 + $0x58] sm:$0xff]  ;;  %v158_v37 = vld [vmem:[%s5237_s1 + $0x68] sm:$0xff] }
  0x13   :  { %1435 = vmatpush.msra.mxu2 %v101_v0  ;;  %2575 = vmatmul.msk.f32.vlgmr.msrb.gmra.mxu1 %vm164_vm0, %v145_v13  ;;  %v157_v36 = vld [vmem:[%s5237_s1 + $0x60] sm:$0xff]  ;;  %v159_v38 = vld [vmem:[%s5237_s1 + $0x70] sm:$0xff]  ;;  %v160_v44 = vld [vmem:[%s5237_s1 + $0x78] sm:$0xff] }
  0x14   :  { %v3091_v39 = vld [vmem:[%s5239_s3] ss:$0 sm:$0xff]  ;;  %v2608_v59 = vld [vmem:[%s5236_s0 + $0x88] sm:$0xff]  ;;  %v2609_v0 = vld [vmem:[%s5236_s0 + $0x90] sm:$0xff] }
  0x15   :  { %1436 = vmatpush.msra.mxu2 %v100_v1  ;;  %5344 = vst [vmem:[#allocation5_spill] sm:$0xff] %v3091_v39  ;;  %v2607_v53 = vld [vmem:[%s5236_s0 + $0x80] sm:$0xff]  ;;  %v2610_v5 = vld [vmem:[%s5236_s0 + $0x98] sm:$0xff] }
  0x16   :  { %v3132_v54 = vld [vmem:[%s5239_s3] sm:$0x3] }
  0x17   :  { %1437 = vmatpush.msra.mxu2 %v99_v2  ;;  %v3140_v55 = vperm.slane %v3132_v54, 1  ;;  %v2611_v11 = vld [vmem:[%s5236_s0 + $0xa0] sm:$0xff] }
  0x19   :  { %2561 = vmatmul.msk.f32.gmra.mxu0 %vm164_vm0, %v131_v14  ;;  %1438 = vmatpush.msra.mxu2 %v98_v3  ;;  %5348 = vst [vmem:[#allocation9_spill] sm:$0xff] %v3140_v55 }
  0x1a   :  { %2591 = vmatmul.msk.f32.vlgmr.msrb.gmra.mxu2 %vm164_vm0, %v145_v13 }
  0x1b   :  { %2576 = vmatmul.msk.f32.gmra.mxu1 %vm164_vm0, %v146_v15 }
  0x21   :  { %2562 = vmatmul.msk.f32.gmra.mxu0 %vm164_vm0, %v132_v16  ;;  %v2612_v16 = vld [vmem:[%s5236_s0 + $0xa8] sm:$0xff] }
  0x22   :  { %2592 = vmatmul.msk.f32.gmra.mxu2 %vm164_vm0, %v146_v15 }
  0x23   :  { %2577 = vmatmul.msk.f32.gmra.mxu1 %vm164_vm0, %v147_v17 }
  0x29   :  { %2563 = vmatmul.msk.f32.gmra.mxu0 %vm164_vm0, %v133_v18 }
  0x2a   :  { %2593 = vmatmul.msk.f32.gmra.mxu2 %vm164_vm0, %v147_v17 }
  0x2b   :  { %2578 = vmatmul.msk.f32.gmra.mxu1 %vm164_vm0, %v148_v19 }
  0x31   :  { %2564 = vmatmul.msk.f32.gmra.mxu0 %vm164_vm0, %v134_v20 }
  0x32   :  { %2594 = vmatmul.msk.f32.gmra.mxu2 %vm164_vm0, %v148_v19 }
  0x33   :  { %2579 = vmatmul.msk.f32.gmra.mxu1 %vm164_vm0, %v149_v21 }
  0x39   :  { %2565 = vmatmul.msk.f32.gmra.mxu0 %vm164_vm0, %v135_v22 }
  0x3a   :  { %2595 = vmatmul.msk.f32.gmra.mxu2 %vm164_vm0, %v149_v21  ;;  %v2613_v21 = vld [vmem:[%s5236_s0 + $0xb0] sm:$0xff] }
  0x3b   :  { %2580 = vmatmul.msk.f32.gmra.mxu1 %vm164_vm0, %v150_v23 }
  0x41   :  { %2566 = vmatmul.msk.f32.gmra.mxu0 %vm164_vm0, %v136_v24 }
  0x42   :  { %2596 = vmatmul.msk.f32.gmra.mxu2 %vm164_vm0, %v150_v23 }
  0x43   :  { %2581 = vmatmul.msk.f32.gmra.mxu1 %vm164_vm0, %v151_v25 }
  0x49   :  { %2567 = vmatmul.msk.f32.gmra.mxu0 %vm164_vm0, %v137_v26  ;;  %v2614_v26 = vld [vmem:[%s5236_s0 + $0xb8] sm:$0xff] }
  0x4a   :  { %2597 = vmatmul.msk.f32.gmra.mxu2 %vm164_vm0, %v151_v25 }
  0x4b   :  { %2582 = vmatmul.msk.f32.gmra.mxu1 %vm164_vm0, %v152_v27 }
  0x51   :  { %2568 = vmatmul.msk.f32.gmra.mxu0 %vm164_vm0, %v138_v28 }
  0x52   :  { %2598 = vmatmul.msk.f32.gmra.mxu2 %vm164_vm0, %v152_v27 }
  0x53   :  { %2583 = vmatmul.msk.f32.gmra.mxu1 %vm164_vm0, %v153_v29 }
  0x59   :  { %2569 = vmatmul.msk.f32.gmra.mxu0 %vm164_vm0, %v139_v30 }
  0x5a   :  { %2599 = vmatmul.msk.f32.gmra.mxu2 %vm164_vm0, %v153_v29 }
  0x5b   :  { %2584 = vmatmul.msk.f32.gmra.mxu1 %vm164_vm0, %v154_v31 }
  0x61   :  { %2570 = vmatmul.msk.f32.gmra.mxu0 %vm164_vm0, %v140_v32 }
  0x62   :  { %2600 = vmatmul.msk.f32.gmra.mxu2 %vm164_vm0, %v154_v31  ;;  %v2615_v31 = vld [vmem:[%s5236_s0 + $0xc0] sm:$0xff] }
  0x63   :  { %2585 = vmatmul.msk.f32.gmra.mxu1 %vm164_vm0, %v155_v33 }
  0x69   :  { %2571 = vmatmul.msk.f32.gmra.mxu0 %vm164_vm0, %v141_v34 }
  0x6a   :  { %2601 = vmatmul.msk.f32.gmra.mxu2 %vm164_vm0, %v155_v33 }
  0x6b   :  { %2586 = vmatmul.msk.f32.gmra.mxu1 %vm164_vm0, %v156_v35 }
  0x72   :  { %2602 = vmatmul.msk.f32.gmra.mxu2 %vm164_vm0, %v156_v35 }
  0x73   :  { %2587 = vmatmul.msk.f32.gmra.mxu1 %vm164_vm0, %v157_v36 }
  0x7a   :  { %2603 = vmatmul.msk.f32.gmra.mxu2 %vm164_vm0, %v157_v36  ;;  %v2616_v36 = vld [vmem:[%s5236_s0 + $0xc8] sm:$0xff] }
  0x7b   :  { %2588 = vmatmul.msk.f32.gmra.mxu1 %vm164_vm0, %v158_v37 }
  0x82   :  { %2604 = vmatmul.msk.f32.gmra.mxu2 %vm164_vm0, %v158_v37 }
  0x83   :  { %2589 = vmatmul.msk.f32.gmra.mxu1 %vm164_vm0, %v159_v38 }
  0x86   :  { %v230_v40 = vpop.f32.mrf.mxu0 }
  0x87   :  { %v3095_v41 = vadd.f32 %v3091_v39, %v230_v40  ;;  %v269_v42 = vpop.f32.mrf.mxu1 }
  0x88   :  { %v3098_v43 = vadd.f32 %v3091_v39, %v269_v42  ;;  %v3274_v42 = vld [vmem:[%s5243_s7 + $0x78] sm:$0xff] }
  0x89   :  { %477 = vrot.lane.b32.xlu0 %v3095_v41, %s2869_s26  ;;  %773 = vmatpush.msra.mxu1 %v3274_v42 }
  0x8a   :  { %5345 = vst [vmem:[#allocation6_spill] sm:$0xff] %v3098_v43  ;;  %2605 = vmatmul.msk.f32.gmra.mxu2 %vm164_vm0, %v159_v38  ;;  %503 = vrot.lane.b32.xlu1 %v3098_v43, %s2869_s26 }
  0x8b   :  { %2590 = vmatmul.msk.f32.gmra.mxu1 %vm164_vm0, %v160_v44  ;;  %1907 = vmatpush.msrb.mxu2 %v3274_v42 }
  0x8d   :  { %v272_v45 = vpop.f32.mrf.mxu2 }
  0x8e   :  { %v3110_v46 = vadd.f32 %v3091_v39, %v272_v45  ;;  %v233_v47 = vpop.f32.mrf.mxu0  ;;  %v2617_v45 = vld [vmem:[%s5236_s0 + $0xd0] sm:$0xff] }
  0x8f   :  { %v3113_v48 = vadd.f32 %v3091_v39, %v233_v47  ;;  %v3289_v47 = vld [vmem:[%s5243_s7 + $0x70] sm:$0xff] }
  0x90   :  { %5346 = vst [vmem:[#allocation7_spill] sm:$0xff] %v3110_v46  ;;  %505 = vrot.lane.b32.xlu2 %v3110_v46, %s2869_s26  ;;  %774 = vmatpush.msra.mxu1 %v3289_v47 }
  0x91   :  { %479 = vrot.lane.b32.xlu0 %v3113_v48, %s2869_s26  ;;  %1908 = vmatpush.msrb.mxu2 %v3289_v47 }
  0x92   :  { %2606 = vmatmul.msk.f32.gmra.mxu2 %vm164_vm0, %v160_v44 }
  0x95   :  { %v275_v49 = vpop.f32.mrf.mxu2 }
  0x96   :  { %v236_v50 = vpop.f32.mrf.mxu0  ;;  %v3121_v51 = vadd.f32 %v3091_v39, %v275_v49  ;;  %v3298_v49 = vld [vmem:[%s5243_s7 + $0x68] sm:$0xff] }
  0x97   :  { %v3124_v52 = vadd.f32 %v3091_v39, %v236_v50  ;;  %775 = vmatpush.msra.mxu1 %v3298_v49  ;;  %v3305_v50 = vld [vmem:[%s5243_s7 + $0x60] sm:$0xff]  ;;  %1909 = vmatpush.msrb.mxu2 %v3298_v49 }
  0x98   :  { %5347 = vst [vmem:[#allocation8_spill] sm:$0xff] %v3121_v51 }
  0x99   :  { %481 = vrot.lane.b32.xlu1 %v3124_v52, %s2869_s26  ;;  %507 = vrot.lane.b32.xlu0 %v3121_v51, %s2869_s26 }
  0x9a   :  { %2639 = vmatmul.msk.f32.vlgmr.msra.gmra.mxu2 %vm164_vm0, %v2607_v53  ;;  %776 = vmatpush.msra.mxu1 %v3305_v50 }
  0x9b   :  { %1910 = vmatpush.msrb.mxu2 %v3305_v50 }
  0x9d   :  { %v413_v56 = vpop.f32.mrf.mxu2 }
  0x9e   :  { %v239_v57 = vpop.f32.mrf.mxu0  ;;  %v3143_v58 = vadd.f32 %v413_v56, %v3140_v55 }
  0x9f   :  { %v3152_v60 = vadd.f32 %v3091_v39, %v239_v57  ;;  %v3315_v57 = vld [vmem:[%s5243_s7 + $0x58] sm:$0xff] }
  0xa0   :  { %777 = vmatpush.msra.mxu1 %v3315_v57  ;;  %1911 = vmatpush.msrb.mxu2 %v3315_v57 }
  0xa1   :  { %557 = vrot.lane.b32.xlu1 %v3143_v58, %s2869_s26  ;;  %5349 = vst [vmem:[#allocation10_spill] sm:$0xff] %v3152_v60 }
  0xa2   :  { %2640 = vmatmul.msk.f32.gmra.mxu2 %vm164_vm0, %v2608_v59  ;;  %v2618_v59 = vld [vmem:[%s5236_s0 + $0xd8] sm:$0xff] }
  0xa5   :  { %v416_v61 = vpop.f32.mrf.mxu2 }
  0xa6   :  { %v3155_v62 = vadd.f32 %v416_v61, %v3140_v55  ;;  %v242_v63 = vpop.f32.mrf.mxu0  ;;  %v3327_v61 = vld [vmem:[%s5243_s7 + $0x50] sm:$0xff] }
  0xa7   :  { %v3166_v1 = vadd.f32 %v3091_v39, %v242_v63  ;;  %778 = vmatpush.msra.mxu1 %v3327_v61  ;;  %v3335_v63 = vld [vmem:[%s5243_s7 + $0x48] sm:$0xff]  ;;  %1912 = vmatpush.msrb.mxu2 %v3327_v61 }
  0xa8   :  { %559 = vrot.lane.b32.xlu2 %v3155_v62, %s2869_s26 }
  0xa9   :  { %483 = vrot.lane.b32.xlu1 %v3152_v60, %s2869_s26  ;;  %5350 = vst [vmem:[#allocation11_spill] sm:$0xff] %v3166_v1  ;;  %779 = vmatpush.msra.mxu1 %v3335_v63 }
  0xaa   :  { %2641 = vmatmul.msk.f32.gmra.mxu2 %vm164_vm0, %v2609_v0  ;;  %v3342_v0 = vld [vmem:[%s5243_s7 + $0x40] sm:$0xff] }
  0xab   :  { %780 = vmatpush.msra.mxu1 %v3342_v0  ;;  %1913 = vmatpush.msrb.mxu2 %v3335_v63 }
  0xad   :  { %v419_v2 = vpop.f32.mrf.mxu2  ;;  %1914 = vmatpush.msrb.mxu2 %v3342_v0 }
  0xae   :  { %v3169_v3 = vadd.f32 %v419_v2, %v3140_v55  ;;  %v245_v4 = vpop.f32.mrf.mxu0 }
  0xaf   :  { %v3180_v6 = vadd.f32 %v3091_v39, %v245_v4 }
  0xb0   :  { %485 = vrot.lane.b32.xlu2 %v3166_v1, %s2869_s26  ;;  %561 = vrot.lane.b32.xlu0 %v3169_v3, %s2869_s26 }
  0xb2   :  { %2642 = vmatmul.msk.f32.gmra.mxu2 %vm164_vm0, %v2610_v5  ;;  %v3352_v5 = vld [vmem:[%s5243_s7 + $0x38] sm:$0xff] }
  0xb3   :  { %5356 = vst [vmem:[#allocation17_spill] sm:$0xff] %v3352_v5  ;;  %781 = vmatpush.msra.mxu1 %v3352_v5  ;;  %1915 = vmatpush.msrb.mxu2 %v3352_v5 }
  0xb5   :  { %v422_v7 = vpop.f32.mrf.mxu2 }
  0xb6   :  { %v3183_v8 = vadd.f32 %v422_v7, %v3140_v55  ;;  %v248_v9 = vpop.f32.mrf.mxu0  ;;  %v2619_v7 = vld [vmem:[%s5236_s0 + $0xe0] sm:$0xff] }
  0xb7   :  { %v3186_v10 = vadd.f32 %v3091_v39, %v248_v9  ;;  %v3364_v9 = vld [vmem:[%s5243_s7 + $0x30] sm:$0xff] }
  0xb8   :  { %487 = vrot.lane.b32.xlu2 %v3180_v6, %s2869_s26  ;;  %563 = vrot.lane.b32.xlu1 %v3183_v8, %s2869_s26  ;;  %5357 = vst [vmem:[#allocation18_spill] sm:$0xff] %v3364_v9 }
  0xb9   :  { %489 = vrot.lane.b32.xlu0 %v3186_v10, %s2869_s26  ;;  %782 = vmatpush.msra.mxu1 %v3364_v9 }
  0xba   :  { %2643 = vmatmul.msk.f32.gmra.mxu2 %vm164_vm0, %v2611_v11  ;;  %v3372_v11 = vld [vmem:[%s5243_s7 + $0x28] sm:$0xff] }
  0xbb   :  { %5358 = vst [vmem:[#allocation19_spill] sm:$0xff] %v3372_v11  ;;  %783 = vmatpush.msra.mxu1 %v3372_v11  ;;  %1916 = vmatpush.msrb.mxu2 %v3364_v9  ;;  %v79_v9 = vld [vmem:[%s5241_s5 + $0xe0] sm:$0xff] }
  0xbd   :  { %v425_v12 = vpop.f32.mrf.mxu2  ;;  %1917 = vmatpush.msrb.mxu2 %v3372_v11 }
  0xbe   :  { %v3199_v13 = vadd.f32 %v425_v12, %v3140_v55  ;;  %v251_v14 = vpop.f32.mrf.mxu0  ;;  %v3379_v12 = vld [vmem:[%s5243_s7 + $0x20] sm:$0xff] }
  0xbf   :  { %v3202_v15 = vadd.f32 %v3091_v39, %v251_v14  ;;  %5359 = vst [vmem:[#allocation20_spill] sm:$0xff] %v3379_v12  ;;  %784 = vmatpush.msra.mxu1 %v3379_v12  ;;  %1918 = vmatpush.msrb.mxu2 %v3379_v12 }
  0xc0   :  { %565 = vrot.lane.b32.xlu2 %v3199_v13, %s2869_s26 }
  0xc1   :  { %491 = vrot.lane.b32.xlu1 %v3202_v15, %s2869_s26 }
  0xc2   :  { %2644 = vmatmul.msk.f32.gmra.mxu2 %vm164_vm0, %v2612_v16 }
  0xc5   :  { %v428_v17 = vpop.f32.mrf.mxu2 }
  0xc6   :  { %v3213_v18 = vadd.f32 %v428_v17, %v3140_v55  ;;  %v254_v19 = vpop.f32.mrf.mxu0  ;;  %v3389_v17 = vld [vmem:[%s5243_s7 + $0x18] sm:$0xff] }
  0xc7   :  { %v3216_v20 = vadd.f32 %v3091_v39, %v254_v19  ;;  %5360 = vst [vmem:[#allocation21_spill] sm:$0xff] %v3389_v17  ;;  %v3394_v19 = vld [vmem:[%s5243_s7 + $0x10] sm:$0xff]  ;;  %785 = vmatpush.msra.mxu1 %v3389_v17  ;;  %1919 = vmatpush.msrb.mxu2 %v3389_v17 }
  0xc8   :  { %567 = vrot.lane.b32.xlu0 %v3213_v18, %s2869_s26  ;;  %5361 = vst [vmem:[#allocation22_spill] sm:$0xff] %v3394_v19 }
  0xc9   :  { %5351 = vst [vmem:[#allocation12_spill] sm:$0xff] %v3216_v20  ;;  %493 = vrot.lane.b32.xlu2 %v3216_v20, %s2869_s26  ;;  %786 = vmatpush.msra.mxu1 %v3394_v19 }
  0xca   :  { %2645 = vmatmul.msk.f32.gmra.mxu2 %vm164_vm0, %v2613_v21  ;;  %v3403_v21 = vperm.slane %v3132_v54, 0 }
  0xcb   :  { %1920 = vmatpush.msrb.mxu2 %v3394_v19 }
  0xcc   :  { %5362 = vst [vmem:[#allocation23_spill] sm:$0xff] %v3403_v21 }
  0xcd   :  { %v431_v22 = vpop.f32.mrf.mxu2 }
  0xce   :  { %v3227_v23 = vadd.f32 %v431_v22, %v3140_v55  ;;  %v257_v24 = vpop.f32.mrf.mxu0  ;;  %v3408_v22 = vld [vmem:[%s5243_s7 + $0x8] sm:$0xff] }
  0xcf   :  { %v3230_v25 = vadd.f32 %v3091_v39, %v257_v24  ;;  %5363 = vst [vmem:[#allocation24_spill] sm:$0xff] %v3408_v22  ;;  %v348_v24 = vpop.f32.mrf.mxu1  ;;  %787 = vmatpush.msra.mxu1 %v3408_v22  ;;  %1921 = vmatpush.msrb.mxu2 %v3408_v22 }
  0xd0   :  { %569 = vrot.lane.b32.xlu1 %v3227_v23, %s2869_s26 }
  0xd1   :  { %5352 = vst [vmem:[#allocation13_spill] sm:$0xff] %v3230_v25  ;;  %495 = vrot.lane.b32.xlu0 %v3230_v25, %s2869_s26 }
  0xd2   :  { %2646 = vmatmul.msk.f32.gmra.mxu2 %vm164_vm0, %v2614_v26  ;;  %v349_v26 = vadd.f32 %v348_v24, %v3403_v21 }
  0xd5   :  { %v434_v27 = vpop.f32.mrf.mxu2 }
  0xd6   :  { %v3241_v28 = vadd.f32 %v434_v27, %v3140_v55  ;;  %v260_v29 = vpop.f32.mrf.mxu0  ;;  %v3416_v27 = vld [vmem:[%s5243_s7] sm:$0xff] }
  0xd7   :  { %v3244_v30 = vadd.f32 %v3091_v39, %v260_v29  ;;  %5364 = vst [vmem:[#allocation25_spill] sm:$0xff] %v3416_v27  ;;  %788 = vmatpush.msra.mxu1 %v3416_v27  ;;  %1922 = vmatpush.msrb.mxu2 %v3416_v27 }
  0xd8   :  { %571 = vrot.lane.b32.xlu2 %v3241_v28, %s2869_s26  ;;  %789 = vmatmul.f32.vlgmr.msra.gmra.mxu1 %v349_v26 }
  0xd9   :  { %5353 = vst [vmem:[#allocation14_spill] sm:$0xff] %v3244_v30  ;;  %497 = vrot.lane.b32.xlu1 %v3244_v30, %s2869_s26 }
  0xda   :  { %2647 = vmatmul.msk.f32.gmra.mxu2 %vm164_vm0, %v2615_v31  ;;  %v351_v31 = vpop.f32.mrf.mxu1 }
  0xdd   :  { %v437_v32 = vpop.f32.mrf.mxu2 }
  0xde   :  { %v3255_v33 = vadd.f32 %v437_v32, %v3140_v55  ;;  %v263_v34 = vpop.f32.mrf.mxu0 }
  0xdf   :  { %v3258_v35 = vadd.f32 %v3091_v39, %v263_v34  ;;  %v352_v34 = vadd.f32 %v351_v31, %v3403_v21 }
  0xe0   :  { %573 = vrot.lane.b32.xlu0 %v3255_v33, %s2869_s26 }
  0xe1   :  { %5354 = vst [vmem:[#allocation15_spill] sm:$0xff] %v3258_v35  ;;  %499 = vrot.lane.b32.xlu2 %v3258_v35, %s2869_s26  ;;  %792 = vmatmul.f32.gmra.mxu1 %v352_v34 }
  0xe2   :  { %2648 = vmatmul.msk.f32.gmra.mxu2 %vm164_vm0, %v2616_v36 }
  0xe5   :  { %v440_v37 = vpop.f32.mrf.mxu2 }
  0xe6   :  { %v3269_v38 = vadd.f32 %v440_v37, %v3140_v55  ;;  %v266_v40 = vpop.f32.mrf.mxu0  ;;  %v354_v37 = vpop.f32.mrf.mxu1 }
  0xe7   :  { %v3277_v44 = vadd.f32 %v3091_v39, %v266_v40 }
  0xe8   :  { %575 = vrot.lane.b32.xlu1 %v3269_v38, %s2869_s26 }
  0xe9   :  { %5355 = vst [vmem:[#allocation16_spill] sm:$0xff] %v3277_v44  ;;  %501 = vrot.lane.b32.xlu0 %v3277_v44, %s2869_s26 }
  0xea   :  { %2649 = vmatmul.msk.f32.gmra.mxu2 %vm164_vm0, %v2617_v45  ;;  %v355_v45 = vadd.f32 %v354_v37, %v3403_v21 }
  0xec   :  { %795 = vmatmul.f32.gmra.mxu1 %v355_v45 }
  0xed   :  { %v443_v53 = vpop.f32.mrf.mxu2 }
  0xee   :  { %v3310_v56 = vadd.f32 %v443_v53, %v3140_v55 }
  0xf0   :  { %577 = vrot.lane.b32.xlu2 %v3310_v56, %s2869_s26 }
  0xf2   :  { %2650 = vmatmul.msk.f32.gmra.mxu2 %vm164_vm0, %v2618_v59  ;;  %v357_v59 = vpop.f32.mrf.mxu1 }
  0xf5   :  { %v446_v2 = vpop.f32.mrf.mxu2 }
  0xf6   :  { %v3347_v4 = vadd.f32 %v446_v2, %v3140_v55 }
  0xf8   :  { %579 = vrot.lane.b32.xlu0 %v3347_v4, %s2869_s26 }
  0xfa   :  { %2651 = vmatmul.msk.f32.gmra.mxu2 %vm164_vm0, %v2619_v7  ;;  %v358_v7 = vadd.f32 %v357_v59, %v3403_v21  ;;  %v360_v24 = vpop.f32.mrf.mxu1 }
  0xfc   :  { %798 = vmatmul.f32.gmra.mxu1 %v358_v7  ;;  %v3457_v7 = vpop.permute.xlu1 %503 }
  0xfd   :  { %v449_v14 = vpop.f32.mrf.mxu2  ;;  %5368 = vst [vmem:[#allocation29_spill] sm:$0xff] %v3457_v7 }
  0xfe   :  { %v3384_v16 = vadd.f32 %v449_v14, %v3140_v55 }
 0x100   :  { %581 = vrot.lane.b32.xlu1 %v3384_v16, %s2869_s26 }
 0x105   :  { %v452_v29 = vpop.f32.mrf.mxu2 }
 0x106   :  { %v3421_v54 = vadd.f32 %v452_v29, %v3140_v55  ;;  %v361_v29 = vadd.f32 %v360_v24, %v3403_v21  ;;  %v3459_v24 = vpop.permute.xlu0 %477 }
 0x108   :  { %583 = vrot.lane.b32.xlu2 %v3421_v54, %s2869_s26  ;;  %801 = vmatmul.f32.gmra.mxu1 %v361_v29 }
 0x10d   :  { %v455_v32 = vpop.f32.mrf.mxu2 }
 0x10e   :  { %v3428_v36 = vadd.f32 %v455_v32, %v3140_v55  ;;  %v363_v32 = vpop.f32.mrf.mxu1  ;;  %v3474_v51 = vpop.permute.xlu0 %479 }
 0x10f   :  { %v364_v37 = vadd.f32 %v363_v32, %v3403_v21 }
 0x110   :  { %585 = vrot.lane.b32.xlu0 %v3428_v36, %s2869_s26 }
 0x111   :  { %804 = vmatmul.f32.gmra.mxu1 %v364_v37  ;;  %v3467_v37 = vpop.permute.xlu1 %481 }
 0x115   :  { %v458_v40 = vpop.f32.mrf.mxu2 }
 0x116   :  { %v3434_v53 = vadd.f32 %v458_v40, %v3140_v55  ;;  %v366_v45 = vpop.f32.mrf.mxu1 }
 0x118   :  { %587 = vrot.lane.b32.xlu1 %v3434_v53, %s2869_s26 }
 0x11d   :  { %v1440_v2 = vpop.f32.mrf.mxu2 }
 0x11e   :  { %v3440_v14 = vadd.f32 %v3091_v39, %v1440_v2  ;;  %v367_v2 = vadd.f32 %v366_v45, %v3403_v21  ;;  %v369_v29 = vpop.f32.mrf.mxu1  ;;  %v3472_v45 = vpop.permute.xlu2 %505 }
 0x11f   :  { %5371 = vst [vmem:[#allocation32_spill] sm:$0xff] %v3472_v45 }
 0x120   :  { %5365 = vst [vmem:[#allocation26_spill] sm:$0xff] %v3440_v14  ;;  %1682 = vrot.lane.b32.xlu2 %v3440_v14, %s2869_s26  ;;  %807 = vmatmul.f32.gmra.mxu1 %v367_v2 }
 0x125   :  { %v1443_v26 = vpop.f32.mrf.mxu2 }
 0x126   :  { %v3446_v31 = vadd.f32 %v3091_v39, %v1443_v26 }
 0x128   :  { %5366 = vst [vmem:[#allocation27_spill] sm:$0xff] %v3446_v31  ;;  %1684 = vrot.lane.b32.xlu0 %v3446_v31, %s2869_s26 }
 0x12d   :  { %v1446_v34 = vpop.f32.mrf.mxu2 }
 0x12e   :  { %v3452_v40 = vadd.f32 %v3091_v39, %v1446_v34  ;;  %v370_v34 = vadd.f32 %v369_v29, %v3403_v21  ;;  %v3482_v29 = vpop.permute.xlu2 %559 }
 0x130   :  { %5367 = vst [vmem:[#allocation28_spill] sm:$0xff] %v3452_v40  ;;  %1686 = vrot.lane.b32.xlu1 %v3452_v40, %s2869_s26  ;;  %810 = vmatmul.f32.gmra.mxu1 %v370_v34  ;;  %v3488_v34 = vpop.permute.xlu0 %507 }
 0x131   :  { %5373 = vst [vmem:[#allocation34_spill] sm:$0xff] %v3488_v34 }
 0x135   :  { %v1449_v59 = vpop.f32.mrf.mxu2 }
 0x136   :  { %v3462_v26 = vadd.f32 %v3091_v39, %v1449_v59  ;;  %v372_v59 = vpop.f32.mrf.mxu1 }
 0x137   :  { %v373_v46 = vadd.f32 %v372_v59, %v3403_v21  ;;  %v3496_v59 = vpop.permute.xlu2 %485 }
 0x138   :  { %5369 = vst [vmem:[#allocation30_spill] sm:$0xff] %v3462_v26  ;;  %1688 = vrot.lane.b32.xlu2 %v3462_v26, %s2869_s26 }
 0x139   :  { %813 = vmatmul.f32.gmra.mxu1 %v373_v46  ;;  %5375 = vst [vmem:[#allocation36_spill] sm:$0xff] %v3496_v59 }
 0x13d   :  { %v1452_v32 = vpop.f32.mrf.mxu2 }
 0x13e   :  { %v3470_v55 = vadd.f32 %v3091_v39, %v1452_v32  ;;  %v3484_v32 = vpop.permute.xlu1 %557  ;;  %v375_v45 = vpop.f32.mrf.mxu1 }
 0x13f   :  { %v3516_v40 = vpop.permute.xlu2 %487 }
 0x140   :  { %5370 = vst [vmem:[#allocation31_spill] sm:$0xff] %v3470_v55  ;;  %1690 = vrot.lane.b32.xlu0 %v3470_v55, %s2869_s26  ;;  %v376_v55 = vadd.f32 %v375_v45, %v3403_v21  ;;  %v2620_v45 = vld [vmem:[%s5236_s0 + $0xe8] sm:$0xff] }
 0x141   :  { %2652 = vmatmul.msk.f32.gmra.mxu2 %vm164_vm0, %v2620_v45 }
 0x142   :  { %816 = vmatmul.f32.gmra.mxu1 %v376_v55 }
 0x145   :  { %v1455_v2 = vpop.f32.mrf.mxu2 }
 0x146   :  { %v3480_v43 = vadd.f32 %v3091_v39, %v1455_v2  ;;  %v3498_v46 = vpop.permute.xlu1 %483  ;;  %v3500_v2 = vpop.permute.xlu0 %561 }
 0x147   :  { %5376 = vst [vmem:[#allocation37_spill] sm:$0xff] %v3498_v46  ;;  %v3533_v22 = vpop.permute.xlu2 %565  ;;  %v94_v46 = vld [vmem:[%s5241_s5 + $0xd8] sm:$0xff] }
 0x148   :  { %5372 = vst [vmem:[#allocation33_spill] sm:$0xff] %v3480_v43  ;;  %1692 = vrot.lane.b32.xlu1 %v3480_v43, %s2869_s26  ;;  %v378_v43 = vpop.f32.mrf.mxu1 }
 0x149   :  { %v379_v34 = vadd.f32 %v378_v43, %v3403_v21 }
 0x14b   :  { %819 = vmatmul.f32.gmra.mxu1 %v379_v34 }
 0x14d   :  { %v1458_v7 = vpop.f32.mrf.mxu2 }
 0x14e   :  { %v3492_v26 = vadd.f32 %v3091_v39, %v1458_v7  ;;  %v3512_v55 = vpop.permute.xlu1 %563 }
 0x14f   :  { %v3545_v25 = vpop.permute.xlu2 %493 }
 0x150   :  { %5374 = vst [vmem:[#allocation35_spill] sm:$0xff] %v3492_v26  ;;  %1694 = vrot.lane.b32.xlu2 %v3492_v26, %s2869_s26  ;;  %v3514_v26 = vpop.permute.xlu0 %489  ;;  %v381_v43 = vpop.f32.mrf.mxu1 }
 0x151   :  { %v382_v31 = vadd.f32 %v381_v43, %v3403_v21  ;;  %5381 = vst [vmem:[#allocation42_spill] sm:$0xff] %v3545_v25 }
 0x153   :  { %822 = vmatmul.f32.gmra.mxu1 %v382_v31 }
 0x155   :  { %v1461_v44 = vpop.f32.mrf.mxu2 }
 0x156   :  { %v3507_v7 = vadd.f32 %v3091_v39, %v1461_v44  ;;  %v2621_v44 = vld [vmem:[%s5236_s0 + $0xf0] sm:$0xff]  ;;  %v3528_v34 = vpop.permute.xlu1 %491 }
 0x157   :  { %2653 = vmatmul.msk.f32.gmra.mxu2 %vm164_vm0, %v2621_v44 }
 0x158   :  { %5377 = vst [vmem:[#allocation38_spill] sm:$0xff] %v3507_v7  ;;  %1696 = vrot.lane.b32.xlu0 %v3507_v7, %s2869_s26  ;;  %v3530_v7 = vpop.permute.xlu0 %567  ;;  %v384_v30 = vpop.f32.mrf.mxu1 }
 0x159   :  { %v385_v43 = vadd.f32 %v384_v30, %v3403_v21 }
 0x15b   :  { %825 = vmatmul.f32.gmra.mxu1 %v385_v43 }
 0x15d   :  { %v1464_v35 = vpop.f32.mrf.mxu2 }
 0x15e   :  { %v3523_v45 = vadd.f32 %v3091_v39, %v1464_v35  ;;  %v3540_v35 = vpop.permute.xlu1 %569 }
 0x160   :  { %5378 = vst [vmem:[#allocation39_spill] sm:$0xff] %v3523_v45  ;;  %1698 = vrot.lane.b32.xlu1 %v3523_v45, %s2869_s26  ;;  %v3542_v31 = vpop.permute.xlu0 %495  ;;  %v387_v44 = vpop.f32.mrf.mxu1 }
 0x161   :  { %5380 = vst [vmem:[#allocation41_spill] sm:$0xff] %v3542_v31  ;;  %v388_v19 = vadd.f32 %v387_v44, %v3403_v21  ;;  %v3557_v31 = vpop.permute.xlu2 %571 }
 0x163   :  { %828 = vmatmul.f32.gmra.mxu1 %v388_v19 }
 0x165   :  { %v1467_v27 = vpop.f32.mrf.mxu2 }
 0x166   :  { %v3536_v14 = vadd.f32 %v3091_v39, %v1467_v27  ;;  %v3552_v27 = vpop.permute.xlu1 %497 }
 0x167   :  { %5383 = vst [vmem:[#allocation44_spill] sm:$0xff] %v3552_v27 }
 0x168   :  { %5379 = vst [vmem:[#allocation40_spill] sm:$0xff] %v3536_v14  ;;  %1700 = vrot.lane.b32.xlu2 %v3536_v14, %s2869_s26  ;;  %v3554_v43 = vpop.permute.xlu0 %573  ;;  %v390_v14 = vpop.f32.mrf.mxu1 }
 0x169   :  { %v391_v17 = vadd.f32 %v390_v14, %v3403_v21  ;;  %v3567_v12 = vpop.permute.xlu2 %499 }
 0x16a   :  { %5386 = vst [vmem:[#allocation47_spill] sm:$0xff] %v3567_v12 }
 0x16b   :  { %831 = vmatmul.f32.gmra.mxu1 %v391_v17 }
 0x16d   :  { %v1470_v45 = vpop.f32.mrf.mxu2 }
 0x16e   :  { %v3548_v30 = vadd.f32 %v3091_v39, %v1470_v45  ;;  %v576_v19 = vpop.permute.xlu1 %575 }
 0x170   :  { %5382 = vst [vmem:[#allocation43_spill] sm:$0xff] %v3548_v30  ;;  %1702 = vrot.lane.b32.xlu0 %v3548_v30, %s2869_s26  ;;  %v3564_v45 = vpop.permute.xlu0 %501  ;;  %v393_v30 = vpop.f32.mrf.mxu1 }
 0x171   :  { %5385 = vst [vmem:[#allocation46_spill] sm:$0xff] %v3564_v45  ;;  %v394_v59 = vadd.f32 %v393_v30, %v3403_v21  ;;  %v96_v45 = vld [vmem:[%s5241_s5 + $0xf8] sm:$0xff]  ;;  %v80_v30 = vld [vmem:[%s5241_s5 + $0xf0] sm:$0xff] }
 0x173   :  { %834 = vmatmul.f32.gmra.mxu1 %v394_v59  ;;  %v95_v59 = vld [vmem:[%s5241_s5 + $0xe8] sm:$0xff] }
 0x175   :  { %v1473_v1 = vpop.f32.mrf.mxu2 }
 0x176   :  { %v3560_v44 = vadd.f32 %v3091_v39, %v1473_v1  ;;  %v582_v17 = vpop.permute.xlu1 %581 }
 0x178   :  { %5384 = vst [vmem:[#allocation45_spill] sm:$0xff] %v3560_v44  ;;  %1704 = vrot.lane.b32.xlu1 %v3560_v44, %s2869_s26  ;;  %v580_v1 = vpop.permute.xlu0 %579  ;;  %v790_v11 = vpop.f32.mrf.mxu1 }
 0x179   :  { %v578_v44 = vpop.permute.xlu2 %577 }
 0x17d   :  { %v1476_v27 = vpop.f32.mrf.mxu2 }
 0x17e   :  { %v3570_v14 = vadd.f32 %v3091_v39, %v1476_v27  ;;  %v555_v39 = vmul.f32 %v3428_v36, %v79_v9 }
 0x180   :  { %5387 = vst [vmem:[#allocation48_spill] sm:$0xff] %v3570_v14  ;;  %1706 = vrot.lane.b32.xlu2 %v3570_v14, %s2869_s26  ;;  %v556_v14 = vmul.f32 %v3434_v53, %v80_v30  ;;  %v793_v20 = vpop.f32.mrf.mxu1  ;;  %v78_v53 = vld [vmem:[%s5241_s5 + $0xd0] sm:$0xff] }
 0x181   :  { %v584_v25 = vpop.permute.xlu2 %583 }
 0x182   :  { %v586_v21 = vpop.permute.xlu0 %585 }
 0x183   :  { %v603_v60 = vmul.f32 %v586_v21, %v95_v59  ;;  %v93_v21 = vld [vmem:[%s5241_s5 + $0xc8] sm:$0xff] }
 0x185   :  { %v619_v30 = vadd.f32 %v603_v60, %v555_v39  ;;  %v76_v60 = vld [vmem:[%s5241_s5 + $0xb0] sm:$0xff] }
 0x186   :  { %v552_v59 = vmul.f32 %v3347_v4, %v76_v60 }
 0x188   :  { %v796_v36 = vpop.f32.mrf.mxu1 }
 0x18a   :  { %v588_v27 = vpop.permute.xlu1 %587 }
 0x18b   :  { %v604_v12 = vmul.f32 %v588_v27, %v96_v45  ;;  %v602_v45 = vmul.f32 %v584_v25, %v94_v46  ;;  %v92_v25 = vld [vmem:[%s5241_s5 + $0xb8] sm:$0xff]  ;;  %v75_v27 = vld [vmem:[%s5241_s5 + $0xa0] sm:$0xff] }
 0x18d   :  { %v620_v5 = vadd.f32 %v604_v12, %v556_v14  ;;  %v554_v12 = vmul.f32 %v3421_v54, %v78_v53  ;;  %v601_v14 = vmul.f32 %v582_v17, %v93_v21  ;;  %v600_v54 = vmul.f32 %v580_v1, %v92_v25  ;;  %v91_v17 = vld [vmem:[%s5241_s5 + $0xa8] sm:$0xff]  ;;  %v3621_v1 = vld [vmem:[%s5244_s8] ss:$0 sm:$0xff]  ;;  %v74_v21 = vld [vmem:[%s5241_s5 + $0x90] sm:$0xff] }
 0x18e   :  { %v599_v53 = vmul.f32 %v578_v44, %v91_v17  ;;  %v794_v17 = vadd.f32 %v3621_v1, %v793_v20 }
 0x18f   :  { %640 = vmatpush.xpose.msrb.mxu0 %v620_v5  ;;  %2695 = vmatpush.xpose.msra.mxu3 %v620_v5  ;;  %v77_v5 = vld [vmem:[%s5241_s5 + $0xc0] sm:$0xff]  ;;  %v618_v9 = vadd.f32 %v602_v45, %v554_v12  ;;  %v90_v45 = vld [vmem:[%s5241_s5 + $0x98] sm:$0xff] }
 0x190   :  { %v553_v39 = vmul.f32 %v3384_v16, %v77_v5  ;;  %v616_v16 = vadd.f32 %v600_v54, %v552_v59  ;;  %v799_v4 = vpop.f32.mrf.mxu1  ;;  %v598_v44 = vmul.f32 %v576_v19, %v90_v45  ;;  %v89_v5 = vld [vmem:[%s5241_s5 + $0x88] sm:$0xff]  ;;  %v88_v19 = vld [vmem:[%s5241_s5 + $0x78] sm:$0xff] }
 0x191   :  { %v597_v25 = vmul.f32 %v3554_v43, %v89_v5  ;;  %v596_v60 = vmul.f32 %v3557_v31, %v88_v19  ;;  %v87_v43 = vld [vmem:[%s5241_s5 + $0x68] sm:$0xff]  ;;  %v86_v31 = vld [vmem:[%s5241_s5 + $0x58] sm:$0xff] }
 0x192   :  { %v617_v46 = vadd.f32 %v601_v14, %v553_v39  ;;  %v791_v14 = vadd.f32 %v3621_v1, %v790_v11 }
 0x193   :  { %641 = vmatpush.xpose.msrb.mxu0 %v619_v30  ;;  %2696 = vmatpush.xpose.msra.mxu3 %v619_v30  ;;  %v551_v30 = vmul.f32 %v3310_v56, %v75_v27  ;;  %v73_v56 = vld [vmem:[%s5241_s5 + $0x80] sm:$0xff]  ;;  %v595_v27 = vmul.f32 %v3540_v35, %v87_v43  ;;  %v85_v35 = vld [vmem:[%s5241_s5 + $0x48] sm:$0xff] }
 0x194   :  { %v549_v11 = vmul.f32 %v3255_v33, %v73_v56  ;;  %v71_v33 = vld [vmem:[%s5241_s5 + $0x60] sm:$0xff]  ;;  %v800_v56 = vadd.f32 %v3621_v1, %v799_v4  ;;  %v81_v43 = vld [vmem:[%s5241_s5 + $0x8] sm:$0xff] }
 0x195   :  { %v615_v12 = vadd.f32 %v599_v53, %v551_v30  ;;  %v547_v20 = vmul.f32 %v3227_v23, %v71_v33  ;;  %v797_v30 = vadd.f32 %v3621_v1, %v796_v36  ;;  %v69_v23 = vld [vmem:[%s5241_s5 + $0x40] sm:$0xff] }
 0x196   :  { %v613_v54 = vadd.f32 %v597_v25, %v549_v11  ;;  %v545_v36 = vmul.f32 %v3199_v13, %v69_v23  ;;  %v67_v13 = vld [vmem:[%s5241_s5 + $0x20] sm:$0xff] }
 0x197   :  { %642 = vmatpush.xpose.msrb.mxu0 %v618_v9  ;;  %2697 = vmatpush.xpose.msra.mxu3 %v618_v9  ;;  %v550_v9 = vmul.f32 %v3269_v38, %v74_v21  ;;  %v72_v38 = vld [vmem:[%s5241_s5 + $0x70] sm:$0xff]  ;;  %v611_v45 = vadd.f32 %v595_v27, %v547_v20  ;;  %v543_v4 = vmul.f32 %v3169_v3, %v67_v13  ;;  %v65_v33 = vld [vmem:[%s5241_s5] sm:$0xff] }
 0x198   :  { %v548_v59 = vmul.f32 %v3241_v28, %v72_v38  ;;  %v70_v28 = vld [vmem:[%s5241_s5 + $0x50] sm:$0xff]  ;;  %v49_v38 = vld [vmem:[%s5240_s4 + $0x8] sm:$0xff] }
 0x199   :  { %v614_v39 = vadd.f32 %v598_v44, %v550_v9  ;;  %v546_v21 = vmul.f32 %v3213_v18, %v70_v28  ;;  %v68_v18 = vld [vmem:[%s5241_s5 + $0x30] sm:$0xff] }
 0x19a   :  { %v612_v53 = vadd.f32 %v596_v60, %v548_v59  ;;  %v544_v25 = vmul.f32 %v3183_v8, %v68_v18  ;;  %v66_v8 = vld [vmem:[%s5241_s5 + $0x10] sm:$0xff] }
 0x19b   :  { %643 = vmatpush.xpose.msrb.mxu0 %v617_v46  ;;  %2698 = vmatpush.xpose.msra.mxu3 %v617_v46  ;;  %v802_v46 = vpop.f32.mrf.mxu1  ;;  %v542_v59 = vmul.f32 %v3155_v62, %v66_v8  ;;  %v38_v27 = vld [vmem:[%s5240_s4 + $0x50] sm:$0xff]  ;;  %v541_v62 = vmul.f32 %v3143_v58, %v65_v33  ;;  %v3731_v58 = vld [vmem:[%s5242_s6] ss:$0 sm:$0xff] }
 0x19c   :  { %v803_v3 = vadd.f32 %v3621_v1, %v802_v46  ;;  %v40_v8 = vld [vmem:[%s5240_s4 + $0x70] sm:$0xff] }
 0x19f   :  { %644 = vmatpush.xpose.msrb.mxu0 %v616_v16  ;;  %2699 = vmatpush.xpose.msra.mxu3 %v616_v16  ;;  %v594_v16 = vmul.f32 %v3530_v7, %v86_v31  ;;  %v84_v7 = vld [vmem:[%s5241_s5 + $0x38] sm:$0xff] }
 0x1a1   :  { %v610_v5 = vadd.f32 %v594_v16, %v546_v21  ;;  %v34_v21 = vld [vmem:[%s5240_s4 + $0x10] sm:$0xff] }
 0x1a3   :  { %645 = vmatpush.xpose.msrb.mxu0 %v615_v12  ;;  %2700 = vmatpush.xpose.msra.mxu3 %v615_v12  ;;  %v805_v44 = vpop.f32.mrf.mxu1  ;;  %v593_v12 = vmul.f32 %v3533_v22, %v85_v35  ;;  %v83_v22 = vld [vmem:[%s5241_s5 + $0x28] sm:$0xff] }
 0x1a5   :  { %v609_v9 = vadd.f32 %v593_v12, %v545_v36 }
 0x1a6   :  { %838 = vxpose.xlu2.b32.start [1/16] (narrow) %v791_v14, 8  ;;  %v592_v14 = vmul.f32 %v3512_v55, %v84_v7  ;;  %v82_v55 = vld [vmem:[%s5241_s5 + $0x18] sm:$0xff] }
 0x1a7   :  { %646 = vmatpush.xpose.msrb.mxu0 %v614_v39  ;;  %2701 = vmatpush.xpose.msra.mxu3 %v614_v39  ;;  %v591_v39 = vmul.f32 %v3500_v2, %v83_v22  ;;  %v590_v2 = vmul.f32 %v3482_v29, %v82_v55  ;;  %v509_v29 = vmul.f32 %v3459_v24, %v49_v38 }
 0x1a8   :  { %v608_v19 = vadd.f32 %v592_v14, %v544_v25  ;;  %v466_v24 = vmul.f32 %v3180_v6, %v38_v27  ;;  %v56_v25 = vld [vmem:[%s5240_s4 + $0x78] sm:$0xff]  ;;  %v5390_v27 = vld [vmem:[#allocation37_spill] sm:$0xff] }
 0x1a9   :  { %v607_v60 = vadd.f32 %v591_v39, %v543_v4  ;;  %v606_v31 = vadd.f32 %v590_v2, %v542_v59  ;;  %v2769_v39 = vld [vmem:[%s5238_s2 + $0x10] sm:$0xff]  ;;  %v516_v38 = vmul.f32 %v3528_v34, %v56_v25  ;;  %v52_v34 = vld [vmem:[%s5240_s4 + $0x38] sm:$0xff]  ;;  %v5401_v25 = vld [vmem:[#allocation21_spill] sm:$0xff] }
 0x1ab   :  { %647 = vmatpush.xpose.msrb.mxu0 %v613_v54  ;;  %2702 = vmatpush.xpose.msra.mxu3 %v613_v54  ;;  %v808_v11 = vpop.f32.mrf.mxu1  ;;  %v54_v54 = vld [vmem:[%s5240_s4 + $0x58] sm:$0xff] }
 0x1ac   :  { %v514_v46 = vmul.f32 %v3516_v40, %v54_v54  ;;  %v809_v13 = vadd.f32 %v3621_v1, %v808_v11  ;;  %v2770_v11 = vld [vmem:[%s5238_s2] sm:$0xff] }
 0x1ae   :  { %839 = vxpose.xlu2.b32.cont [2/16] (narrow) %v794_v17, 8  ;;  %v33_v17 = vld [vmem:[%s5240_s4] sm:$0xff]  ;;  %v530_v40 = vadd.f32 %v514_v46, %v466_v24  ;;  %v512_v46 = vmul.f32 %v5390_v27, %v52_v34  ;;  %v2773_v27 = vld [vmem:[%s5238_s2 + $0x28] sm:$0xff] }
 0x1af   :  { %648 = vmatpush.xpose.msrb.mxu0 %v612_v53  ;;  %2703 = vmatpush.xpose.msra.mxu3 %v612_v53  ;;  %v589_v53 = vmul.f32 %v3484_v32, %v81_v43  ;;  %v461_v20 = vmul.f32 %v3095_v41, %v33_v17  ;;  %v55_v32 = vld [vmem:[%s5240_s4 + $0x68] sm:$0xff]  ;;  %v5392_v24 = vld [vmem:[#allocation17_spill] sm:$0xff] }
 0x1b0   :  { %v515_v7 = vmul.f32 %v3514_v26, %v55_v32  ;;  %v629_v36 = vmul.f32 %v3731_v58, %v530_v40  ;;  %v51_v26 = vld [vmem:[%s5240_s4 + $0x28] sm:$0xff]  ;;  %v43_v34 = vld [vmem:[%s5240_s4 + $0xa0] sm:$0xff] }
 0x1b1   :  { %v525_v16 = vadd.f32 %v509_v29, %v461_v20  ;;  %v605_v35 = vadd.f32 %v589_v53, %v541_v62  ;;  %v511_v55 = vmul.f32 %v3467_v37, %v51_v26  ;;  %v5388_v29 = vld [vmem:[#allocation5_spill] sm:$0xff]  ;;  %v5395_v40 = vld [vmem:[#allocation18_spill] sm:$0xff] }
 0x1b2   :  { %v5400_v26 = vld [vmem:[#allocation41_spill] sm:$0xff] }
 0x1b3   :  { %649 = vmatpush.xpose.msrb.mxu0 %v611_v45  ;;  %2704 = vmatpush.xpose.msra.mxu3 %v611_v45  ;;  %v811_v28 = vpop.f32.mrf.mxu1  ;;  %v50_v45 = vld [vmem:[%s5240_s4 + $0x18] sm:$0xff]  ;;  %v624_v12 = vmul.f32 %v3731_v58, %v525_v16 }
 0x1b4   :  { %v510_v23 = vmul.f32 %v3474_v51, %v50_v45  ;;  %v462_v51 = vmul.f32 %v3113_v48, %v34_v21  ;;  %v5394_v45 = vld [vmem:[#allocation12_spill] sm:$0xff] }
 0x1b6   :  { %840 = vxpose.xlu2.b32.cont [3/16] (narrow) %v797_v30, 8  ;;  %v806_v30 = vadd.f32 %v3621_v1, %v805_v44  ;;  %v2767_v44 = vld [vmem:[%s5238_s2 + $0x30] sm:$0xff]  ;;  %v526_v14 = vadd.f32 %v510_v23, %v462_v51 }
 0x1b7   :  { %650 = vmatpush.xpose.msrb.mxu0 %v610_v5  ;;  %2705 = vmatpush.xpose.msra.mxu3 %v610_v5  ;;  %v39_v5 = vld [vmem:[%s5240_s4 + $0x60] sm:$0xff]  ;;  %v5396_v23 = vld [vmem:[#allocation19_spill] sm:$0xff] }
 0x1b8   :  { %v467_v18 = vmul.f32 %v3186_v10, %v39_v5  ;;  %v625_v4 = vmul.f32 %v3731_v58, %v526_v14 }
 0x1ba   :  { %v531_v22 = vadd.f32 %v515_v7, %v467_v18  ;;  %v5397_v7 = vld [vmem:[#allocation20_spill] sm:$0xff] }
 0x1bb   :  { %651 = vmatpush.xpose.msrb.mxu0 %v609_v9  ;;  %2706 = vmatpush.xpose.msra.mxu3 %v609_v9  ;;  %v2768_v9 = vld [vmem:[%s5238_s2 + $0x20] sm:$0xff]  ;;  %v5399_v18 = vld [vmem:[#allocation36_spill] sm:$0xff] }
 0x1bc   :  { %v630_v2 = vmul.f32 %v3731_v58, %v531_v22 }
 0x1be   :  { %841 = vxpose.xlu2.b32.cont [4/16] (narrow) %v800_v56, 8  ;;  %v814_v56 = vpop.f32.mrf.mxu1 }
 0x1bf   :  { %652 = vmatpush.xpose.msrb.mxu0 %v608_v19  ;;  %2707 = vmatpush.xpose.msra.mxu3 %v608_v19  ;;  %v35_v19 = vld [vmem:[%s5240_s4 + $0x20] sm:$0xff]  ;;  %v815_v5 = vadd.f32 %v3621_v1, %v814_v56 }
 0x1c0   :  { %v463_v37 = vmul.f32 %v3124_v52, %v35_v19 }
 0x1c2   :  { %v527_v54 = vadd.f32 %v511_v55, %v463_v37  ;;  %v5403_v55 = vld [vmem:[#allocation13_spill] sm:$0xff]  ;;  %v59_v37 = vld [vmem:[%s5240_s4 + $0xa8] sm:$0xff] }
 0x1c3   :  { %653 = vmatpush.xpose.msrb.mxu0 %v607_v60  ;;  %2708 = vmatpush.xpose.msra.mxu3 %v607_v60  ;;  %v468_v60 = vmul.f32 %v3202_v15, %v40_v8  ;;  %v5404_v8 = vld [vmem:[#allocation22_spill] sm:$0xff] }
 0x1c4   :  { %v1479_v17 = vpop.f32.mrf.mxu2  ;;  %v626_v53 = vmul.f32 %v3731_v58, %v527_v54  ;;  %v5407_v54 = vld [vmem:[#allocation25_spill] sm:$0xff] }
 0x1c5   :  { %v532_v43 = vadd.f32 %v516_v38, %v468_v60  ;;  %v3798_v33 = vadd.f32 %v5388_v29, %v1479_v17 }
 0x1c6   :  { %842 = vxpose.xlu2.b32.cont [5/16] (narrow) %v803_v3, 8  ;;  %v812_v3 = vadd.f32 %v3621_v1, %v811_v28  ;;  %v817_v59 = vpop.f32.mrf.mxu1  ;;  %v5393_v28 = vld [vmem:[#allocation10_spill] sm:$0xff] }
 0x1c7   :  { %654 = vmatpush.xpose.msrb.mxu0 %v606_v31  ;;  %2709 = vmatpush.xpose.msra.mxu3 %v606_v31  ;;  %5389 = vst [vmem:[#allocation5_spill] sm:$0xff] %v3798_v33  ;;  %v41_v31 = vld [vmem:[%s5240_s4 + $0x80] sm:$0xff]  ;;  %v631_v62 = vmul.f32 %v3731_v58, %v532_v43  ;;  %v818_v60 = vadd.f32 %v3621_v1, %v817_v59 }
 0x1c8   :  { %1708 = vrot.lane.b32.xlu0 %v3798_v33, %s2869_s26 }
 0x1cb   :  { %655 = vmatpush.xpose.msrb.mxu0 %v605_v35  ;;  %2710 = vmatpush.xpose.msra.mxu3 %v605_v35  ;;  %v469_v35 = vmul.f32 %v5394_v45, %v41_v31  ;;  %v2774_v31 = vld [vmem:[%s5238_s2 + $0x18] sm:$0xff] }
 0x1ce   :  { %843 = vxpose.xlu2.b32.cont [6/16] (narrow) %v806_v30, 8  ;;  %656 = vmatmul.f32.vlgmr.msrb.gmra.mxu0 %v624_v12  ;;  %v53_v30 = vld [vmem:[%s5240_s4 + $0x48] sm:$0xff]  ;;  %v58_v12 = vld [vmem:[%s5240_s4 + $0x98] sm:$0xff] }
 0x1cf   :  { %708 = vmatpush.msra.mxu0 %v3274_v42  ;;  %1548 = vmatpush.msrb.mxu3 %v2767_v44  ;;  %v513_v14 = vmul.f32 %v5399_v18, %v53_v30  ;;  %v518_v22 = vmul.f32 %v5400_v26, %v58_v12  ;;  %v5413_v30 = vld [vmem:[#allocation28_spill] sm:$0xff]  ;;  %v61_v12 = vld [vmem:[%s5240_s4 + $0xc8] sm:$0xff] }
 0x1d0   :  { %671 = vmatmul.f32.vlgmr.msra.gmra.mxu3 %v629_v36  ;;  %v3835_v36 = vld [vmem:[%s5239_s3] ss:$0 sm:$0xff]  ;;  %v5415_v18 = vld [vmem:[#allocation16_spill] sm:$0xff] }
 0x1d1   :  { %709 = vmatpush.msra.mxu0 %v3289_v47  ;;  %1549 = vmatpush.msrb.mxu3 %v2768_v9  ;;  %v62_v26 = vld [vmem:[%s5240_s4 + $0xd8] sm:$0xff] }
 0x1d3   :  { %710 = vmatpush.msra.mxu0 %v3298_v49  ;;  %1550 = vmatpush.msrb.mxu3 %v2769_v39  ;;  %v5402_v39 = vld [vmem:[#allocation11_spill] sm:$0xff] }
 0x1d5   :  { %711 = vmatpush.msra.mxu0 %v3305_v50  ;;  %1551 = vmatpush.msrb.mxu3 %v2770_v11  ;;  %v5405_v11 = vld [vmem:[#allocation26_spill] sm:$0xff] }
 0x1d6   :  { %844 = vxpose.xlu2.b32.cont [7/16] (narrow) %v809_v13, 8  ;;  %659 = vmatmul.f32.gmra.mxu0 %v625_v4  ;;  %v820_v13 = vpop.f32.mrf.mxu1 }
 0x1d7   :  { %712 = vmatpush.msra.mxu0 %v3315_v57  ;;  %1972 = vmatpush.msra.mxu3 %v3274_v42  ;;  %v57_v42 = vld [vmem:[%s5240_s4 + $0x88] sm:$0xff] }
 0x1d8   :  { %674 = vmatmul.f32.gmra.mxu3 %v630_v2  ;;  %v5406_v2 = vld [vmem:[#allocation24_spill] sm:$0xff] }
 0x1d9   :  { %713 = vmatpush.msra.mxu0 %v3327_v61  ;;  %1973 = vmatpush.msra.mxu3 %v3289_v47  ;;  %v36_v47 = vld [vmem:[%s5240_s4 + $0x30] sm:$0xff] }
 0x1da   :  { %v464_v16 = vmul.f32 %v5393_v28, %v36_v47  ;;  %v1482_v44 = vpop.f32.mrf.mxu2  ;;  %v5409_v47 = vld [vmem:[#allocation14_spill] sm:$0xff] }
 0x1db   :  { %714 = vmatpush.msra.mxu0 %v3335_v63  ;;  %1974 = vmatpush.msra.mxu3 %v3298_v49  ;;  %v5391_v49 = vld [vmem:[#allocation42_spill] sm:$0xff]  ;;  %v3838_v51 = vadd.f32 %v3835_v36, %v1482_v44  ;;  %v471_v59 = vmul.f32 %v5409_v47, %v43_v34 }
 0x1dc   :  { %v517_v20 = vmul.f32 %v5391_v49, %v57_v42  ;;  %v528_v32 = vadd.f32 %v512_v46, %v464_v16  ;;  %v5408_v42 = vld [vmem:[#allocation44_spill] sm:$0xff]  ;;  %v5410_v46 = vld [vmem:[#allocation27_spill] sm:$0xff]  ;;  %v5414_v44 = vld [vmem:[#allocation46_spill] sm:$0xff] }
 0x1dd   :  { %715 = vmatpush.msra.mxu0 %v3342_v0  ;;  %1975 = vmatpush.msra.mxu3 %v3305_v50  ;;  %v2622_v50 = vld [vmem:[%s5236_s0 + $0xf8] sm:$0xff]  ;;  %5398 = vst [vmem:[#allocation37_spill] sm:$0xff] %v3838_v51  ;;  %v5411_v16 = vld [vmem:[#allocation47_spill] sm:$0xff] }
 0x1de   :  { %845 = vxpose.xlu2.b32.cont [8/16] (narrow) %v812_v3, 8  ;;  %662 = vmatmul.f32.gmra.mxu0 %v626_v53  ;;  %v533_v21 = vadd.f32 %v517_v20, %v469_v35  ;;  %v627_v9 = vmul.f32 %v3731_v58, %v528_v32  ;;  %v519_v3 = vmul.f32 %v5408_v42, %v59_v37  ;;  %v823_v29 = vpop.f32.mrf.mxu1  ;;  %v60_v49 = vld [vmem:[%s5240_s4 + $0xb8] sm:$0xff] }
 0x1df   :  { %716 = vmatpush.msra.mxu0 %v5392_v24  ;;  %2654 = vmatmul.msk.f32.gmra.mxu2 %vm164_vm0, %v2622_v50  ;;  %v821_v20 = vadd.f32 %v3621_v1, %v820_v13  ;;  %v520_v35 = vmul.f32 %v5411_v16, %v60_v49  ;;  %v5412_v50 = vld [vmem:[#allocation15_spill] sm:$0xff]  ;;  %v5417_v13 = vld [vmem:[#allocation29_spill] sm:$0xff] }
 0x1e0   :  { %677 = vmatmul.f32.gmra.mxu3 %v631_v62  ;;  %v632_v56 = vmul.f32 %v3731_v58, %v533_v21  ;;  %1710 = vrot.lane.b32.xlu1 %v3838_v51, %s2869_s26  ;;  %v535_v53 = vadd.f32 %v519_v3, %v471_v59  ;;  %v2775_v62 = vld [vmem:[%s5238_s2 + $0x8] sm:$0xff]  ;;  %v5422_v3 = vld [vmem:[#allocation33_spill] sm:$0xff]  ;;  %v64_v59 = vld [vmem:[%s5240_s4 + $0xf8] sm:$0xff] }
 0x1e1   :  { %717 = vmatpush.msra.mxu0 %v5395_v40  ;;  %1976 = vmatpush.msra.mxu3 %v3315_v57  ;;  %v37_v57 = vld [vmem:[%s5240_s4 + $0x40] sm:$0xff] }
 0x1e2   :  { %v465_v19 = vmul.f32 %v5402_v39, %v37_v57 }
 0x1e3   :  { %718 = vmatpush.msra.mxu0 %v5396_v23  ;;  %1977 = vmatpush.msra.mxu3 %v3327_v61  ;;  %v42_v61 = vld [vmem:[%s5240_s4 + $0x90] sm:$0xff] }
 0x1e4   :  { %v470_v4 = vmul.f32 %v5403_v55, %v42_v61 }
 0x1e5   :  { %719 = vmatpush.msra.mxu0 %v5397_v7  ;;  %1978 = vmatpush.msra.mxu3 %v3335_v63  ;;  %v529_v63 = vadd.f32 %v513_v14, %v465_v19  ;;  %v522_v19 = vmul.f32 %v5417_v13, %v62_v26 }
 0x1e6   :  { %846 = vxpose.xlu2.b32.cont [9/16] (narrow) %v815_v5, 8  ;;  %665 = vmatmul.f32.gmra.mxu0 %v627_v9  ;;  %v534_v38 = vadd.f32 %v518_v22, %v470_v4  ;;  %v824_v5 = vadd.f32 %v3621_v1, %v823_v29  ;;  %v5416_v9 = vld [vmem:[#allocation30_spill] sm:$0xff] }
 0x1e7   :  { %720 = vmatpush.msra.mxu0 %v5401_v25  ;;  %1923 = vmatmul.f32.vlgmr.msrb.gmra.mxu2 %v5405_v11  ;;  %v628_v43 = vmul.f32 %v3731_v58, %v529_v63  ;;  %v5418_v4 = vld [vmem:[#allocation6_spill] sm:$0xff]  ;;  %v5419_v63 = vld [vmem:[#allocation31_spill] sm:$0xff] }
 0x1e8   :  { %680 = vmatmul.f32.gmra.mxu3 %v632_v56  ;;  %v633_v17 = vmul.f32 %v3731_v58, %v534_v38 }
 0x1e9   :  { %721 = vmatpush.msra.mxu0 %v5404_v8  ;;  %1979 = vmatpush.msra.mxu3 %v3342_v0  ;;  %v2772_v0 = vld [vmem:[%s5238_s2 + $0x38] sm:$0xff]  ;;  %s2876_s2 = smov 8  }
 0x1eb   :  { %722 = vmatpush.msra.mxu0 %v5406_v2  ;;  %1980 = vmatpush.msra.mxu3 %v5392_v24  ;;  %v44_v24 = vld [vmem:[%s5240_s4 + $0xb0] sm:$0xff] }
 0x1ec   :  { %v472_v32 = vmul.f32 %v5412_v50, %v44_v24  ;;  %v5425_v24 = vld [vmem:[#allocation35_spill] sm:$0xff] }
 0x1ed   :  { %723 = vmatpush.msra.mxu0 %v5407_v54  ;;  %1981 = vmatpush.msra.mxu3 %v5395_v40  ;;  %v634_v40 = vmul.f32 %v3731_v58, %v535_v53  ;;  %v5423_v53 = vld [vmem:[#allocation34_spill] sm:$0xff] }
 0x1ee   :  { %847 = vxpose.xlu2.b32.cont [10/16] (narrow) %v818_v60, 8  ;;  %668 = vmatmul.f32.gmra.mxu0 %v628_v43  ;;  %v536_v21 = vadd.f32 %v520_v35, %v472_v32  ;;  %v47_v60 = vld [vmem:[%s5240_s4 + $0xe0] sm:$0xff]  ;;  %v5426_v32 = vld [vmem:[#allocation38_spill] sm:$0xff] }
 0x1ef   :  { %1613 = vmatpush.msrb.mxu0 %v2772_v0  ;;  %1926 = vmatmul.f32.gmra.mxu2 %v5410_v46  ;;  %v5421_v0 = vld [vmem:[#allocation7_spill] sm:$0xff] }
 0x1f0   :  { %683 = vmatmul.f32.gmra.mxu3 %v633_v17  ;;  %v635_v57 = vmul.f32 %v3731_v58, %v536_v21  ;;  %v475_v42 = vmul.f32 %v5421_v0, %v47_v60  ;;  %v5428_v21 = vld [vmem:[#allocation40_spill] sm:$0xff] }
 0x1f1   :  { %1614 = vmatpush.msrb.mxu0 %v2773_v27  ;;  %1982 = vmatpush.msra.mxu3 %v5396_v23  ;;  %v826_v23 = vpop.f32.mrf.mxu1  ;;  %v48_v27 = vld [vmem:[%s5240_s4 + $0xf0] sm:$0xff] }
 0x1f2   :  { %v827_v22 = vadd.f32 %v3621_v1, %v826_v23  ;;  %v5429_v23 = vld [vmem:[#allocation43_spill] sm:$0xff] }
 0x1f3   :  { %1615 = vmatpush.msrb.mxu0 %v2774_v31  ;;  %1983 = vmatpush.msra.mxu3 %v5397_v7  ;;  %v521_v7 = vmul.f32 %v5414_v44, %v61_v12  ;;  %v524_v31 = vmul.f32 %v5423_v53, %v64_v59 }
 0x1f5   :  { %1616 = vmatpush.msrb.mxu0 %v2775_v62  ;;  %1984 = vmatpush.msra.mxu3 %v5401_v25  ;;  %v46_v25 = vld [vmem:[%s5240_s4 + $0xd0] sm:$0xff] }
 0x1f6   :  { %848 = vxpose.xlu2.b32.cont [11/16] (narrow) %v821_v20, 8  ;;  %724 = vmatmul.f32.vlgmr.msra.gmra.mxu0 %v3095_v41  ;;  %v45_v41 = vld [vmem:[%s5240_s4 + $0xc0] sm:$0xff]  ;;  %v5424_v20 = vld [vmem:[#allocation8_spill] sm:$0xff] }
 0x1f7   :  { %1929 = vmatmul.f32.gmra.mxu2 %v5413_v30  ;;  %1985 = vmatpush.msra.mxu3 %v5404_v8  ;;  %v473_v14 = vmul.f32 %v5415_v18, %v45_v41  ;;  %v474_v8 = vmul.f32 %v5418_v4, %v46_v25  ;;  %v476_v62 = vmul.f32 %v5424_v20, %v48_v27  ;;  %v5315_v25 = vmov 6  }
 0x1f8   :  { %686 = vmatmul.f32.gmra.mxu3 %v634_v40 }
 0x1f9   :  { %1986 = vmatpush.msra.mxu3 %v5406_v2  ;;  %v537_v61 = vadd.f32 %v521_v7, %v473_v14  ;;  %v829_v56 = vpop.f32.mrf.mxu1  ;;  %v538_v38 = vadd.f32 %v522_v19, %v474_v8  ;;  %v63_v2 = vld [vmem:[%s5240_s4 + $0xe8] sm:$0xff]  ;;  %v540_v16 = vadd.f32 %v524_v31, %v476_v62  ;;  %v2625_v7 = vld [vmem:[%s5237_s1 + $0x90] sm:$0xff]  ;;  %v2630_v8 = vld [vmem:[%s5237_s1 + $0xb8] sm:$0xff] }
 0x1fa   :  { %v830_v37 = vadd.f32 %v3621_v1, %v829_v56  ;;  %v2628_v56 = vld [vmem:[%s5237_s1 + $0xa8] sm:$0xff]  ;;  %v2629_v19 = vld [vmem:[%s5237_s1 + $0xb0] sm:$0xff]  ;;  %v2635_v31 = vld [vmem:[%s5237_s1 + $0xe0] sm:$0xff] }
 0x1fb   :  { %1987 = vmatpush.msra.mxu3 %v5407_v54  ;;  %v5420_v54 = vld [vmem:[#allocation32_spill] sm:$0xff]  ;;  %v639_v40 = vmul.f32 %v3731_v58, %v540_v16  ;;  %v2636_v16 = vld [vmem:[%s5237_s1 + $0xe8] sm:$0xff] }
 0x1fc   :  { %v523_v34 = vmul.f32 %v5420_v54, %v63_v2 }
 0x1fe   :  { %849 = vxpose.xlu2.b32.cont [12/16] (narrow) %v824_v5, 8  ;;  %727 = vmatmul.f32.gmra.mxu0 %v3113_v48  ;;  %v636_v48 = vmul.f32 %v3731_v58, %v537_v61  ;;  %v539_v17 = vadd.f32 %v523_v34, %v475_v42  ;;  %v2627_v61 = vld [vmem:[%s5237_s1 + $0xa0] sm:$0xff]  ;;  %v4070_v42 = vpop.permute.xlu2 %1682 }
 0x1ff   :  { %1932 = vmatmul.f32.gmra.mxu2 %v5416_v9  ;;  %5437 = vst [vmem:[#allocation19_spill] sm:$0xff] %v4070_v42 }
 0x200   :  { %689 = vmatmul.f32.gmra.mxu3 %v635_v57 }
 0x201   :  { %v832_v43 = vpop.f32.mrf.mxu1 }
 0x202   :  { %v833_v29 = vadd.f32 %v3621_v1, %v832_v43 }
 0x206   :  { %850 = vxpose.xlu2.b32.cont [13/16] (narrow) %v827_v22, 8  ;;  %730 = vmatmul.f32.gmra.mxu0 %v3124_v52  ;;  %v637_v52 = vmul.f32 %v3731_v58, %v538_v38  ;;  %v5317_v38 = vmov 7   ;;  %v4082_v27 = vpop.permute.xlu2 %1688 }
 0x207   :  { %1935 = vmatmul.f32.gmra.mxu2 %v5419_v63  ;;  %5439 = vst [vmem:[#allocation36_spill] sm:$0xff] %v4082_v27 }
 0x208   :  { %692 = vmatmul.f32.gmra.mxu3 %v636_v48 }
 0x209   :  { %v835_v49 = vpop.f32.mrf.mxu1 }
 0x20a   :  { %v836_v35 = vadd.f32 %v3621_v1, %v835_v49 }
 0x20e   :  { %851 = vxpose.xlu2.b32.cont [14/16] (narrow) %v830_v37, 8  ;;  %733 = vmatmul.f32.gmra.mxu0 %v5393_v28  ;;  %v638_v28 = vmul.f32 %v3731_v58, %v539_v17  ;;  %v5430_v58 = vld [vmem:[#allocation45_spill] sm:$0xff] }
 0x20f   :  { %1938 = vmatmul.f32.gmra.mxu2 %v5422_v3  ;;  %v2631_v37 = vld [vmem:[%s5237_s1 + $0xc0] sm:$0xff] }
 0x210   :  { %695 = vmatmul.f32.gmra.mxu3 %v637_v52  ;;  %v2632_v52 = vld [vmem:[%s5237_s1 + $0xc8] sm:$0xff] }
 0x216   :  { %852 = vxpose.xlu2.b32.cont [15/16] (narrow) %v833_v29, 8  ;;  %736 = vmatmul.f32.gmra.mxu0 %v5402_v39  ;;  %v5427_v39 = vld [vmem:[#allocation39_spill] sm:$0xff]  ;;  %v2634_v29 = vld [vmem:[%s5237_s1 + $0xd8] sm:$0xff] }
 0x217   :  { %1941 = vmatmul.f32.gmra.mxu2 %v5425_v24 }
 0x218   :  { %698 = vmatmul.f32.gmra.mxu3 %v638_v28  ;;  %v4092_v28 = vpop.permute.xlu2 %1694 }
 0x219   :  { %5440 = vst [vmem:[#allocation41_spill] sm:$0xff] %v4092_v28 }
 0x21e   :  { %853 = vxpose.xlu2.b32.end [16/16] (narrow) %v836_v35, 8  ;;  %739 = vmatmul.f32.gmra.mxu0 %v3180_v6  ;;  %v5431_v6 = vld [vmem:[#allocation48_spill] sm:$0xff]  ;;  %v4106_v35 = vpop.permute.xlu1 %1686 }
 0x21f   :  { %1944 = vmatmul.f32.gmra.mxu2 %v5426_v32  ;;  %5443 = vst [vmem:[#allocation13_spill] sm:$0xff] %v4106_v35 }
 0x220   :  { %701 = vmatmul.f32.gmra.mxu3 %v639_v40  ;;  %v4109_v40 = vpop.permute.xlu0 %1684 }
 0x221   :  { %5444 = vst [vmem:[#allocation22_spill] sm:$0xff] %v4109_v40 }
 0x226   :  { %742 = vmatmul.f32.gmra.mxu0 %v3186_v10 }
 0x227   :  { %1947 = vmatmul.f32.gmra.mxu2 %v5427_v39 }
 0x22e   :  { %745 = vmatmul.f32.gmra.mxu0 %v3202_v15  ;;  %v5313_v15 = vmov 5  }
 0x22f   :  { %1950 = vmatmul.f32.gmra.mxu2 %v5428_v21  ;;  %2720 = vset.pattern.permute.xlu1 %v5313_v15  ;;  %v5465_v21 = vmov 4  }
 0x236   :  { %748 = vmatmul.f32.gmra.mxu0 %v5394_v45  ;;  %v5322_v45 = vmov 4  }
 0x237   :  { %1953 = vmatmul.f32.gmra.mxu2 %v5429_v23  ;;  %2719 = vset.pattern.permute.xlu0 %v5322_v45  ;;  %v5462_v23 = vmov 6  }
 0x23e   :  { %751 = vmatmul.f32.gmra.mxu0 %v5403_v55  ;;  %v2623_v55 = vld [vmem:[%s5237_s1 + $0x80] sm:$0xff] }
 0x23f   :  { %1956 = vmatmul.f32.gmra.mxu2 %v5430_v58  ;;  %2655 = vmatmul.msk.f32.vlgmr.msrb.gmra.mxu3 %vm164_vm0, %v2623_v55 }
 0x246   :  { %754 = vmatmul.f32.gmra.mxu0 %v5409_v47 }
 0x247   :  { %1959 = vmatmul.f32.gmra.mxu2 %v5431_v6 }
 0x24b   :  { %v3964_v12 = vpop.f32.mrf.mxu0 }
 0x24c   :  { %5432 = vst [vmem:[#allocation42_spill] sm:$0xff] %v3964_v12 }
 0x24e   :  { %757 = vmatmul.f32.gmra.mxu0 %v5412_v50  ;;  %v2624_v50 = vld [vmem:[%s5237_s1 + $0x88] sm:$0xff] }
 0x24f   :  { %1962 = vmatmul.f32.gmra.mxu2 %v3798_v33  ;;  %2656 = vmatmul.msk.f32.gmra.mxu3 %vm164_vm0, %v2624_v50 }
 0x253   :  { %v3968_v10 = vpop.f32.mrf.mxu0  ;;  %v4098_v62 = vpop.f32.mrf.mxu3 }
 0x254   :  { %5442 = vst [vmem:[#allocation11_spill] sm:$0xff] %v4098_v62 }
 0x256   :  { %760 = vmatmul.f32.gmra.mxu0 %v5415_v18  ;;  %v2626_v18 = vld [vmem:[%s5237_s1 + $0x98] sm:$0xff] }
 0x257   :  { %1965 = vmatmul.f32.gmra.mxu2 %v3838_v51  ;;  %2657 = vmatmul.msk.f32.gmra.mxu3 %vm164_vm0, %v2625_v7 }
 0x25b   :  { %v3978_v47 = vpop.f32.mrf.mxu0 }
 0x25e   :  { %763 = vmatmul.f32.gmra.mxu0 %v5418_v4 }
 0x25f   :  { %2658 = vmatmul.msk.f32.gmra.mxu3 %vm164_vm0, %v2626_v18 }
 0x262   :  { %v1485_v41 = vpop.f32.mrf.mxu2 }
 0x263   :  { %v3985_v5 = vpop.f32.mrf.mxu0  ;;  %v3988_v44 = vadd.f32 %v3835_v36, %v1485_v41 }
 0x264   :  { %5433 = vst [vmem:[#allocation17_spill] sm:$0xff] %v3985_v5 }
 0x265   :  { %5434 = vst [vmem:[#allocation10_spill] sm:$0xff] %v3988_v44  ;;  %1968 = vmatmul.f32.gmra.mxu2 %v3988_v44 }
 0x266   :  { %766 = vmatmul.f32.gmra.mxu0 %v5421_v0  ;;  %v2633_v0 = vld [vmem:[%s5237_s1 + $0xd0] sm:$0xff] }
 0x267   :  { %2659 = vmatmul.msk.f32.gmra.mxu3 %vm164_vm0, %v2627_v61 }
 0x26b   :  { %v3996_v57 = vpop.f32.mrf.mxu0 }
 0x26e   :  { %769 = vmatmul.f32.gmra.mxu0 %v5424_v20 }
 0x26f   :  { %2660 = vmatmul.msk.f32.gmra.mxu3 %vm164_vm0, %v2628_v56 }
 0x273   :  { %v725_v36 = vpop.f32.mrf.mxu0 }
 0x274   :  { %v4004_v14 = vadd.f32 %v3621_v1, %v725_v36  ;;  %v4126_v36 = vpop.f32.mrf.mxu3 }
 0x276   :  { %2671 = vmatmul.msk.f32.vlgmr.msrb.gmra.mxu0 %vm164_vm0, %v2623_v55  ;;  %1017 = vperm.xlu1 %2720, %v4004_v14  }
 0x277   :  { %889 = vperm.xlu0 %2719, %v4004_v14   ;;  %2661 = vmatmul.msk.f32.gmra.mxu3 %vm164_vm0, %v2629_v19 }
 0x27b   :  { %v728_v26 = vpop.f32.mrf.mxu0 }
 0x27c   :  { %v4014_v22 = vadd.f32 %v3621_v1, %v728_v26 }
 0x27e   :  { %2672 = vmatmul.msk.f32.gmra.mxu0 %vm164_vm0, %v2624_v50  ;;  %2721 = vset.pattern.permute.xlu1 %v5322_v45  ;;  %v4113_v50 = vpop.permute.xlu2 %1700 }
 0x27f   :  { %894 = vperm.xlu1 %2721, %v4014_v22   ;;  %2662 = vmatmul.msk.f32.gmra.mxu3 %vm164_vm0, %v2630_v8  ;;  %5445 = vst [vmem:[#allocation24_spill] sm:$0xff] %v4113_v50 }
 0x280   :  { %2729 = vset.pattern.permute.xlu2 %v5315_v25 }
 0x283   :  { %v731_v13 = vpop.f32.mrf.mxu0 }
 0x284   :  { %v732_v60 = vadd.f32 %v3621_v1, %v731_v13 }
 0x286   :  { %2673 = vmatmul.msk.f32.gmra.mxu0 %vm164_vm0, %v2625_v7  ;;  %v2637_v7 = vld [vmem:[%s5237_s1 + $0xf0] sm:$0xff]  ;;  %v4136_v13 = vpop.permute.xlu2 %1706 }
 0x287   :  { %1712 = vrot.lane.b32.xlu2 %v3988_v44, %s2869_s26  ;;  %2722 = vset.pattern.permute.xlu1 %v5315_v25  ;;  %5449 = vst [vmem:[#allocation47_spill] sm:$0xff] %v4136_v13 }
 0x288   :  { %1135 = vperm.xlu1 %2722, %v4014_v22   ;;  %2663 = vmatmul.msk.f32.gmra.mxu3 %vm164_vm0, %v2631_v37 }
 0x28b   :  { %v734_v48 = vpop.f32.mrf.mxu0 }
 0x28c   :  { %v4034_v4 = vadd.f32 %v3621_v1, %v734_v48 }
 0x28e   :  { %5435 = vst [vmem:[#allocation12_spill] sm:$0xff] %v4034_v4  ;;  %2674 = vmatmul.msk.f32.gmra.mxu0 %vm164_vm0, %v2626_v18  ;;  %904 = vperm.xlu0 %2719, %v4034_v4   ;;  %v4124_v18 = vpop.permute.xlu1 %1692 }
 0x28f   :  { %1143 = vperm.xlu2 %2729, %v4034_v4   ;;  %5446 = vst [vmem:[#allocation25_spill] sm:$0xff] %v4124_v18 }
 0x290   :  { %2723 = vset.pattern.permute.xlu1 %v5317_v38  ;;  %2664 = vmatmul.msk.f32.gmra.mxu3 %vm164_vm0, %v2632_v52 }
 0x291   :  { %1249 = vperm.xlu1 %2723, %v4014_v22  }
 0x293   :  { %v737_v2 = vpop.f32.mrf.mxu0 }
 0x294   :  { %v4116_v41 = vadd.f32 %v3621_v1, %v737_v2 }
 0x296   :  { %2675 = vmatmul.msk.f32.gmra.mxu0 %vm164_vm0, %v2627_v61  ;;  %v4129_v61 = vpop.permute.xlu0 %1690 }
 0x297   :  { %2750 = vset.pattern.permute.xlu2 %v5317_v38  ;;  %5447 = vst [vmem:[#allocation44_spill] sm:$0xff] %v4129_v61 }
 0x298   :  { %2665 = vmatmul.msk.f32.gmra.mxu3 %vm164_vm0, %v2633_v0 }
 0x299   :  { %2724 = vset.pattern.permute.xlu1 %v5322_v45 }
 0x29a   :  { %899 = vperm.xlu1 %2724, %v732_v60  }
 0x29b   :  { %v740_v54 = vpop.f32.mrf.mxu0 }
 0x29c   :  { %v4054_v34 = vadd.f32 %v3621_v1, %v740_v54 }
 0x29e   :  { %5436 = vst [vmem:[#allocation18_spill] sm:$0xff] %v4054_v34  ;;  %2676 = vmatmul.msk.f32.gmra.mxu0 %vm164_vm0, %v2628_v56  ;;  %914 = vperm.xlu0 %2719, %v4054_v34   ;;  %v4142_v48 = vpop.permute.xlu0 %1696 }
 0x29f   :  { %5451 = vst [vmem:[#allocation46_spill] sm:$0xff] %v4142_v48 }
 0x2a0   :  { %2666 = vmatmul.msk.f32.gmra.mxu3 %vm164_vm0, %v2634_v29 }
 0x2a2   :  { %2725 = vset.pattern.permute.xlu1 %v5313_v15 }
 0x2a3   :  { %v4063_v43 = vpop.f32.mrf.mxu0  ;;  %1025 = vperm.xlu1 %2725, %v732_v60  }
 0x2a6   :  { %2677 = vmatmul.msk.f32.gmra.mxu0 %vm164_vm0, %v2629_v19  ;;  %v4139_v19 = vpop.permute.xlu1 %1698 }
 0x2a7   :  { %5450 = vst [vmem:[#allocation15_spill] sm:$0xff] %v4139_v19 }
 0x2a8   :  { %2667 = vmatmul.msk.f32.gmra.mxu3 %vm164_vm0, %v2635_v31 }
 0x2ab   :  { %v746_v17 = vpop.f32.mrf.mxu0  ;;  %2726 = vset.pattern.permute.xlu1 %v5315_v25 }
 0x2ac   :  { %v4074_v59 = vadd.f32 %v3621_v1, %v746_v17  ;;  %1139 = vperm.xlu1 %2726, %v732_v60  }
 0x2ae   :  { %5438 = vst [vmem:[#allocation20_spill] sm:$0xff] %v4074_v59  ;;  %2678 = vmatmul.msk.f32.gmra.mxu0 %vm164_vm0, %v2630_v8  ;;  %924 = vperm.xlu0 %2719, %v4074_v59   ;;  %v4147_v2 = vpop.permute.xlu1 %1704 }
 0x2af   :  { %5452 = vst [vmem:[#allocation16_spill] sm:$0xff] %v4147_v2 }
 0x2b0   :  { %2668 = vmatmul.msk.f32.gmra.mxu3 %vm164_vm0, %v2636_v16 }
 0x2b3   :  { %v4084_v53 = vpop.f32.mrf.mxu0 }
 0x2b4   :  { %2727 = vset.pattern.permute.xlu1 %v5317_v38 }
 0x2b5   :  { %1253 = vperm.xlu1 %2727, %v732_v60   ;;  %v4150_v60 = vpop.permute.xlu0 %1702 }
 0x2b6   :  { %2679 = vmatmul.msk.f32.gmra.mxu0 %vm164_vm0, %v2631_v37  ;;  %v854_v37 = vpop.trf.xlu2  ;;  %5453 = vst [vmem:[#allocation29_spill] sm:$0xff] %v4150_v60 }
 0x2b8   :  { %2669 = vmatmul.msk.f32.gmra.mxu3 %vm164_vm0, %v2637_v7 }
 0x2bb   :  { %v752_v49 = vpop.f32.mrf.mxu0 }
 0x2bc   :  { %v4095_v20 = vadd.f32 %v3621_v1, %v752_v49 }
 0x2bd   :  { %2728 = vset.pattern.permute.xlu1 %v5313_v15  ;;  %v4161_v17 = vpop.permute.xlu0 %1708 }
 0x2be   :  { %5441 = vst [vmem:[#allocation21_spill] sm:$0xff] %v4095_v20  ;;  %2680 = vmatmul.msk.f32.gmra.mxu0 %vm164_vm0, %v2632_v52  ;;  %1029 = vperm.xlu1 %2728, %v4034_v4  }
 0x2bf   :  { %934 = vperm.xlu0 %2719, %v4095_v20   ;;  %5455 = vst [vmem:[#allocation32_spill] sm:$0xff] %v4161_v17 }
 0x2c3   :  { %v4111_v55 = vpop.f32.mrf.mxu0 }
 0x2c6   :  { %2681 = vmatmul.msk.f32.gmra.mxu0 %vm164_vm0, %v2633_v0  ;;  %2730 = vset.pattern.permute.xlu1 %v5322_v45  ;;  %v4159_v0 = vpop.permute.xlu1 %1710 }
 0x2c7   :  { %909 = vperm.xlu1 %2730, %v4116_v41   ;;  %5454 = vst [vmem:[#allocation6_spill] sm:$0xff] %v4159_v0 }
 0x2cb   :  { %v758_v26 = vpop.f32.mrf.mxu0 }
 0x2cc   :  { %v4132_v56 = vadd.f32 %v3621_v1, %v758_v26  ;;  %v4171_v26 = vperm.slane %v854_v37, 0 }
 0x2ce   :  { %5448 = vst [vmem:[#allocation14_spill] sm:$0xff] %v4132_v56  ;;  %2682 = vmatmul.msk.f32.gmra.mxu0 %vm164_vm0, %v2634_v29  ;;  %944 = vperm.xlu0 %2719, %v4132_v56  }
 0x2cf   :  { %2731 = vset.pattern.permute.xlu1 %v5317_v38 }
 0x2d0   :  { %1261 = vperm.xlu1 %2731, %v4116_v41  }
 0x2d3   :  { %v4144_v8 = vpop.f32.mrf.mxu0 }
 0x2d6   :  { %2683 = vmatmul.msk.f32.gmra.mxu0 %vm164_vm0, %v2635_v31  ;;  %v4167_v31 = vperm.slane %v854_v37, 1 }
 0x2d8   :  { %2732 = vset.pattern.permute.xlu1 %v5313_v15 }
 0x2d9   :  { %1037 = vperm.xlu1 %2732, %v4054_v34  }
 0x2db   :  { %v764_v54 = vpop.f32.mrf.mxu0 }
 0x2dc   :  { %v4154_v52 = vadd.f32 %v3621_v1, %v764_v54  ;;  %v1000_v54 = vadd.f32 %v4167_v31, %v3964_v12 }
 0x2de   :  { %2684 = vmatmul.msk.f32.gmra.mxu0 %vm164_vm0, %v2636_v16  ;;  %1297 = vperm.xlu2 %2750, %v4154_v52   ;;  %v4173_v16 = vperm.slane %v854_v37, 2 }
 0x2df   :  { %954 = vperm.xlu0 %2719, %v4154_v52  }
 0x2e0   :  { %v1117_v38 = vadd.f32 %v4173_v16, %v3985_v5 }
 0x2e1   :  { %v4163_v29 = vpop.permute.xlu2 %1712  ;;  %2733 = vset.pattern.permute.xlu1 %v5315_v25  ;;  %v871_v25 = vadd.f32 %v4171_v26, %v3964_v12 }
 0x2e2   :  { %5456 = vst [vmem:[#allocation7_spill] sm:$0xff] %v4163_v29  ;;  %1151 = vperm.xlu1 %2733, %v4054_v34   ;;  %v4185_v29 = vadd.f32 %v3621_v1, %v4063_v43 }
 0x2e3   :  { %v4169_v49 = vpop.f32.mrf.mxu0 }
 0x2e6   :  { %2685 = vmatmul.msk.f32.gmra.mxu0 %vm164_vm0, %v2637_v7  ;;  %2755 = vset.pattern.permute.xlu2 %v5322_v45 }
 0x2e8   :  { %v1018_v15 = vpop.permute.xlu1 %1017 }
 0x2e9   :  { %v1080_v44 = vadd.f32 %v1018_v15, %v1000_v54  ;;  %v890_v0 = vpop.permute.xlu0 %889  ;;  %v1144_v51 = vpop.permute.xlu2 %1143  ;;  %v872_v15 = vadd.f32 %v4171_v26, %v3968_v10 }
 0x2ea   :  { %v967_v7 = vadd.f32 %v890_v0, %v871_v25  ;;  %v1197_v17 = vadd.f32 %v1144_v51, %v1117_v38  ;;  %2734 = vset.pattern.permute.xlu1 %v5322_v45  ;;  %v5457_v51 = vmov 7  }
 0x2eb   :  { %1097 = vst [vmem:[#allocation2 + $0x80] sm:$0xff] %v1080_v44  ;;  %v770_v33 = vpop.f32.mrf.mxu0  ;;  %919 = vperm.xlu1 %2734, %v4185_v29   ;;  %v5458_v44 = vld [vmem:[#allocation9_spill] sm:$0xff] }
 0x2ec   :  { %983 = vst [vmem:[#allocation2] sm:$0xff] %v967_v7  ;;  %v4190_v13 = vadd.f32 %v3621_v1, %v770_v33  ;;  %v4202_v1 = vpop.f32.mrf.mxu3  ;;  %v1115_v33 = vadd.f32 %v4173_v16, %v3968_v10 }
 0x2ed   :  { %1214 = vst [vmem:[#allocation2 + $0x118] sm:$0xff] %v1197_v17 }
 0x2ee   :  { %964 = vperm.xlu0 %2719, %v4190_v13   ;;  %5460 = vst [vmem:[#allocation8_spill] sm:$0xff] %v4202_v1 }
 0x2f1   :  { %v895_v43 = vpop.permute.xlu1 %894 }
 0x2f2   :  { %v968_v54 = vadd.f32 %v895_v43, %v872_v15  ;;  %v5461_v15 = vmov 5   ;;  %v4209_v43 = vpop.f32.mrf.mxu2 }
 0x2f3   :  { %v1618_v25 = vpop.f32.mrf.mxu0  ;;  %2735 = vset.pattern.permute.xlu1 %v5457_v51 }
 0x2f4   :  { %984 = vst [vmem:[#allocation2 + $0x8] sm:$0xff] %v968_v54  ;;  %v4197_v38 = vadd.f32 %v1618_v25, %v5458_v44  ;;  %1269 = vperm.xlu1 %2735, %v4185_v29   ;;  %v874_v54 = vadd.f32 %v4171_v26, %v3985_v5  ;;  %v4214_v25 = vperm.slane %v854_v37, 3  ;;  %v4216_v2 = vpop.f32.mrf.mxu3 }
 0x2f6   :  { %5459 = vst [vmem:[#allocation34_spill] sm:$0xff] %v4197_v38  ;;  %1762 = vrot.lane.b32.xlu0 %v4197_v38, %s2869_s26 }
 0x2fa   :  { %v1136_v0 = vpop.permute.xlu1 %1135 }
 0x2fb   :  { %v1195_v17 = vadd.f32 %v1136_v0, %v1115_v33  ;;  %v4206_v7 = vpop.f32.mrf.mxu0  ;;  %v1229_v33 = vadd.f32 %v4214_v25, %v3968_v10 }
 0x2fc   :  { %2736 = vset.pattern.permute.xlu1 %v5461_v15 }
 0x2fd   :  { %1212 = vst [vmem:[#allocation2 + $0x108] sm:$0xff] %v1195_v17  ;;  %1045 = vperm.xlu1 %2736, %v4074_v59  }
 0x300   :  { %v905_v45 = vpop.permute.xlu0 %904 }
 0x301   :  { %v970_v6 = vadd.f32 %v905_v45, %v874_v54  ;;  %v4227_v45 = vpop.f32.mrf.mxu2  ;;  %v4231_v54 = vpop.f32.mrf.mxu3 }
 0x302   :  { %5463 = vst [vmem:[#allocation9_spill] sm:$0xff] %v4231_v54 }
 0x303   :  { %986 = vst [vmem:[#allocation2 + $0x18] sm:$0xff] %v970_v6  ;;  %v1624_v0 = vpop.f32.mrf.mxu0  ;;  %v1250_v58 = vpop.permute.xlu1 %1249  ;;  %v873_v6 = vadd.f32 %v4171_v26, %v3978_v47 }
 0x304   :  { %v4221_v60 = vadd.f32 %v1624_v0, %v5458_v44  ;;  %v1309_v17 = vadd.f32 %v1250_v58, %v1229_v33  ;;  %v4239_v33 = vld [vmem:[%s5244_s8] ss:$0 sm:$0xff] }
 0x305   :  { %2737 = vset.pattern.permute.xlu1 %v5462_v23 }
 0x306   :  { %1326 = vst [vmem:[#allocation2 + $0x188] sm:$0xff] %v1309_v17  ;;  %1766 = vrot.lane.b32.xlu2 %v4221_v60, %s2869_s26  ;;  %1159 = vperm.xlu1 %2737, %v4074_v59   ;;  %v4243_v17 = vadd.f32 %v4239_v33, %v4084_v53  ;;  %v1002_v53 = vadd.f32 %v4167_v31, %v3978_v47 }
 0x309   :  { %v4251_v39 = vpop.f32.mrf.mxu2 }
 0x30b   :  { %v1627_v37 = vpop.f32.mrf.mxu0 }
 0x30c   :  { %v4234_v0 = vadd.f32 %v1627_v37, %v5458_v44  ;;  %v900_v58 = vpop.permute.xlu1 %899  ;;  %v876_v37 = vadd.f32 %v4171_v26, %v4098_v62 }
 0x30d   :  { %v969_v50 = vadd.f32 %v900_v58, %v873_v6  ;;  %v4257_v58 = vpop.f32.mrf.mxu3 }
 0x30e   :  { %5464 = vst [vmem:[#allocation49_spill] sm:$0xff] %v4234_v0  ;;  %2738 = vset.pattern.permute.xlu1 %v5465_v21  ;;  %1768 = vrot.lane.b32.xlu0 %v4234_v0, %s2869_s26 }
 0x30f   :  { %985 = vst [vmem:[#allocation2 + $0x10] sm:$0xff] %v969_v50  ;;  %929 = vperm.xlu1 %2738, %v4243_v17  }
 0x310   :  { %v915_v19 = vpop.permute.xlu0 %914 }
 0x311   :  { %v972_v48 = vadd.f32 %v915_v19, %v876_v37  ;;  %v4261_v50 = vpop.f32.mrf.mxu2 }
 0x313   :  { %988 = vst [vmem:[#allocation2 + $0x28] sm:$0xff] %v972_v48  ;;  %v4253_v32 = vpop.f32.mrf.mxu0  ;;  %v1116_v48 = vadd.f32 %v4173_v16, %v3978_v47 }
 0x315   :  { %v1026_v6 = vpop.permute.xlu1 %1025 }
 0x316   :  { %v1082_v59 = vadd.f32 %v1026_v6, %v1002_v53  ;;  %v2638_v53 = vld [vmem:[%s5237_s1 + $0xf8] sm:$0xff]  ;;  %v878_v6 = vadd.f32 %v4171_v26, %v4202_v1 }
 0x317   :  { %2739 = vset.pattern.permute.xlu1 %v5457_v51  ;;  %2686 = vmatmul.msk.f32.gmra.mxu0 %vm164_vm0, %v2638_v53 }
 0x318   :  { %1099 = vst [vmem:[#allocation2 + $0x90] sm:$0xff] %v1082_v59  ;;  %1277 = vperm.xlu1 %2739, %v4243_v17   ;;  %2670 = vmatmul.msk.f32.gmra.mxu3 %vm164_vm0, %v2638_v53  ;;  %v1230_v53 = vadd.f32 %v4214_v25, %v3978_v47  ;;  %v880_v47 = vadd.f32 %v4171_v26, %v4231_v54 }
 0x31b   :  { %v1633_v28 = vpop.f32.mrf.mxu0 }
 0x31c   :  { %v4264_v19 = vadd.f32 %v1633_v28, %v5458_v44  ;;  %v4277_v28 = vpop.f32.mrf.mxu3 }
 0x31d   :  { %5466 = vst [vmem:[#allocation50_spill] sm:$0xff] %v4277_v28  ;;  %v882_v27 = vadd.f32 %v4171_v26, %v4277_v28 }
 0x31e   :  { %1772 = vrot.lane.b32.xlu2 %v4264_v19, %s2869_s26  ;;  %v1140_v37 = vpop.permute.xlu1 %1139 }
 0x31f   :  { %v1196_v59 = vadd.f32 %v1140_v37, %v1116_v48  ;;  %v4284_v37 = vpop.f32.mrf.mxu2 }
 0x320   :  { %2740 = vset.pattern.permute.xlu1 %v5461_v15  ;;  %v925_v24 = vpop.permute.xlu0 %924 }
 0x321   :  { %1213 = vst [vmem:[#allocation2 + $0x110] sm:$0xff] %v1196_v59  ;;  %v974_v34 = vadd.f32 %v925_v24, %v878_v6  ;;  %1053 = vperm.xlu1 %2740, %v4095_v20   ;;  %v1003_v59 = vadd.f32 %v4167_v31, %v3985_v5 }
 0x323   :  { %990 = vst [vmem:[#allocation2 + $0x38] sm:$0xff] %v974_v34  ;;  %v1636_v18 = vpop.f32.mrf.mxu0 }
 0x324   :  { %v4282_v48 = vadd.f32 %v1636_v18, %v5458_v44  ;;  %v4291_v24 = vpop.f32.mrf.mxu3 }
 0x326   :  { %5467 = vst [vmem:[#allocation51_spill] sm:$0xff] %v4282_v48  ;;  %1774 = vrot.lane.b32.xlu0 %v4282_v48, %s2869_s26 }
 0x327   :  { %v1254_v3 = vpop.permute.xlu1 %1253  ;;  %v4296_v18 = vpop.f32.mrf.mxu2 }
 0x328   :  { %v1310_v4 = vadd.f32 %v1254_v3, %v1230_v53  ;;  %v4304_v3 = vadd.f32 %v4239_v33, %v4111_v55 }
 0x329   :  { %2741 = vset.pattern.permute.xlu1 %v5462_v23 }
 0x32a   :  { %1327 = vst [vmem:[#allocation2 + $0x190] sm:$0xff] %v1310_v4  ;;  %1167 = vperm.xlu1 %2741, %v4095_v20  }
 0x32b   :  { %v4294_v34 = vpop.f32.mrf.mxu0 }
 0x32c   :  { %v4308_v63 = vpop.f32.mrf.mxu3 }
 0x32d   :  { %v1241_v55 = vadd.f32 %v4214_v25, %v4308_v63 }
 0x330   :  { %v1030_v6 = vpop.permute.xlu1 %1029 }
 0x331   :  { %v1083_v53 = vadd.f32 %v1030_v6, %v1003_v59  ;;  %v935_v61 = vpop.permute.xlu0 %934  ;;  %v4319_v6 = vpop.f32.mrf.mxu2 }
 0x332   :  { %v976_v4 = vadd.f32 %v935_v61, %v880_v47  ;;  %2742 = vset.pattern.permute.xlu1 %v5465_v21  ;;  %v875_v61 = vadd.f32 %v4171_v26, %v3996_v57 }
 0x333   :  { %1100 = vst [vmem:[#allocation2 + $0x98] sm:$0xff] %v1083_v53  ;;  %v1642_v20 = vpop.f32.mrf.mxu0  ;;  %939 = vperm.xlu1 %2742, %v4304_v3  }
 0x334   :  { %992 = vst [vmem:[#allocation2 + $0x48] sm:$0xff] %v976_v4  ;;  %v4311_v5 = vadd.f32 %v1642_v20, %v5458_v44  ;;  %v4330_v9 = vpop.f32.mrf.mxu3 }
 0x336   :  { %5468 = vst [vmem:[#allocation52_spill] sm:$0xff] %v4311_v5  ;;  %1778 = vrot.lane.b32.xlu2 %v4311_v5, %s2869_s26 }
 0x338   :  { %v1298_v59 = vpop.permute.xlu2 %1297 }
 0x339   :  { %v1321_v47 = vadd.f32 %v1298_v59, %v1241_v55  ;;  %v910_v53 = vpop.permute.xlu1 %909 }
 0x33a   :  { %v971_v12 = vadd.f32 %v910_v53, %v875_v61  ;;  %v1232_v61 = vadd.f32 %v4214_v25, %v3996_v57 }
 0x33b   :  { %1338 = vst [vmem:[#allocation2 + $0x1e8] sm:$0xff] %v1321_v47  ;;  %v1645_v4 = vpop.f32.mrf.mxu0  ;;  %2743 = vset.pattern.permute.xlu1 %v5457_v51 }
 0x33c   :  { %987 = vst [vmem:[#allocation2 + $0x20] sm:$0xff] %v971_v12  ;;  %v4323_v20 = vadd.f32 %v1645_v4, %v5458_v44  ;;  %1285 = vperm.xlu1 %2743, %v4304_v3   ;;  %v4334_v12 = vpop.f32.mrf.mxu2  ;;  %v4340_v35 = vpop.f32.mrf.mxu3 }
 0x33e   :  { %5469 = vst [vmem:[#allocation53_spill] sm:$0xff] %v4323_v20  ;;  %1780 = vrot.lane.b32.xlu0 %v4323_v20, %s2869_s26 }
 0x340   :  { %v945_v55 = vpop.permute.xlu0 %944 }
 0x341   :  { %v978_v59 = vadd.f32 %v945_v55, %v882_v27  ;;  %v1005_v27 = vadd.f32 %v4167_v31, %v4098_v62 }
 0x342   :  { %v1262_v47 = vpop.permute.xlu1 %1261 }
 0x343   :  { %994 = vst [vmem:[#allocation2 + $0x58] sm:$0xff] %v978_v59  ;;  %v1312_v53 = vadd.f32 %v1262_v47, %v1232_v61  ;;  %v4336_v4 = vpop.f32.mrf.mxu0  ;;  %v884_v61 = vadd.f32 %v4171_v26, %v4308_v63 }
 0x344   :  { %2744 = vset.pattern.permute.xlu1 %v5461_v15  ;;  %v4347_v59 = vpop.f32.mrf.mxu2  ;;  %v1553_v38 = vpop.f32.mrf.mxu3 }
 0x345   :  { %1329 = vst [vmem:[#allocation2 + $0x1a0] sm:$0xff] %v1312_v53  ;;  %1061 = vperm.xlu1 %2744, %v4132_v56  }
 0x34b   :  { %v1651_v55 = vpop.f32.mrf.mxu0  ;;  %v1038_v30 = vpop.permute.xlu1 %1037 }
 0x34c   :  { %v4345_v40 = vadd.f32 %v1651_v55, %v5458_v44  ;;  %v1085_v46 = vadd.f32 %v1038_v30, %v1005_v27  ;;  %v1119_v30 = vadd.f32 %v4173_v16, %v4098_v62  ;;  %v5471_v27 = vld [vmem:[#allocation23_spill] sm:$0xff] }
 0x34d   :  { %2745 = vset.pattern.permute.xlu1 %v5462_v23  ;;  %v1554_v55 = vadd.f32 %v1553_v38, %v5471_v27 }
 0x34e   :  { %5470 = vst [vmem:[#allocation54_spill] sm:$0xff] %v4345_v40  ;;  %1784 = vrot.lane.b32.xlu2 %v4345_v40, %s2869_s26  ;;  %1175 = vperm.xlu1 %2745, %v4132_v56   ;;  %v4363_v56 = vadd.f32 %v4239_v33, %v4144_v8  ;;  %v4396_v40 = vadd.f32 %v4239_v33, %v4284_v37 }
 0x34f   :  { %1102 = vst [vmem:[#allocation2 + $0xa8] sm:$0xff] %v1085_v46  ;;  %1988 = vmatmul.f32.vlgmr.msra.gmra.mxu3 %v1554_v55 }
 0x351   :  { %v955_v47 = vpop.permute.xlu0 %954 }
 0x352   :  { %v980_v53 = vadd.f32 %v955_v47, %v884_v61  ;;  %v4368_v61 = vpop.f32.mrf.mxu2  ;;  %v4375_v47 = vadd.f32 %v4239_v33, %v4227_v45 }
 0x353   :  { %v1654_v42 = vpop.f32.mrf.mxu0 }
 0x354   :  { %996 = vst [vmem:[#allocation2 + $0x68] sm:$0xff] %v980_v53  ;;  %v4359_v46 = vadd.f32 %v1654_v42, %v5458_v44  ;;  %v1152_v11 = vpop.permute.xlu1 %1151  ;;  %v1556_v42 = vpop.f32.mrf.mxu3 }
 0x355   :  { %v1199_v0 = vadd.f32 %v1152_v11, %v1119_v30  ;;  %v877_v11 = vadd.f32 %v4171_v26, %v4126_v36  ;;  %v1557_v8 = vadd.f32 %v1556_v42, %v5471_v27  ;;  %v2777_v42 = vld [vmem:[%s5241_s5 + $0x20] sm:$0xff] }
 0x356   :  { %5472 = vst [vmem:[#allocation23_spill] sm:$0xff] %v4359_v46  ;;  %2746 = vset.pattern.permute.xlu1 %v5465_v21  ;;  %1786 = vrot.lane.b32.xlu0 %v4359_v46, %s2869_s26 }
 0x357   :  { %1216 = vst [vmem:[#allocation2 + $0x128] sm:$0xff] %v1199_v0  ;;  %949 = vperm.xlu1 %2746, %v4363_v56   ;;  %1991 = vmatmul.f32.gmra.mxu3 %v1557_v8  ;;  %v886_v0 = vadd.f32 %v4171_v26, %v4340_v35  ;;  %v2778_v8 = vld [vmem:[%s5241_s5 + $0x28] sm:$0xff] }
 0x35a   :  { %v1954_v62 = vpop.f32.mrf.mxu2 }
 0x35b   :  { %v4371_v38 = vpop.f32.mrf.mxu0 }
 0x35c   :  { %v1559_v20 = vpop.f32.mrf.mxu3 }
 0x35d   :  { %v920_v53 = vpop.permute.xlu1 %919 }
 0x35e   :  { %v973_v30 = vadd.f32 %v920_v53, %v877_v11  ;;  %2093 = vperm.xlu0 %2719, %v4375_v47   ;;  %v1748_v11 = vmul.f32 %v2777_v42, %v4221_v60  ;;  %v1560_v60 = vadd.f32 %v1559_v20, %v5471_v27  ;;  %v1234_v42 = vadd.f32 %v4214_v25, %v4126_v36 }
 0x35f   :  { %2747 = vset.pattern.permute.xlu1 %v5457_v51  ;;  %v4413_v20 = vadd.f32 %v4239_v33, %v4209_v43 }
 0x360   :  { %989 = vst [vmem:[#allocation2 + $0x30] sm:$0xff] %v973_v30  ;;  %v1767_v55 = vpop.permute.xlu2 %1766  ;;  %1293 = vperm.xlu1 %2747, %v4363_v56   ;;  %v965_v45 = vpop.permute.xlu0 %964  ;;  %1994 = vmatmul.f32.gmra.mxu3 %v1560_v60  ;;  %v4432_v60 = vadd.f32 %v4239_v33, %v4347_v59  ;;  %v2779_v59 = vld [vmem:[%s5241_s5 + $0x50] sm:$0xff] }
 0x361   :  { %v1796_v53 = vmul.f32 %v2778_v8, %v1767_v55  ;;  %v982_v48 = vadd.f32 %v965_v45, %v886_v0  ;;  %v4417_v45 = vadd.f32 %v4239_v33, %v4319_v6  ;;  %v1007_v8 = vadd.f32 %v4167_v31, %v4202_v1 }
 0x362   :  { %v4409_v37 = vpop.f32.mrf.mxu2  ;;  %v4428_v6 = vadd.f32 %v4239_v33, %v4251_v39  ;;  %v4441_v39 = vadd.f32 %v4239_v33, %v4169_v49 }
 0x363   :  { %v4392_v5 = vadd.f32 %v1796_v53, %v1748_v11  ;;  %998 = vst [vmem:[#allocation2 + $0x78] sm:$0xff] %v982_v48  ;;  %v1660_v30 = vpop.f32.mrf.mxu0 }
 0x364   :  { %v4399_v46 = vadd.f32 %v1660_v30, %v5458_v44  ;;  %v1562_v55 = vpop.f32.mrf.mxu3 }
 0x365   :  { %5473 = vst [vmem:[#allocation55_spill] sm:$0xff] %v4392_v5  ;;  %v1563_v11 = vadd.f32 %v1562_v55, %v5471_v27 }
 0x366   :  { %1790 = vrot.lane.b32.xlu2 %v4399_v46, %s2869_s26  ;;  %v1270_v0 = vpop.permute.xlu1 %1269  ;;  %2108 = vperm.xlu0 %2719, %v4396_v40  }
 0x367   :  { %v1314_v48 = vadd.f32 %v1270_v0, %v1234_v42 }
 0x368   :  { %2748 = vset.pattern.permute.xlu1 %v5461_v15  ;;  %1997 = vmatmul.f32.gmra.mxu3 %v1563_v11  ;;  %v1751_v11 = vmul.f32 %v2779_v59, %v4264_v19  ;;  %v4459_v19 = vadd.f32 %v4239_v33, %v1954_v62  ;;  %v4469_v62 = vadd.f32 %v4239_v33, %v4296_v18 }
 0x369   :  { %1331 = vst [vmem:[#allocation2 + $0x1b0] sm:$0xff] %v1314_v48  ;;  %1069 = vperm.xlu1 %2748, %v4154_v52   ;;  %v1121_v48 = vadd.f32 %v4173_v16, %v4202_v1 }
 0x36a   :  { %v1960_v0 = vpop.f32.mrf.mxu2 }
 0x36c   :  { %v1565_v43 = vpop.f32.mrf.mxu3 }
 0x36d   :  { %v1566_v42 = vadd.f32 %v1565_v43, %v5471_v27 }
 0x36e   :  { %2088 = vperm.xlu2 %2755, %v4413_v20   ;;  %2118 = vperm.xlu0 %2719, %v4417_v45  }
 0x36f   :  { %v1046_v53 = vpop.permute.xlu1 %1045 }
 0x370   :  { %v1087_v30 = vadd.f32 %v1046_v53, %v1007_v8  ;;  %2000 = vmatmul.f32.gmra.mxu3 %v1566_v42  ;;  %v2780_v8 = vld [vmem:[%s5241_s5 + $0x58] sm:$0xff]  ;;  %v4456_v42 = vadd.f32 %v4239_v33, %v4261_v50 }
 0x371   :  { %2749 = vset.pattern.permute.xlu1 %v5462_v23 }
 0x372   :  { %1104 = vst [vmem:[#allocation2 + $0xb8] sm:$0xff] %v1087_v30  ;;  %1183 = vperm.xlu1 %2749, %v4154_v52  }
 0x374   :  { %v1568_v49 = vpop.f32.mrf.mxu3 }
 0x375   :  { %v1569_v59 = vadd.f32 %v1568_v49, %v5471_v27 }
 0x376   :  { %2098 = vperm.xlu2 %2755, %v4428_v6   ;;  %2128 = vperm.xlu0 %2719, %v4432_v60  }
 0x378   :  { %v1773_v52 = vpop.permute.xlu2 %1772  ;;  %v1160_v55 = vpop.permute.xlu1 %1159  ;;  %2003 = vmatmul.f32.gmra.mxu3 %v1569_v59 }
 0x379   :  { %v1799_v53 = vmul.f32 %v2780_v8, %v1773_v52  ;;  %v1201_v30 = vadd.f32 %v1160_v55, %v1121_v48  ;;  %v879_v48 = vadd.f32 %v4171_v26, %v4216_v2 }
 0x37a   :  { %2751 = vset.pattern.permute.xlu1 %v5465_v21  ;;  %v1963_v21 = vpop.f32.mrf.mxu2 }
 0x37b   :  { %v4451_v43 = vadd.f32 %v1799_v53, %v1751_v11  ;;  %1218 = vst [vmem:[#allocation2 + $0x138] sm:$0xff] %v1201_v30  ;;  %959 = vperm.xlu1 %2751, %v4441_v39   ;;  %v4472_v11 = vadd.f32 %v4239_v33, %v1960_v0  ;;  %v1236_v30 = vadd.f32 %v4214_v25, %v4216_v2 }
 0x37c   :  { %v1571_v50 = vpop.f32.mrf.mxu3  ;;  %v4482_v0 = vadd.f32 %v4239_v33, %v4334_v12 }
 0x37d   :  { %v1572_v8 = vadd.f32 %v1571_v50, %v5471_v27 }
 0x37e   :  { %2103 = vperm.xlu2 %2755, %v4456_v42   ;;  %2138 = vperm.xlu0 %2719, %v4459_v19  }
 0x380   :  { %2006 = vmatmul.f32.gmra.mxu3 %v1572_v8  ;;  %v4496_v8 = vadd.f32 %v4239_v33, %v4368_v61 }
 0x381   :  { %v930_v52 = vpop.permute.xlu1 %929 }
 0x382   :  { %v975_v55 = vadd.f32 %v930_v52, %v879_v48  ;;  %v1966_v53 = vpop.f32.mrf.mxu2 }
 0x383   :  { %2752 = vset.pattern.permute.xlu1 %v5461_v15  ;;  %v4485_v48 = vadd.f32 %v4239_v33, %v1966_v53 }
 0x384   :  { %991 = vst [vmem:[#allocation2 + $0x40] sm:$0xff] %v975_v55  ;;  %1077 = vperm.xlu1 %2752, %v4190_v13   ;;  %v1574_v59 = vpop.f32.mrf.mxu3  ;;  %v1009_v55 = vadd.f32 %v4167_v31, %v4231_v54 }
 0x385   :  { %v1575_v52 = vadd.f32 %v1574_v59, %v5471_v27  ;;  %v4512_v59 = vadd.f32 %v4206_v7, %v5458_v44  ;;  %v4525_v7 = vadd.f32 %v4253_v32, %v5458_v44 }
 0x386   :  { %2113 = vperm.xlu2 %2755, %v4469_v62   ;;  %2148 = vperm.xlu0 %2719, %v4472_v11  }
 0x387   :  { %5474 = vst [vmem:[#allocation56_spill] sm:$0xff] %v4512_v59 }
 0x388   :  { %2009 = vmatmul.f32.gmra.mxu3 %v1575_v52 }
 0x38a   :  { %v1278_v49 = vpop.permute.xlu1 %1277  ;;  %v1969_v32 = vpop.f32.mrf.mxu2 }
 0x38b   :  { %v1316_v18 = vadd.f32 %v1278_v49, %v1236_v30  ;;  %v1123_v49 = vadd.f32 %v4173_v16, %v4231_v54 }
 0x38c   :  { %2753 = vset.pattern.permute.xlu1 %v5462_v23  ;;  %v1577_v50 = vpop.f32.mrf.mxu3 }
 0x38d   :  { %1333 = vst [vmem:[#allocation2 + $0x1c0] sm:$0xff] %v1316_v18  ;;  %1191 = vperm.xlu1 %2753, %v4190_v13   ;;  %v1578_v30 = vadd.f32 %v1577_v50, %v5471_v27  ;;  %v4508_v18 = vadd.f32 %v4239_v33, %v4409_v37  ;;  %v4521_v37 = vadd.f32 %v4239_v33, %v1963_v21 }
 0x38e   :  { %2123 = vperm.xlu2 %2755, %v4482_v0   ;;  %2158 = vperm.xlu0 %2719, %v4485_v48  }
 0x390   :  { %2012 = vmatmul.f32.gmra.mxu3 %v1578_v30 }
 0x393   :  { %v1054_v12 = vpop.permute.xlu1 %1053 }
 0x394   :  { %v1089_v53 = vadd.f32 %v1054_v12, %v1009_v55  ;;  %v1580_v61 = vpop.f32.mrf.mxu3  ;;  %v881_v12 = vadd.f32 %v4171_v26, %v4257_v58 }
 0x395   :  { %2754 = vset.pattern.permute.xlu1 %v5457_v51 }
 0x396   :  { %1106 = vst [vmem:[#allocation2 + $0xc8] sm:$0xff] %v1089_v53  ;;  %2133 = vperm.xlu2 %2755, %v4496_v8   ;;  %1305 = vperm.xlu1 %2754, %v4190_v13   ;;  %v1581_v13 = vadd.f32 %v1580_v61, %v5471_v27  ;;  %v4538_v61 = vadd.f32 %v4294_v34, %v5458_v44 }
 0x397   :  { %2756 = vset.pattern.permute.xlu0 %v5461_v15 }
 0x398   :  { %1021 = vperm.xlu0 %2756, %v4014_v22   ;;  %2015 = vmatmul.f32.gmra.mxu3 %v1581_v13 }
 0x39c   :  { %v1168_v52 = vpop.permute.xlu1 %1167  ;;  %v1583_v22 = vpop.f32.mrf.mxu3 }
 0x39d   :  { %v1203_v55 = vadd.f32 %v1168_v52, %v1123_v49  ;;  %v1584_v50 = vadd.f32 %v1583_v22, %v5471_v27  ;;  %v4533_v49 = vpop.permute.xlu0 %1762  ;;  %v4541_v52 = vadd.f32 %v4239_v33, %v1969_v32  ;;  %v1011_v32 = vadd.f32 %v4167_v31, %v4277_v28 }
 0x39e   :  { %2143 = vperm.xlu2 %2755, %v4508_v18   ;;  %1764 = vrot.lane.b32.xlu1 %v4512_v59, %s2869_s26  ;;  %5475 = vst [vmem:[#allocation57_spill] sm:$0xff] %v4533_v49 }
 0x39f   :  { %1220 = vst [vmem:[#allocation2 + $0x148] sm:$0xff] %v1203_v55  ;;  %2760 = vset.pattern.permute.xlu1 %v5462_v23  ;;  %v1238_v55 = vadd.f32 %v4214_v25, %v4257_v58 }
 0x3a0   :  { %1033 = vperm.xlu0 %2756, %v4116_v41   ;;  %2018 = vmatmul.f32.gmra.mxu3 %v1584_v50 }
 0x3a4   :  { %v1586_v21 = vpop.f32.mrf.mxu3 }
 0x3a5   :  { %v940_v53 = vpop.permute.xlu1 %939  ;;  %v1587_v13 = vadd.f32 %v1586_v21, %v5471_v27  ;;  %v4549_v50 = vpop.permute.xlu0 %1768 }
 0x3a6   :  { %v977_v30 = vadd.f32 %v940_v53, %v881_v12  ;;  %2153 = vperm.xlu2 %2755, %v4521_v37   ;;  %1770 = vrot.lane.b32.xlu1 %v4525_v7, %s2869_s26  ;;  %v4554_v53 = vadd.f32 %v4336_v4, %v5458_v44  ;;  %v1663_v4 = vpop.f32.mrf.mxu0 }
 0x3a8   :  { %993 = vst [vmem:[#allocation2 + $0x50] sm:$0xff] %v977_v30  ;;  %1041 = vperm.xlu0 %2756, %v4185_v29   ;;  %2021 = vmatmul.f32.gmra.mxu3 %v1587_v13 }
 0x3ac   :  { %v1589_v34 = vpop.f32.mrf.mxu3 }
 0x3ad   :  { %v1590_v30 = vadd.f32 %v1589_v34, %v5471_v27  ;;  %v4563_v13 = vpop.permute.xlu0 %1774 }
 0x3ae   :  { %2163 = vperm.xlu2 %2755, %v4541_v52   ;;  %1776 = vrot.lane.b32.xlu1 %v4538_v61, %s2869_s26  ;;  %v1286_v22 = vpop.permute.xlu1 %1285 }
 0x3af   :  { %v1318_v12 = vadd.f32 %v1286_v22, %v1238_v55 }
 0x3b0   :  { %1049 = vperm.xlu0 %2756, %v4243_v17   ;;  %2024 = vmatmul.f32.gmra.mxu3 %v1590_v30  ;;  %v1125_v30 = vadd.f32 %v4173_v16, %v4277_v28 }
 0x3b1   :  { %1335 = vst [vmem:[#allocation2 + $0x1d0] sm:$0xff] %v1318_v12  ;;  %v4571_v12 = vadd.f32 %v1663_v4, %v5458_v44 }
 0x3b4   :  { %v1592_v22 = vpop.f32.mrf.mxu3 }
 0x3b5   :  { %v1593_v34 = vadd.f32 %v1592_v22, %v5471_v27  ;;  %v883_v22 = vadd.f32 %v4171_v26, %v4291_v24 }
 0x3b6   :  { %2757 = vset.pattern.permute.xlu2 %v5461_v15  ;;  %1782 = vrot.lane.b32.xlu1 %v4554_v53, %s2869_s26  ;;  %v4568_v15 = vadd.f32 %v4371_v38, %v5458_v44 }
 0x3b7   :  { %2221 = vperm.xlu2 %2757, %v4375_v47   ;;  %v1062_v21 = vpop.permute.xlu1 %1061 }
 0x3b8   :  { %v1091_v55 = vadd.f32 %v1062_v21, %v1011_v32  ;;  %1057 = vperm.xlu0 %2756, %v4304_v3   ;;  %2027 = vmatmul.f32.gmra.mxu3 %v1593_v34  ;;  %v4579_v32 = vpop.permute.xlu0 %1780 }
 0x3ba   :  { %1108 = vst [vmem:[#allocation2 + $0xd8] sm:$0xff] %v1091_v55 }
 0x3bc   :  { %v1595_v44 = vpop.f32.mrf.mxu3 }
 0x3bd   :  { %v1596_v55 = vadd.f32 %v1595_v44, %v5471_v27 }
 0x3be   :  { %1788 = vrot.lane.b32.xlu1 %v4568_v15, %s2869_s26 }
 0x3bf   :  { %2225 = vperm.xlu2 %2757, %v4428_v6  }
 0x3c0   :  { %1792 = vrot.lane.b32.xlu0 %v4571_v12, %s2869_s26  ;;  %v1176_v38 = vpop.permute.xlu1 %1175  ;;  %2030 = vmatmul.f32.gmra.mxu3 %v1596_v55 }
 0x3c1   :  { %v1205_v21 = vadd.f32 %v1176_v38, %v1125_v30 }
 0x3c3   :  { %1222 = vst [vmem:[#allocation2 + $0x158] sm:$0xff] %v1205_v21  ;;  %v1240_v21 = vadd.f32 %v4214_v25, %v4291_v24 }
 0x3c4   :  { %v1598_v54 = vpop.f32.mrf.mxu3 }
 0x3c5   :  { %v1599_v30 = vadd.f32 %v1598_v54, %v5471_v27  ;;  %v1013_v27 = vadd.f32 %v4167_v31, %v4308_v63 }
 0x3c6   :  { %2359 = vperm.xlu1 %2760, %v4482_v0  }
 0x3c7   :  { %2233 = vperm.xlu2 %2757, %v4396_v40  }
 0x3c8   :  { %1065 = vperm.xlu0 %2756, %v4363_v56   ;;  %v4587_v4 = vpop.permute.xlu0 %1786  ;;  %2033 = vmatmul.f32.gmra.mxu3 %v1599_v30 }
 0x3c9   :  { %v950_v34 = vpop.permute.xlu1 %949 }
 0x3ca   :  { %v979_v28 = vadd.f32 %v950_v34, %v883_v22 }
 0x3cc   :  { %995 = vst [vmem:[#allocation2 + $0x60] sm:$0xff] %v979_v28 }
 0x3cf   :  { %2241 = vperm.xlu2 %2757, %v4417_v45  }
 0x3d0   :  { %1073 = vperm.xlu0 %2756, %v4441_v39   ;;  %v4594_v38 = vpop.permute.xlu0 %2093 }
 0x3d1   :  { %5476 = vst [vmem:[#allocation58_spill] sm:$0xff] %v4594_v38 }
 0x3d2   :  { %v1294_v44 = vpop.permute.xlu1 %1293  ;;  %v1989_v54 = vpop.f32.mrf.mxu3 }
 0x3d3   :  { %v1320_v55 = vadd.f32 %v1294_v44, %v1240_v21  ;;  %v4608_v44 = vpop.permute.xlu2 %1778 }
 0x3d5   :  { %1337 = vst [vmem:[#allocation2 + $0x1e0] sm:$0xff] %v1320_v55  ;;  %v1127_v55 = vadd.f32 %v4173_v16, %v4308_v63 }
 0x3d7   :  { %2249 = vperm.xlu2 %2757, %v4432_v60  }
 0x3d8   :  { %2217 = vperm.xlu0 %2756, %v4413_v20   ;;  %v4600_v28 = vpop.permute.xlu0 %2108 }
 0x3d9   :  { %5477 = vst [vmem:[#allocation59_spill] sm:$0xff] %v4600_v28 }
 0x3da   :  { %v1992_v21 = vpop.f32.mrf.mxu3 }
 0x3db   :  { %v1070_v22 = vpop.permute.xlu1 %1069 }
 0x3dc   :  { %v1093_v34 = vadd.f32 %v1070_v22, %v1013_v27  ;;  %v4616_v22 = vpop.permute.xlu2 %1784 }
 0x3de   :  { %1110 = vst [vmem:[#allocation2 + $0xe8] sm:$0xff] %v1093_v34 }
 0x3df   :  { %2257 = vperm.xlu2 %2757, %v4459_v19  }
 0x3e0   :  { %2229 = vperm.xlu0 %2756, %v4456_v42   ;;  %v4606_v30 = vpop.permute.xlu0 %2118 }
 0x3e1   :  { %5478 = vst [vmem:[#allocation60_spill] sm:$0xff] %v4606_v30  ;;  %v885_v30 = vadd.f32 %v4171_v26, %v4330_v9  ;;  %v1990_v26 = vadd.f32 %v4239_v33, %v1989_v54 }
 0x3e3   :  { %v1995_v34 = vpop.f32.mrf.mxu3 }
 0x3e4   :  { %v1184_v28 = vpop.permute.xlu1 %1183 }
 0x3e5   :  { %v1207_v1 = vadd.f32 %v1184_v28, %v1127_v55  ;;  %v1015_v55 = vadd.f32 %v4167_v31, %v4340_v35 }
 0x3e7   :  { %1224 = vst [vmem:[#allocation2 + $0x168] sm:$0xff] %v1207_v1  ;;  %2265 = vperm.xlu2 %2757, %v4472_v11   ;;  %v4624_v1 = vpop.permute.xlu2 %1790 }
 0x3e8   :  { %2237 = vperm.xlu0 %2756, %v4469_v62   ;;  %v4614_v27 = vpop.permute.xlu0 %2128 }
 0x3e9   :  { %5479 = vst [vmem:[#allocation61_spill] sm:$0xff] %v4614_v27 }
 0x3eb   :  { %v1998_v28 = vpop.f32.mrf.mxu3 }
 0x3ed   :  { %v960_v38 = vpop.permute.xlu1 %959 }
 0x3ee   :  { %v981_v49 = vadd.f32 %v960_v38, %v885_v30  ;;  %v1129_v30 = vadd.f32 %v4173_v16, %v4340_v35 }
 0x3ef   :  { %2273 = vperm.xlu2 %2757, %v4485_v48   ;;  %v4634_v38 = vpop.permute.xlu2 %2088 }
 0x3f0   :  { %997 = vst [vmem:[#allocation2 + $0x70] sm:$0xff] %v981_v49  ;;  %2245 = vperm.xlu0 %2756, %v4482_v0   ;;  %v4622_v63 = vpop.permute.xlu0 %2138 }
 0x3f1   :  { %5480 = vst [vmem:[#allocation62_spill] sm:$0xff] %v4622_v63 }
 0x3f2   :  { %5482 = vst [vmem:[#allocation64_spill] sm:$0xff] %v4634_v38  ;;  %v1001_v38 = vadd.f32 %v4167_v31, %v3968_v10 }
 0x3f3   :  { %v2001_v63 = vpop.f32.mrf.mxu3 }
 0x3f6   :  { %v1078_v27 = vpop.permute.xlu1 %1077 }
 0x3f7   :  { %v1095_v5 = vadd.f32 %v1078_v27, %v1015_v55  ;;  %2759 = vset.pattern.permute.xlu2 %v5462_v23  ;;  %v1993_v27 = vadd.f32 %v4239_v33, %v1992_v21 }
 0x3f8   :  { %2253 = vperm.xlu0 %2756, %v4496_v8   ;;  %2331 = vperm.xlu2 %2759, %v4413_v20   ;;  %v4632_v49 = vpop.permute.xlu0 %2148 }
 0x3f9   :  { %5481 = vst [vmem:[#allocation63_spill] sm:$0xff] %v4632_v49  ;;  %v1243_v49 = vadd.f32 %v4214_v25, %v4340_v35 }
 0x3fa   :  { %1112 = vst [vmem:[#allocation2 + $0xf8] sm:$0xff] %v1095_v5  ;;  %v4643_v5 = vpop.permute.xlu2 %2098 }
 0x3fb   :  { %2037 = vxpose.xlu1.b32.start [1/16] (narrow) %v1990_v26, 8  ;;  %5484 = vst [vmem:[#allocation66_spill] sm:$0xff] %v4643_v5  ;;  %v1996_v26 = vadd.f32 %v4239_v33, %v1995_v34  ;;  %v2004_v21 = vpop.f32.mrf.mxu3  ;;  %v1999_v34 = vadd.f32 %v4239_v33, %v1998_v28 }
 0x3ff   :  { %v1192_v59 = vpop.permute.xlu1 %1191 }
 0x400   :  { %v1209_v55 = vadd.f32 %v1192_v59, %v1129_v30  ;;  %2261 = vperm.xlu0 %2756, %v4508_v18   ;;  %2339 = vperm.xlu2 %2759, %v4428_v6   ;;  %v4641_v54 = vpop.permute.xlu0 %2158 }
 0x401   :  { %5483 = vst [vmem:[#allocation65_spill] sm:$0xff] %v4641_v54 }
 0x402   :  { %1226 = vst [vmem:[#allocation2 + $0x178] sm:$0xff] %v1209_v55  ;;  %v4653_v55 = vpop.permute.xlu2 %2103 }
 0x403   :  { %2038 = vxpose.xlu1.b32.cont [2/16] (narrow) %v1993_v27, 8  ;;  %v2007_v10 = vpop.f32.mrf.mxu3 }
 0x408   :  { %2269 = vperm.xlu0 %2756, %v4521_v37   ;;  %2343 = vperm.xlu2 %2759, %v4456_v42   ;;  %v1306_v59 = vpop.permute.xlu1 %1305 }
 0x409   :  { %v1323_v30 = vadd.f32 %v1306_v59, %v1243_v49  ;;  %v1004_v49 = vadd.f32 %v4167_v31, %v3996_v57 }
 0x40a   :  { %v1022_v54 = vpop.permute.xlu0 %1021 }
 0x40b   :  { %1340 = vst [vmem:[#allocation2 + $0x1f8] sm:$0xff] %v1323_v30  ;;  %v1081_v27 = vadd.f32 %v1022_v54, %v1001_v38  ;;  %2039 = vxpose.xlu1.b32.cont [3/16] (narrow) %v1996_v26, 8  ;;  %v2002_v38 = vadd.f32 %v4239_v33, %v2001_v63  ;;  %v1006_v54 = vadd.f32 %v4167_v31, %v4126_v36  ;;  %v4669_v26 = vpop.permute.xlu2 %2113 }
 0x40c   :  { %5485 = vst [vmem:[#allocation67_spill] sm:$0xff] %v4669_v26  ;;  %v2005_v63 = vadd.f32 %v4239_v33, %v2004_v21 }
 0x40d   :  { %1098 = vst [vmem:[#allocation2 + $0x88] sm:$0xff] %v1081_v27 }
 0x410   :  { %2277 = vperm.xlu0 %2756, %v4541_v52   ;;  %2351 = vperm.xlu2 %2759, %v4469_v62   ;;  %v4657_v35 = vpop.permute.xlu1 %1764 }
 0x412   :  { %v1034_v59 = vpop.permute.xlu0 %1033 }
 0x413   :  { %v1084_v5 = vadd.f32 %v1034_v59, %v1004_v49  ;;  %2040 = vxpose.xlu1.b32.cont [4/16] (narrow) %v1999_v34, 8  ;;  %v2010_v34 = vpop.f32.mrf.mxu3  ;;  %v4678_v26 = vpop.permute.xlu2 %2123 }
 0x414   :  { %5486 = vst [vmem:[#allocation68_spill] sm:$0xff] %v4678_v26 }
 0x415   :  { %1101 = vst [vmem:[#allocation2 + $0xa0] sm:$0xff] %v1084_v5 }
 0x418   :  { %2758 = vset.pattern.permute.xlu0 %v5462_v23  ;;  %2363 = vperm.xlu2 %2759, %v4432_v60   ;;  %v4664_v28 = vpop.permute.xlu1 %1770  ;;  %v1008_v23 = vadd.f32 %v4167_v31, %v4216_v2 }
 0x419   :  { %1131 = vperm.xlu0 %2758, %v4004_v14  }
 0x41a   :  { %v1042_v30 = vpop.permute.xlu0 %1041 }
 0x41b   :  { %v1086_v27 = vadd.f32 %v1042_v30, %v1006_v54  ;;  %2041 = vxpose.xlu1.b32.cont [5/16] (narrow) %v2002_v38, 8  ;;  %v2013_v38 = vpop.f32.mrf.mxu3  ;;  %v2008_v54 = vadd.f32 %v4239_v33, %v2007_v10 }
 0x41d   :  { %1103 = vst [vmem:[#allocation2 + $0xb0] sm:$0xff] %v1086_v27 }
 0x420   :  { %2371 = vperm.xlu2 %2759, %v4459_v19   ;;  %v4676_v5 = vpop.permute.xlu1 %1776 }
 0x421   :  { %1147 = vperm.xlu0 %2758, %v4116_v41   ;;  %v1010_v41 = vadd.f32 %v4167_v31, %v4257_v58 }
 0x422   :  { %v1050_v49 = vpop.permute.xlu0 %1049 }
 0x423   :  { %v1088_v59 = vadd.f32 %v1050_v49, %v1008_v23  ;;  %2042 = vxpose.xlu1.b32.cont [6/16] (narrow) %v2005_v63, 8  ;;  %v4685_v23 = vpop.permute.xlu2 %2133  ;;  %v2011_v63 = vadd.f32 %v4239_v33, %v2010_v34  ;;  %v2016_v49 = vpop.f32.mrf.mxu3  ;;  %v2783_v34 = vld [vmem:[%s5241_s5 + $0xe8] sm:$0xff] }
 0x424   :  { %5487 = vst [vmem:[#allocation69_spill] sm:$0xff] %v4685_v23  ;;  %v2784_v23 = vld [vmem:[%s5241_s5 + $0xe0] sm:$0xff] }
 0x425   :  { %1105 = vst [vmem:[#allocation2 + $0xc0] sm:$0xff] %v1088_v59 }
 0x428   :  { %2379 = vperm.xlu2 %2759, %v4472_v11   ;;  %v1783_v27 = vpop.permute.xlu1 %1782 }
 0x429   :  { %1155 = vperm.xlu0 %2758, %v4185_v29   ;;  %v2781_v29 = vld [vmem:[%s5241_s5 + $0xf0] sm:$0xff] }
 0x42a   :  { %v1058_v21 = vpop.permute.xlu0 %1057  ;;  %v1761_v59 = vmul.f32 %v2781_v29, %v4571_v12  ;;  %v1760_v12 = vmul.f32 %v2784_v23, %v4399_v46  ;;  %v2014_v29 = vadd.f32 %v4239_v33, %v2013_v38  ;;  %v1012_v46 = vadd.f32 %v4167_v31, %v4291_v24  ;;  %v2786_v38 = vld [vmem:[%s5241_s5 + $0xd0] sm:$0xff] }
 0x42b   :  { %v1090_v30 = vadd.f32 %v1058_v21, %v1010_v41  ;;  %2043 = vxpose.xlu1.b32.cont [7/16] (narrow) %v2008_v54, 8  ;;  %v2782_v54 = vld [vmem:[%s5241_s5 + $0xf8] sm:$0xff]  ;;  %v1808_v21 = vmul.f32 %v2783_v34, %v4624_v1  ;;  %v4706_v26 = vpop.permute.xlu2 %2143 }
 0x42c   :  { %v2785_v1 = vld [vmem:[%s5241_s5 + $0xd8] sm:$0xff] }
 0x42d   :  { %1107 = vst [vmem:[#allocation2 + $0xd0] sm:$0xff] %v1090_v30 }
 0x430   :  { %2387 = vperm.xlu2 %2759, %v4485_v48   ;;  %v1789_v30 = vpop.permute.xlu1 %1788 }
 0x431   :  { %1163 = vperm.xlu0 %2758, %v4243_v17  }
 0x432   :  { %v1793_v10 = vpop.permute.xlu0 %1792 }
 0x433   :  { %v1809_v41 = vmul.f32 %v2782_v54, %v1793_v10  ;;  %2044 = vxpose.xlu1.b32.cont [8/16] (narrow) %v2011_v63, 8  ;;  %v1824_v63 = vadd.f32 %v1808_v21, %v1760_v12  ;;  %v1807_v10 = vmul.f32 %v2785_v1, %v1789_v30  ;;  %v1759_v54 = vmul.f32 %v2786_v38, %v4568_v15  ;;  %v2788_v21 = vld [vmem:[%s5241_s5 + $0xc0] sm:$0xff]  ;;  %v2789_v12 = vld [vmem:[%s5241_s5 + $0xb8] sm:$0xff]  ;;  %v4737_v1 = vpop.permute.xlu2 %2153 }
 0x434   :  { %v2017_v15 = vadd.f32 %v4239_v33, %v2016_v49  ;;  %v2790_v49 = vld [vmem:[%s5241_s5 + $0xb0] sm:$0xff] }
 0x435   :  { %v1825_v17 = vadd.f32 %v1809_v41, %v1761_v59  ;;  %v2019_v59 = vpop.f32.mrf.mxu3  ;;  %v1823_v34 = vadd.f32 %v1807_v10, %v1759_v54 }
 0x437   :  { %1842 = vmatpush.xpose.msrb.mxu1 %v1825_v17  ;;  %v5488_v17 = vld [vmem:[#allocation23_spill] sm:$0xff] }
 0x438   :  { %2762 = vset.pattern.permute.xlu2 %v5457_v51  ;;  %v1758_v30 = vmul.f32 %v2788_v21, %v5488_v17  ;;  %v5490_v17 = vld [vmem:[#allocation53_spill] sm:$0xff] }
 0x439   :  { %1171 = vperm.xlu0 %2758, %v4304_v3   ;;  %2445 = vperm.xlu2 %2762, %v4413_v20   ;;  %v2787_v3 = vld [vmem:[%s5241_s5 + $0xc8] sm:$0xff] }
 0x43a   :  { %v1066_v23 = vpop.permute.xlu0 %1065  ;;  %v1806_v20 = vmul.f32 %v2787_v3, %v4587_v4  ;;  %v1014_v4 = vadd.f32 %v4167_v31, %v4330_v9  ;;  %v2792_v31 = vld [vmem:[%s5241_s5 + $0xa0] sm:$0xff]  ;;  %v2020_v3 = vadd.f32 %v4239_v33, %v2019_v59 }
 0x43b   :  { %v1092_v41 = vadd.f32 %v1066_v23, %v1012_v46  ;;  %1843 = vmatpush.xpose.msrb.mxu1 %v1824_v63  ;;  %2045 = vxpose.xlu1.b32.cont [9/16] (narrow) %v2014_v29, 8  ;;  %v1805_v29 = vmul.f32 %v2789_v12, %v4616_v22  ;;  %v5489_v46 = vld [vmem:[#allocation54_spill] sm:$0xff]  ;;  %v4763_v59 = vpop.permute.xlu2 %2163 }
 0x43c   :  { %v1822_v63 = vadd.f32 %v1806_v20, %v1758_v30  ;;  %v1757_v23 = vmul.f32 %v2790_v49, %v5489_v46  ;;  %v2793_v20 = vld [vmem:[%s5241_s5 + $0x98] sm:$0xff] }
 0x43d   :  { %1109 = vst [vmem:[#allocation2 + $0xe0] sm:$0xff] %v1092_v41  ;;  %v2022_v22 = vpop.f32.mrf.mxu3  ;;  %v1756_v41 = vmul.f32 %v2792_v31, %v4554_v53  ;;  %v2794_v53 = vld [vmem:[%s5241_s5 + $0x90] sm:$0xff]  ;;  %v2797_v46 = vld [vmem:[%s5241_s5 + $0x78] sm:$0xff] }
 0x43e   :  { %v1821_v54 = vadd.f32 %v1805_v29, %v1757_v23  ;;  %v1755_v30 = vmul.f32 %v2794_v53, %v5490_v17  ;;  %v2796_v29 = vld [vmem:[%s5241_s5 + $0x80] sm:$0xff]  ;;  %v1801_v23 = vmul.f32 %v2797_v46, %v4676_v5 }
 0x43f   :  { %1844 = vmatpush.xpose.msrb.mxu1 %v1823_v34  ;;  %v1803_v34 = vmul.f32 %v2793_v20, %v4579_v32  ;;  %v2795_v32 = vld [vmem:[%s5241_s5 + $0x88] sm:$0xff]  ;;  %v2803_v53 = vld [vmem:[%s5241_s5 + $0x40] sm:$0xff] }
 0x440   :  { %v1750_v17 = vmul.f32 %v2803_v53, %v4525_v7  ;;  %v5493_v7 = vld [vmem:[#allocation49_spill] sm:$0xff]  ;;  %v5499_v53 = vld [vmem:[#allocation34_spill] sm:$0xff] }
 0x441   :  { %1179 = vperm.xlu0 %2758, %v4363_v56   ;;  %2453 = vperm.xlu2 %2762, %v4428_v6   ;;  %v2791_v56 = vld [vmem:[%s5241_s5 + $0xa8] sm:$0xff]  ;;  %v1819_v12 = vadd.f32 %v1803_v34, %v1755_v30 }
 0x442   :  { %v1074_v10 = vpop.permute.xlu0 %1073  ;;  %v1804_v6 = vmul.f32 %v2791_v56, %v1783_v27  ;;  %v2802_v34 = vld [vmem:[%s5241_s5 + $0x48] sm:$0xff] }
 0x443   :  { %v1094_v38 = vadd.f32 %v1074_v10, %v1014_v4  ;;  %1845 = vmatpush.xpose.msrb.mxu1 %v1822_v63  ;;  %2046 = vxpose.xlu1.b32.cont [10/16] (narrow) %v2017_v15, 8  ;;  %v1802_v15 = vmul.f32 %v2795_v32, %v4608_v44  ;;  %v5491_v63 = vld [vmem:[#allocation52_spill] sm:$0xff]  ;;  %v2023_v10 = vadd.f32 %v4239_v33, %v2022_v22  ;;  %v2799_v33 = vld [vmem:[%s5241_s5 + $0x68] sm:$0xff]  ;;  %v4790_v56 = vpop.permute.xlu2 %2221 }
 0x444   :  { %v1820_v21 = vadd.f32 %v1804_v6, %v1756_v41  ;;  %v1754_v4 = vmul.f32 %v2796_v29, %v5491_v63  ;;  %v1800_v5 = vmul.f32 %v2799_v33, %v4563_v13  ;;  %v5492_v6 = vld [vmem:[#allocation51_spill] sm:$0xff]  ;;  %v2804_v32 = vld [vmem:[%s5241_s5 + $0x38] sm:$0xff] }
 0x445   :  { %1111 = vst [vmem:[#allocation2 + $0xf0] sm:$0xff] %v1094_v38  ;;  %v2798_v38 = vld [vmem:[%s5241_s5 + $0x70] sm:$0xff] }
 0x446   :  { %v1818_v49 = vadd.f32 %v1802_v15, %v1754_v4  ;;  %v1797_v15 = vmul.f32 %v2804_v32, %v4549_v50  ;;  %v2806_v50 = vld [vmem:[%s5241_s5 + $0x18] sm:$0xff]  ;;  %v5495_v33 = vld [vmem:[#allocation55_spill] sm:$0xff] }
 0x447   :  { %1846 = vmatpush.xpose.msrb.mxu1 %v1821_v54  ;;  %v1753_v54 = vmul.f32 %v2798_v38, %v4538_v61  ;;  %v2801_v61 = vld [vmem:[%s5244_s8] ss:$0 sm:$0xff]  ;;  %v5494_v38 = vld [vmem:[#allocation56_spill] sm:$0xff] }
 0x449   :  { %1187 = vperm.xlu0 %2758, %v4441_v39   ;;  %2457 = vperm.xlu2 %2762, %v4456_v42   ;;  %v2025_v42 = vpop.f32.mrf.mxu3  ;;  %v1817_v22 = vadd.f32 %v1801_v23, %v1753_v54  ;;  %v2807_v23 = vld [vmem:[%s5241_s5 + $0x10] sm:$0xff] }
 0x44a   :  { %v4757_v27 = vpop.permute.xlu0 %2217  ;;  %v2026_v41 = vadd.f32 %v2801_v61, %v2025_v42  ;;  %v1747_v54 = vmul.f32 %v2807_v23, %v5494_v38  ;;  %v2815_v23 = vld [vmem:[%s5240_s4 + $0x20] sm:$0xff]  ;;  %v5502_v38 = vld [vmem:[#allocation28_spill] sm:$0xff] }
 0x44b   :  { %1847 = vmatpush.xpose.msrb.mxu1 %v1820_v21  ;;  %2047 = vxpose.xlu1.b32.cont [11/16] (narrow) %v2020_v3, 8  ;;  %v1798_v21 = vmul.f32 %v2802_v34, %v4664_v28 }
 0x44f   :  { %1848 = vmatpush.xpose.msrb.mxu1 %v1819_v12  ;;  %v1814_v12 = vadd.f32 %v1798_v21, %v1750_v17  ;;  %v2811_v21 = vld [vmem:[%s5241_s5] sm:$0xff] }
 0x450   :  { %v1746_v17 = vmul.f32 %v2811_v21, %v5499_v53 }
 0x451   :  { %2335 = vperm.xlu0 %2758, %v4375_v47   ;;  %2465 = vperm.xlu2 %2762, %v4469_v62   ;;  %v2800_v62 = vld [vmem:[%s5241_s5 + $0x60] sm:$0xff]  ;;  %v2028_v3 = vpop.f32.mrf.mxu3 }
 0x452   :  { %v4780_v44 = vpop.permute.xlu0 %2229  ;;  %v1752_v31 = vmul.f32 %v2800_v62, %v5492_v6  ;;  %v2029_v30 = vadd.f32 %v2801_v61, %v2028_v3  ;;  %v5497_v62 = vld [vmem:[#allocation19_spill] sm:$0xff]  ;;  %v5498_v3 = vld [vmem:[#allocation57_spill] sm:$0xff] }
 0x453   :  { %1849 = vmatpush.xpose.msrb.mxu1 %v1818_v49  ;;  %2048 = vxpose.xlu1.b32.cont [12/16] (narrow) %v2023_v10, 8  ;;  %v1795_v10 = vmul.f32 %v2806_v50, %v4657_v35  ;;  %v2808_v35 = vld [vmem:[%s5240_s4] sm:$0xff] }
 0x454   :  { %v1816_v20 = vadd.f32 %v1800_v5, %v1752_v31 }
 0x455   :  { %v1811_v34 = vadd.f32 %v1795_v10, %v1747_v54  ;;  %v1668_v54 = vmul.f32 %v2815_v23, %v5502_v38 }
 0x457   :  { %1850 = vmatpush.xpose.msrb.mxu1 %v1817_v22  ;;  %v2809_v22 = vld [vmem:[%s5240_s4 + $0x8] sm:$0xff] }
 0x458   :  { %v1714_v6 = vmul.f32 %v2809_v22, %v5497_v62 }
 0x459   :  { %2347 = vperm.xlu0 %2758, %v4396_v40   ;;  %2473 = vperm.xlu2 %2762, %v4482_v0   ;;  %v4812_v0 = vpop.permute.xlu2 %2225  ;;  %v2031_v42 = vpop.f32.mrf.mxu3 }
 0x45a   :  { %v4801_v13 = vpop.permute.xlu0 %2237  ;;  %v2032_v4 = vadd.f32 %v2801_v61, %v2031_v42  ;;  %v4864_v42 = vld [vmem:[%s5242_s6] ss:$0 sm:$0xff] }
 0x45b   :  { %1851 = vmatpush.xpose.msrb.mxu1 %v1816_v20  ;;  %2049 = vxpose.xlu1.b32.cont [13/16] (narrow) %v2026_v41, 8  ;;  %v2810_v41 = vld [vmem:[%s5241_s5 + $0x8] sm:$0xff] }
 0x45c   :  { %v1794_v20 = vmul.f32 %v2810_v41, %v5498_v3  ;;  %v5504_v41 = vld [vmem:[#allocation30_spill] sm:$0xff] }
 0x45f   :  { %1852 = vmatpush.xpose.msrb.mxu1 %v4451_v43  ;;  %v2805_v43 = vld [vmem:[%s5241_s5 + $0x30] sm:$0xff] }
 0x460   :  { %v1749_v29 = vmul.f32 %v2805_v43, %v5493_v7  ;;  %v5500_v7 = vld [vmem:[#allocation27_spill] sm:$0xff] }
 0x461   :  { %2355 = vperm.xlu0 %2758, %v4417_v45   ;;  %2481 = vperm.xlu2 %2762, %v4496_v8   ;;  %v4832_v49 = vpop.permute.xlu2 %2233  ;;  %v2034_v31 = vpop.f32.mrf.mxu3 }
 0x462   :  { %v4820_v28 = vpop.permute.xlu0 %2245  ;;  %v1813_v63 = vadd.f32 %v1797_v15, %v1749_v29  ;;  %v1810_v15 = vadd.f32 %v1794_v20, %v1746_v17  ;;  %v2818_v20 = vld [vmem:[%s5240_s4 + $0x38] sm:$0xff] }
 0x463   :  { %1853 = vmatpush.xpose.msrb.mxu1 %v1814_v12  ;;  %2050 = vxpose.xlu1.b32.cont [14/16] (narrow) %v2029_v30, 8  ;;  %v2035_v30 = vadd.f32 %v2801_v61, %v2034_v31  ;;  %v2813_v61 = vld [vmem:[%s5240_s4 + $0x10] sm:$0xff] }
 0x464   :  { %v1667_v29 = vmul.f32 %v2813_v61, %v5500_v7  ;;  %v2817_v31 = vld [vmem:[%s5240_s4 + $0x30] sm:$0xff]  ;;  %v2819_v61 = vld [vmem:[%s5240_s4 + $0x40] sm:$0xff] }
 0x465   :  { %v1669_v3 = vmul.f32 %v2817_v31, %v5504_v41  ;;  %v5507_v7 = vld [vmem:[#allocation31_spill] sm:$0xff]  ;;  %v2822_v31 = vld [vmem:[%s5240_s4 + $0x58] sm:$0xff]  ;;  %v5511_v41 = vld [vmem:[#allocation25_spill] sm:$0xff] }
 0x467   :  { %1854 = vmatpush.xpose.msrb.mxu1 %v1813_v63 }
 0x469   :  { %2367 = vperm.xlu0 %2758, %v4496_v8   ;;  %2489 = vperm.xlu2 %2762, %v4508_v18   ;;  %v5496_v8 = vld [vmem:[#allocation26_spill] sm:$0xff] }
 0x46a   :  { %v4834_v46 = vpop.permute.xlu0 %2253  ;;  %v1666_v5 = vmul.f32 %v2808_v35, %v5496_v8  ;;  %v5503_v35 = vld [vmem:[#allocation13_spill] sm:$0xff] }
 0x46b   :  { %1855 = vmatpush.xpose.msrb.mxu1 %v5495_v33  ;;  %2051 = vxpose.xlu1.b32.cont [15/16] (narrow) %v2032_v4, 8  ;;  %v4875_v4 = vpop.permute.xlu2 %2241  ;;  %v2816_v33 = vld [vmem:[%s5240_s4 + $0x28] sm:$0xff] }
 0x46c   :  { %v1730_v32 = vadd.f32 %v1714_v6, %v1666_v5  ;;  %v1716_v8 = vmul.f32 %v2816_v33, %v5503_v35  ;;  %v1118_v33 = vadd.f32 %v4173_v16, %v3996_v57  ;;  %v5512_v57 = vld [vmem:[#allocation18_spill] sm:$0xff] }
 0x46e   :  { %v1826_v43 = vmul.f32 %v4864_v42, %v1730_v32  ;;  %v1732_v62 = vadd.f32 %v1716_v8, %v1668_v54  ;;  %v5506_v32 = vld [vmem:[#allocation42_spill] sm:$0xff]  ;;  %v5509_v54 = vld [vmem:[#allocation12_spill] sm:$0xff]  ;;  %v2821_v8 = vld [vmem:[%s5240_s4 + $0x50] sm:$0xff] }
 0x46f   :  { %1856 = vmatpush.xpose.msrb.mxu1 %v1811_v34  ;;  %v5505_v34 = vld [vmem:[#allocation36_spill] sm:$0xff] }
 0x470   :  { %v1717_v21 = vmul.f32 %v2818_v20, %v5505_v34  ;;  %v1828_v53 = vmul.f32 %v4864_v42, %v1732_v62 }
 0x471   :  { %2375 = vperm.xlu0 %2758, %v4508_v18   ;;  %2501 = vperm.xlu2 %2762, %v4485_v48   ;;  %v2814_v48 = vld [vmem:[%s5240_s4 + $0x18] sm:$0xff]  ;;  %v5501_v18 = vld [vmem:[#allocation22_spill] sm:$0xff] }
 0x472   :  { %v4859_v12 = vpop.permute.xlu0 %2261  ;;  %v1715_v63 = vmul.f32 %v2814_v48, %v5501_v18  ;;  %v1733_v17 = vadd.f32 %v1717_v21, %v1669_v3  ;;  %v2820_v48 = vld [vmem:[%s5240_s4 + $0x48] sm:$0xff]  ;;  %v5508_v18 = vld [vmem:[#allocation44_spill] sm:$0xff]  ;;  %v1719_v3 = vmul.f32 %v2822_v31, %v5511_v41 }
 0x473   :  { %1857 = vmatpush.xpose.msrb.mxu1 %v1810_v15  ;;  %2052 = vxpose.xlu1.b32.end [16/16] (narrow) %v2035_v30, 8  ;;  %v4889_v22 = vpop.permute.xlu2 %2249  ;;  %v1114_v15 = vadd.f32 %v4173_v16, %v5506_v32 }
 0x474   :  { %v1731_v50 = vadd.f32 %v1715_v63, %v1667_v29  ;;  %v1670_v29 = vmul.f32 %v2819_v61, %v5507_v7  ;;  %v1718_v63 = vmul.f32 %v2820_v48, %v5508_v18  ;;  %v1829_v23 = vmul.f32 %v4864_v42, %v1733_v17  ;;  %v2824_v7 = vld [vmem:[%s5240_s4 + $0x68] sm:$0xff] }
 0x476   :  { %1858 = vmatmul.f32.vlgmr.msrb.gmra.mxu1 %v1826_v43  ;;  %v1827_v5 = vmul.f32 %v4864_v42, %v1731_v50 }
 0x479   :  { %2383 = vperm.xlu0 %2758, %v4521_v37  }
 0x47a   :  { %v4878_v10 = vpop.permute.xlu0 %2269 }
 0x47b   :  { %v4903_v30 = vpop.permute.xlu2 %2257 }
 0x47e   :  { %1861 = vmatmul.f32.gmra.mxu1 %v1827_v5  ;;  %v5510_v5 = vld [vmem:[#allocation33_spill] sm:$0xff] }
 0x47f   :  { %v1671_v62 = vmul.f32 %v2821_v8, %v5510_v5  ;;  %v2826_v5 = vld [vmem:[%s5240_s4 + $0x78] sm:$0xff] }
 0x481   :  { %2391 = vperm.xlu0 %2758, %v4541_v52   ;;  %v1735_v21 = vadd.f32 %v1719_v3, %v1671_v62  ;;  %v5517_v62 = vld [vmem:[#allocation46_spill] sm:$0xff] }
 0x482   :  { %v4892_v6 = vpop.permute.xlu0 %2277  ;;  %v1721_v31 = vmul.f32 %v2826_v5, %v5517_v62 }
 0x483   :  { %v4918_v38 = vpop.permute.xlu2 %2265 }
 0x486   :  { %1864 = vmatmul.f32.gmra.mxu1 %v1828_v53  ;;  %v1120_v53 = vadd.f32 %v4173_v16, %v4126_v36 }
 0x489   :  { %2761 = vset.pattern.permute.xlu0 %v5457_v51 }
 0x48a   :  { %1245 = vperm.xlu0 %2761, %v4004_v14   ;;  %v1734_v14 = vadd.f32 %v1718_v63, %v1670_v29  ;;  %v5514_v29 = vld [vmem:[#allocation41_spill] sm:$0xff] }
 0x48b   :  { %v1132_v43 = vpop.permute.xlu0 %1131  ;;  %v1720_v48 = vmul.f32 %v2824_v7, %v5514_v29  ;;  %v4943_v18 = vpop.permute.xlu2 %2273 }
 0x48c   :  { %v1194_v50 = vadd.f32 %v1132_v43, %v1114_v15  ;;  %v1830_v34 = vmul.f32 %v4864_v42, %v1734_v14  ;;  %v2823_v15 = vld [vmem:[%s5240_s4 + $0x60] sm:$0xff]  ;;  %v5513_v43 = vld [vmem:[#allocation35_spill] sm:$0xff]  ;;  %v1122_v14 = vadd.f32 %v4173_v16, %v4216_v2 }
 0x48d   :  { %v1672_v61 = vmul.f32 %v2823_v15, %v5513_v43  ;;  %v2828_v43 = vld [vmem:[%s5240_s4 + $0x88] sm:$0xff] }
 0x48e   :  { %1211 = vst [vmem:[#allocation2 + $0x100] sm:$0xff] %v1194_v50  ;;  %1867 = vmatmul.f32.gmra.mxu1 %v1829_v23  ;;  %v1831_v50 = vmul.f32 %v4864_v42, %v1735_v21  ;;  %v5515_v23 = vld [vmem:[#allocation20_spill] sm:$0xff]  ;;  %v1124_v21 = vadd.f32 %v4173_v16, %v4257_v58 }
 0x48f   :  { %v1736_v36 = vadd.f32 %v1720_v48, %v1672_v61  ;;  %v5520_v61 = vld [vmem:[#allocation15_spill] sm:$0xff] }
 0x490   :  { %v1722_v7 = vmul.f32 %v2828_v43, %v5520_v61 }
 0x491   :  { %v1832_v3 = vmul.f32 %v4864_v42, %v1736_v36  ;;  %v1126_v36 = vadd.f32 %v4173_v16, %v4291_v24 }
 0x492   :  { %1257 = vperm.xlu0 %2761, %v5509_v54  }
 0x493   :  { %v1148_v35 = vpop.permute.xlu0 %1147 }
 0x494   :  { %v1198_v20 = vadd.f32 %v1148_v35, %v1118_v33  ;;  %v2825_v33 = vld [vmem:[%s5240_s4 + $0x70] sm:$0xff]  ;;  %v5516_v35 = vld [vmem:[#allocation38_spill] sm:$0xff] }
 0x495   :  { %v1673_v8 = vmul.f32 %v2825_v33, %v5516_v35  ;;  %v2830_v35 = vld [vmem:[%s5240_s4 + $0x98] sm:$0xff] }
 0x496   :  { %1215 = vst [vmem:[#allocation2 + $0x120] sm:$0xff] %v1198_v20  ;;  %1870 = vmatmul.f32.gmra.mxu1 %v1830_v34  ;;  %v4958_v20 = vpop.permute.xlu2 %2331  ;;  %v5518_v34 = vld [vmem:[#allocation21_spill] sm:$0xff] }
 0x497   :  { %v1737_v2 = vadd.f32 %v1721_v31, %v1673_v8  ;;  %v5523_v8 = vld [vmem:[#allocation24_spill] sm:$0xff] }
 0x498   :  { %v1723_v5 = vmul.f32 %v2830_v35, %v5523_v8  ;;  %v5528_v35 = vld [vmem:[#allocation48_spill] sm:$0xff] }
 0x499   :  { %v1833_v48 = vmul.f32 %v4864_v42, %v1737_v2 }
 0x49a   :  { %1265 = vperm.xlu0 %2761, %v5512_v57  }
 0x49b   :  { %v1156_v17 = vpop.permute.xlu0 %1155 }
 0x49c   :  { %v1200_v63 = vadd.f32 %v1156_v17, %v1120_v53  ;;  %v2827_v53 = vld [vmem:[%s5240_s4 + $0x80] sm:$0xff]  ;;  %v5519_v17 = vld [vmem:[#allocation39_spill] sm:$0xff] }
 0x49d   :  { %v1674_v15 = vmul.f32 %v2827_v53, %v5519_v17  ;;  %v2832_v53 = vld [vmem:[%s5240_s4 + $0xa8] sm:$0xff]  ;;  %v5525_v17 = vld [vmem:[#allocation29_spill] sm:$0xff] }
 0x49e   :  { %1217 = vst [vmem:[#allocation2 + $0x130] sm:$0xff] %v1200_v63  ;;  %1873 = vmatmul.f32.gmra.mxu1 %v1831_v50  ;;  %v4972_v58 = vpop.permute.xlu2 %2339  ;;  %v5521_v50 = vld [vmem:[#allocation14_spill] sm:$0xff] }
 0x49f   :  { %v1738_v63 = vadd.f32 %v1722_v7, %v1674_v15  ;;  %v1724_v15 = vmul.f32 %v2832_v53, %v5525_v17  ;;  %v2833_v7 = vld [vmem:[%s5240_s4 + $0xb0] sm:$0xff]  ;;  %v5531_v53 = vld [vmem:[#allocation32_spill] sm:$0xff] }
 0x4a1   :  { %v1834_v31 = vmul.f32 %v4864_v42, %v1738_v63  ;;  %v2834_v63 = vld [vmem:[%s5240_s4 + $0xb8] sm:$0xff] }
 0x4a2   :  { %1273 = vperm.xlu0 %2761, %v5515_v23  }
 0x4a3   :  { %v1164_v54 = vpop.permute.xlu0 %1163 }
 0x4a4   :  { %v1202_v41 = vadd.f32 %v1164_v54, %v1122_v14  ;;  %v2829_v14 = vld [vmem:[%s5240_s4 + $0x90] sm:$0xff]  ;;  %v5522_v54 = vld [vmem:[#allocation40_spill] sm:$0xff] }
 0x4a5   :  { %v1675_v33 = vmul.f32 %v2829_v14, %v5522_v54 }
 0x4a6   :  { %1219 = vst [vmem:[#allocation2 + $0x140] sm:$0xff] %v1202_v41  ;;  %1876 = vmatmul.f32.gmra.mxu1 %v1832_v3  ;;  %v4986_v24 = vpop.permute.xlu2 %2343  ;;  %v1128_v3 = vadd.f32 %v4173_v16, %v4330_v9 }
 0x4a7   :  { %v1739_v41 = vadd.f32 %v1723_v5, %v1675_v33  ;;  %v2835_v33 = vld [vmem:[%s5240_s4 + $0xc0] sm:$0xff]  ;;  %v2836_v5 = vld [vmem:[%s5240_s4 + $0xc8] sm:$0xff] }
 0x4a8   :  { %v1678_v8 = vmul.f32 %v2835_v33, %v5528_v35  ;;  %v5534_v33 = vld [vmem:[#allocation10_spill] sm:$0xff] }
 0x4a9   :  { %v1835_v61 = vmul.f32 %v4864_v42, %v1739_v41 }
 0x4aa   :  { %1281 = vperm.xlu0 %2761, %v5518_v34   ;;  %v2831_v34 = vld [vmem:[%s5240_s4 + $0xa0] sm:$0xff] }
 0x4ab   :  { %v1172_v57 = vpop.permute.xlu0 %1171 }
 0x4ac   :  { %v1204_v29 = vadd.f32 %v1172_v57, %v1124_v21  ;;  %v5524_v21 = vld [vmem:[#allocation43_spill] sm:$0xff] }
 0x4ad   :  { %v1676_v57 = vmul.f32 %v2831_v34, %v5524_v21  ;;  %v5530_v34 = vld [vmem:[#allocation5_spill] sm:$0xff] }
 0x4ae   :  { %1221 = vst [vmem:[#allocation2 + $0x150] sm:$0xff] %v1204_v29  ;;  %1879 = vmatmul.f32.gmra.mxu1 %v1833_v48  ;;  %v5526_v29 = vld [vmem:[#allocation45_spill] sm:$0xff] }
 0x4af   :  { %v1677_v48 = vmul.f32 %v2833_v7, %v5526_v29  ;;  %v2840_v29 = vld [vmem:[%s5240_s4 + $0xe8] sm:$0xff] }
 0x4b2   :  { %1289 = vperm.xlu0 %2761, %v5521_v50   ;;  %v5527_v50 = vld [vmem:[#allocation16_spill] sm:$0xff] }
 0x4b3   :  { %v1180_v23 = vpop.permute.xlu0 %1179 }
 0x4b4   :  { %v1206_v62 = vadd.f32 %v1180_v23, %v1126_v36  ;;  %v1725_v36 = vmul.f32 %v2834_v63, %v5527_v50  ;;  %v5011_v23 = vpop.permute.xlu2 %2351 }
 0x4b6   :  { %1223 = vst [vmem:[#allocation2 + $0x160] sm:$0xff] %v1206_v62  ;;  %1882 = vmatmul.f32.gmra.mxu1 %v1834_v31  ;;  %v5529_v62 = vld [vmem:[#allocation47_spill] sm:$0xff] }
 0x4b7   :  { %v1726_v31 = vmul.f32 %v2836_v5, %v5529_v62  ;;  %v5535_v5 = vld [vmem:[#allocation7_spill] sm:$0xff] }
 0x4ba   :  { %1301 = vperm.xlu0 %2761, %v4441_v39   ;;  %v1740_v39 = vadd.f32 %v1724_v15, %v1676_v57  ;;  %v2838_v57 = vld [vmem:[%s5240_s4 + $0xd8] sm:$0xff] }
 0x4bb   :  { %v1188_v2 = vpop.permute.xlu0 %1187 }
 0x4bc   :  { %v1208_v43 = vadd.f32 %v1188_v2, %v1128_v3  ;;  %v1836_v14 = vmul.f32 %v4864_v42, %v1740_v39  ;;  %v2837_v2 = vld [vmem:[%s5240_s4 + $0xd0] sm:$0xff]  ;;  %v5532_v39 = vld [vmem:[#allocation37_spill] sm:$0xff] }
 0x4bd   :  { %v1679_v21 = vmul.f32 %v2837_v2, %v5530_v34 }
 0x4be   :  { %1225 = vst [vmem:[#allocation2 + $0x170] sm:$0xff] %v1208_v43  ;;  %1885 = vmatmul.f32.gmra.mxu1 %v1835_v61  ;;  %v2839_v61 = vld [vmem:[%s5240_s4 + $0xe0] sm:$0xff] }
 0x4bf   :  { %v1680_v7 = vmul.f32 %v2839_v61, %v5532_v39 }
 0x4c2   :  { %2449 = vperm.xlu0 %2761, %v4375_v47   ;;  %v1741_v47 = vadd.f32 %v1725_v36, %v1677_v48  ;;  %v5533_v48 = vld [vmem:[#allocation6_spill] sm:$0xff] }
 0x4c3   :  { %v5001_v16 = vpop.permute.xlu0 %2335  ;;  %v1728_v63 = vmul.f32 %v2840_v29, %v5533_v48  ;;  %v5536_v48 = vld [vmem:[#allocation64_spill] sm:$0xff] }
 0x4c4   :  { %v1837_v41 = vmul.f32 %v4864_v42, %v1741_v47  ;;  %v2841_v47 = vld [vmem:[%s5240_s4 + $0xf0] sm:$0xff] }
 0x4c5   :  { %v1744_v36 = vadd.f32 %v1728_v63, %v1680_v7  ;;  %v1681_v35 = vmul.f32 %v2841_v47, %v5534_v33  ;;  %v1228_v33 = vadd.f32 %v4214_v25, %v5506_v32 }
 0x4c6   :  { %1888 = vmatmul.f32.gmra.mxu1 %v1836_v14  ;;  %2763 = vset.pattern.permute.xlu1 %v5457_v51  ;;  %v5028_v51 = vpop.permute.xlu2 %2363 }
 0x4ca   :  { %2461 = vperm.xlu0 %2761, %v4396_v40   ;;  %v1742_v40 = vadd.f32 %v1726_v31, %v1678_v8  ;;  %v2842_v8 = vld [vmem:[%s5240_s4 + $0xf8] sm:$0xff]  ;;  %v1840_v31 = vmul.f32 %v4864_v42, %v1744_v36  ;;  %s2874_s4 = smov [#allocation2]  }
 0x4cb   :  { %v5016_v54 = vpop.permute.xlu0 %2347  ;;  %v1729_v62 = vmul.f32 %v2842_v8, %v5535_v5  ;;  %s2545_s15 = sshll.u32 %s2874_s4, 4  ;;  %s2546_s15 = int_to_ptr.vmem [resolvable:$true] %s2545_s15 }
 0x4cc   :  { %v1838_v17 = vmul.f32 %v4864_v42, %v1742_v40 }
 0x4cd   :  { %2497 = vperm.xlu1 %2763, %v4521_v37   ;;  %v1727_v37 = vmul.f32 %v2838_v57, %v5531_v53 }
 0x4ce   :  { %1891 = vmatmul.f32.gmra.mxu1 %v1837_v41  ;;  %v5042_v43 = vpop.permute.xlu2 %2371  ;;  %v5070_v41 = vpop.permute.xlu1 %2359 }
 0x4cf   :  { %v1743_v15 = vadd.f32 %v1727_v37, %v1679_v21 }
 0x4d1   :  { %v1839_v50 = vmul.f32 %v4864_v42, %v1743_v15 }
 0x4d2   :  { %2469 = vperm.xlu0 %2761, %v4417_v45  }
 0x4d3   :  { %v5031_v3 = vpop.permute.xlu0 %2355 }
 0x4d6   :  { %1894 = vmatmul.f32.gmra.mxu1 %v1838_v17  ;;  %v5056_v14 = vpop.permute.xlu2 %2379  ;;  %v2053_v21 = vpop.trf.xlu1 }
 0x4d7   :  { %v5078_v57 = vperm.slane %v2053_v21, 0  ;;  %v5080_v53 = vperm.slane %v2053_v21, 1  ;;  %v5082_v37 = vperm.slane %v2053_v21, 2  ;;  %v5084_v17 = vperm.slane %v2053_v21, 3  ;;  %v5538_v21 = vld [vmem:[#allocation17_spill] sm:$0xff] }
 0x4da   :  { %2477 = vperm.xlu0 %2761, %v4432_v60  }
 0x4db   :  { %v5045_v45 = vpop.permute.xlu0 %2367 }
 0x4de   :  { %1897 = vmatmul.f32.gmra.mxu1 %v1839_v50  ;;  %v5075_v2 = vpop.permute.xlu2 %2387 }
 0x4e2   :  { %2485 = vperm.xlu0 %2761, %v4459_v19   ;;  %v1745_v19 = vadd.f32 %v1729_v62, %v1681_v35  ;;  %v5537_v62 = vld [vmem:[#allocation58_spill] sm:$0xff] }
 0x4e3   :  { %v5059_v60 = vpop.permute.xlu0 %2375 }
 0x4e4   :  { %v1841_v34 = vmul.f32 %v4864_v42, %v1745_v19 }
 0x4e6   :  { %1900 = vmatmul.f32.gmra.mxu1 %v1840_v31  ;;  %v2446_v29 = vpop.permute.xlu2 %2445 }
 0x4ea   :  { %2493 = vperm.xlu0 %2761, %v4472_v11  }
 0x4eb   :  { %v5073_v40 = vpop.permute.xlu0 %2383 }
 0x4ee   :  { %1903 = vmatmul.f32.gmra.mxu1 %v1841_v34 }
 0x4f2   :  { %2505 = vperm.xlu0 %2761, %v4541_v52  }
 0x4f3   :  { %v1859_v15 = vpop.f32.mrf.mxu1  ;;  %v5087_v11 = vpop.permute.xlu0 %2391 }
 0x4f4   :  { %v2070_v61 = vadd.f32 %v5078_v57, %v1859_v15  ;;  %v2200_v39 = vadd.f32 %v5080_v53, %v1859_v15  ;;  %v2314_v42 = vadd.f32 %v5082_v37, %v1859_v15  ;;  %v2428_v7 = vadd.f32 %v5084_v17, %v1859_v15 }
 0x4f5   :  { %v1231_v15 = vadd.f32 %v4214_v25, %v5538_v21 }
 0x4f6   :  { %v2166_v63 = vadd.f32 %v5536_v48, %v2070_v61  ;;  %v2280_v50 = vadd.f32 %v4757_v27, %v2200_v39  ;;  %v2394_v36 = vadd.f32 %v4958_v20, %v2314_v42  ;;  %v2508_v47 = vadd.f32 %v2446_v29, %v2428_v7  ;;  %v2454_v61 = vpop.permute.xlu2 %2453 }
 0x4f8   :  { %2183 = vst [vmem:[#allocation2 + $0x200] sm:$0xff] %v2166_v63 }
 0x4f9   :  { %2297 = vst [vmem:[#allocation2 + $0x280] sm:$0xff] %v2280_v50 }
 0x4fa   :  { %2411 = vst [vmem:[#allocation2 + $0x300] sm:$0xff] %v2394_v36 }
 0x4fb   :  { %2525 = vst [vmem:[#allocation2 + $0x380] sm:$0xff] %v2508_v47  ;;  %v5096_v52 = vpop.f32.mrf.mxu1 }
 0x4fc   :  { %v2071_v35 = vadd.f32 %v5078_v57, %v5096_v52  ;;  %v2201_v8 = vadd.f32 %v5080_v53, %v5096_v52  ;;  %v2315_v27 = vadd.f32 %v5082_v37, %v5096_v52  ;;  %v1246_v20 = vpop.permute.xlu0 %1245 }
 0x4fd   :  { %v1308_v5 = vadd.f32 %v1246_v20, %v1228_v33 }
 0x4fe   :  { %v2167_v31 = vadd.f32 %v5537_v62, %v2071_v35  ;;  %v2281_v19 = vadd.f32 %v4790_v56, %v2201_v8  ;;  %v2395_v34 = vadd.f32 %v5001_v16, %v2315_v27  ;;  %v5539_v16 = vld [vmem:[#allocation66_spill] sm:$0xff]  ;;  %v5540_v35 = vld [vmem:[#allocation11_spill] sm:$0xff] }
 0x4ff   :  { %1325 = vst [vmem:[#allocation2 + $0x180] sm:$0xff] %v1308_v5  ;;  %v1233_v8 = vadd.f32 %v4214_v25, %v5540_v35 }
 0x500   :  { %2184 = vst [vmem:[#allocation2 + $0x208] sm:$0xff] %v2167_v31  ;;  %v2458_v31 = vpop.permute.xlu2 %2457 }
 0x501   :  { %2298 = vst [vmem:[#allocation2 + $0x288] sm:$0xff] %v2281_v19 }
 0x502   :  { %2412 = vst [vmem:[#allocation2 + $0x308] sm:$0xff] %v2395_v34 }
 0x503   :  { %v1865_v32 = vpop.f32.mrf.mxu1 }
 0x504   :  { %v2072_v39 = vadd.f32 %v5078_v57, %v1865_v32  ;;  %v2202_v42 = vadd.f32 %v5080_v53, %v1865_v32  ;;  %v2316_v7 = vadd.f32 %v5082_v37, %v1865_v32  ;;  %v2430_v29 = vadd.f32 %v5084_v17, %v1865_v32  ;;  %v1258_v56 = vpop.permute.xlu0 %1257 }
 0x505   :  { %v1311_v48 = vadd.f32 %v1258_v56, %v1231_v15 }
 0x506   :  { %v2168_v63 = vadd.f32 %v5539_v16, %v2072_v39  ;;  %v2282_v50 = vadd.f32 %v4812_v0, %v2202_v42  ;;  %v2396_v36 = vadd.f32 %v4972_v58, %v2316_v7  ;;  %v2510_v47 = vadd.f32 %v2454_v61, %v2430_v29  ;;  %v5541_v61 = vld [vmem:[#allocation8_spill] sm:$0xff]  ;;  %v5542_v29 = vld [vmem:[#allocation59_spill] sm:$0xff] }
 0x507   :  { %1328 = vst [vmem:[#allocation2 + $0x198] sm:$0xff] %v1311_v48  ;;  %v1235_v39 = vadd.f32 %v4214_v25, %v5541_v61 }
 0x508   :  { %2185 = vst [vmem:[#allocation2 + $0x210] sm:$0xff] %v2168_v63 }
 0x509   :  { %2299 = vst [vmem:[#allocation2 + $0x290] sm:$0xff] %v2282_v50  ;;  %v5543_v50 = vld [vmem:[#allocation9_spill] sm:$0xff] }
 0x50a   :  { %2413 = vst [vmem:[#allocation2 + $0x310] sm:$0xff] %v2396_v36  ;;  %v1237_v36 = vadd.f32 %v4214_v25, %v5543_v50 }
 0x50b   :  { %2527 = vst [vmem:[#allocation2 + $0x390] sm:$0xff] %v2510_v47  ;;  %v1868_v33 = vpop.f32.mrf.mxu1 }
 0x50c   :  { %v2073_v27 = vadd.f32 %v5078_v57, %v1868_v33  ;;  %v2203_v20 = vadd.f32 %v5080_v53, %v1868_v33  ;;  %v2317_v5 = vadd.f32 %v5082_v37, %v1868_v33  ;;  %v2431_v0 = vadd.f32 %v5084_v17, %v1868_v33  ;;  %v1266_v62 = vpop.permute.xlu0 %1265 }
 0x50d   :  { %v1313_v58 = vadd.f32 %v1266_v62, %v1233_v8 }
 0x50e   :  { %v2169_v19 = vadd.f32 %v4653_v55, %v2073_v27  ;;  %v2283_v34 = vadd.f32 %v4780_v44, %v2203_v20  ;;  %v2397_v32 = vadd.f32 %v4986_v24, %v2317_v5  ;;  %v2511_v21 = vadd.f32 %v2458_v31, %v2431_v0  ;;  %v2466_v20 = vpop.permute.xlu2 %2465 }
 0x50f   :  { %1330 = vst [vmem:[#allocation2 + $0x1a8] sm:$0xff] %v1313_v58 }
 0x510   :  { %2186 = vst [vmem:[#allocation2 + $0x218] sm:$0xff] %v2169_v19  ;;  %v5545_v19 = vld [vmem:[#allocation50_spill] sm:$0xff] }
 0x511   :  { %2300 = vst [vmem:[#allocation2 + $0x298] sm:$0xff] %v2283_v34  ;;  %v1239_v34 = vadd.f32 %v4214_v25, %v5545_v19 }
 0x512   :  { %2414 = vst [vmem:[#allocation2 + $0x318] sm:$0xff] %v2397_v32 }
 0x513   :  { %2528 = vst [vmem:[#allocation2 + $0x398] sm:$0xff] %v2511_v21  ;;  %v5127_v15 = vpop.f32.mrf.mxu1 }
 0x514   :  { %v2074_v42 = vadd.f32 %v5078_v57, %v5127_v15  ;;  %v2204_v55 = vadd.f32 %v5080_v53, %v5127_v15  ;;  %v2318_v44 = vadd.f32 %v5082_v37, %v5127_v15  ;;  %v1274_v24 = vpop.permute.xlu0 %1273 }
 0x515   :  { %v1315_v7 = vadd.f32 %v1274_v24, %v1235_v39  ;;  %v5546_v39 = vld [vmem:[#allocation60_spill] sm:$0xff] }
 0x516   :  { %v2170_v56 = vadd.f32 %v5542_v29, %v2074_v42  ;;  %v2284_v48 = vadd.f32 %v4832_v49, %v2204_v55  ;;  %v2398_v16 = vadd.f32 %v5016_v54, %v2318_v44  ;;  %v5544_v54 = vld [vmem:[#allocation67_spill] sm:$0xff]  ;;  %v2474_v50 = vpop.permute.xlu2 %2473 }
 0x517   :  { %1332 = vst [vmem:[#allocation2 + $0x1b8] sm:$0xff] %v1315_v7  ;;  %v1242_v7 = vadd.f32 %v4214_v25, %v4330_v9  ;;  %v2429_v25 = vadd.f32 %v5084_v17, %v5096_v52  ;;  %v2432_v52 = vadd.f32 %v5084_v17, %v5127_v15 }
 0x518   :  { %2187 = vst [vmem:[#allocation2 + $0x220] sm:$0xff] %v2170_v56 }
 0x519   :  { %2301 = vst [vmem:[#allocation2 + $0x2a0] sm:$0xff] %v2284_v48 }
 0x51a   :  { %2415 = vst [vmem:[#allocation2 + $0x320] sm:$0xff] %v2398_v16 }
 0x51b   :  { %v1874_v63 = vpop.f32.mrf.mxu1 }
 0x51c   :  { %v2075_v47 = vadd.f32 %v5078_v57, %v1874_v63  ;;  %v2205_v33 = vadd.f32 %v5080_v53, %v1874_v63  ;;  %v2319_v35 = vadd.f32 %v5082_v37, %v1874_v63  ;;  %v2433_v8 = vadd.f32 %v5084_v17, %v1874_v63  ;;  %v1282_v27 = vpop.permute.xlu0 %1281 }
 0x51d   :  { %v1317_v49 = vadd.f32 %v1282_v27, %v1237_v36 }
 0x51e   :  { %v2171_v5 = vadd.f32 %v5544_v54, %v2075_v47  ;;  %v2285_v0 = vadd.f32 %v4801_v13, %v2205_v33  ;;  %v2399_v62 = vadd.f32 %v5011_v23, %v2319_v35  ;;  %v2513_v58 = vadd.f32 %v2466_v20, %v2433_v8  ;;  %v5548_v54 = vld [vmem:[#allocation61_spill] sm:$0xff] }
 0x51f   :  { %1334 = vst [vmem:[#allocation2 + $0x1c8] sm:$0xff] %v1317_v49 }
 0x520   :  { %2188 = vst [vmem:[#allocation2 + $0x228] sm:$0xff] %v2171_v5 }
 0x521   :  { %2302 = vst [vmem:[#allocation2 + $0x2a8] sm:$0xff] %v2285_v0 }
 0x522   :  { %2416 = vst [vmem:[#allocation2 + $0x328] sm:$0xff] %v2399_v62 }
 0x523   :  { %2530 = vst [vmem:[#allocation2 + $0x3a8] sm:$0xff] %v2513_v58  ;;  %v5149_v31 = vpop.f32.mrf.mxu1 }
 0x524   :  { %v2076_v32 = vadd.f32 %v5078_v57, %v5149_v31  ;;  %v2206_v21 = vadd.f32 %v5080_v53, %v5149_v31  ;;  %v2320_v13 = vadd.f32 %v5082_v37, %v5149_v31  ;;  %v1290_v23 = vpop.permute.xlu0 %1289 }
 0x525   :  { %v1319_v61 = vadd.f32 %v1290_v23, %v1239_v34 }
 0x526   :  { %v2172_v42 = vadd.f32 %v5546_v39, %v2076_v32  ;;  %v2286_v55 = vadd.f32 %v4875_v4, %v2206_v21  ;;  %v2400_v44 = vadd.f32 %v5031_v3, %v2320_v13  ;;  %v5547_v3 = vld [vmem:[#allocation68_spill] sm:$0xff]  ;;  %v2482_v13 = vpop.permute.xlu2 %2481 }
 0x527   :  { %1336 = vst [vmem:[#allocation2 + $0x1d8] sm:$0xff] %v1319_v61 }
 0x528   :  { %2189 = vst [vmem:[#allocation2 + $0x230] sm:$0xff] %v2172_v42 }
 0x529   :  { %2303 = vst [vmem:[#allocation2 + $0x2b0] sm:$0xff] %v2286_v55  ;;  %v2434_v55 = vadd.f32 %v5084_v17, %v5149_v31 }
 0x52a   :  { %2417 = vst [vmem:[#allocation2 + $0x330] sm:$0xff] %v2400_v44 }
 0x52b   :  { %v1880_v24 = vpop.f32.mrf.mxu1 }
 0x52c   :  { %v2077_v29 = vadd.f32 %v5078_v57, %v1880_v24  ;;  %v2207_v56 = vadd.f32 %v5080_v53, %v1880_v24  ;;  %v2321_v48 = vadd.f32 %v5082_v37, %v1880_v24  ;;  %v2435_v16 = vadd.f32 %v5084_v17, %v1880_v24  ;;  %v1302_v63 = vpop.permute.xlu0 %1301 }
 0x52d   :  { %v1322_v4 = vadd.f32 %v1302_v63, %v1242_v7 }
 0x52e   :  { %v2173_v36 = vadd.f32 %v5547_v3, %v2077_v29  ;;  %v2287_v47 = vadd.f32 %v4820_v28, %v2207_v56  ;;  %v2401_v33 = vadd.f32 %v5070_v41, %v2321_v48  ;;  %v2515_v35 = vadd.f32 %v2474_v50, %v2435_v16  ;;  %v5550_v56 = vld [vmem:[#allocation62_spill] sm:$0xff] }
 0x52f   :  { %1339 = vst [vmem:[#allocation2 + $0x1f0] sm:$0xff] %v1322_v4 }
 0x530   :  { %2190 = vst [vmem:[#allocation2 + $0x238] sm:$0xff] %v2173_v36 }
 0x531   :  { %2304 = vst [vmem:[#allocation2 + $0x2b8] sm:$0xff] %v2287_v47 }
 0x532   :  { %2418 = vst [vmem:[#allocation2 + $0x338] sm:$0xff] %v2401_v33 }
 0x533   :  { %2532 = vst [vmem:[#allocation2 + $0x3b8] sm:$0xff] %v2515_v35  ;;  %v1883_v9 = vpop.f32.mrf.mxu1 }
 0x534   :  { %v2078_v8 = vadd.f32 %v5078_v57, %v1883_v9  ;;  %v2208_v27 = vadd.f32 %v5080_v53, %v1883_v9  ;;  %v2322_v49 = vadd.f32 %v5082_v37, %v1883_v9  ;;  %v2450_v20 = vpop.permute.xlu0 %2449  ;;  %v2436_v31 = vadd.f32 %v5084_v17, %v1883_v9 }
 0x535   :  { %v2509_v28 = vadd.f32 %v2450_v20, %v2429_v25 }
 0x536   :  { %v2174_v41 = vadd.f32 %v5548_v54, %v2078_v8  ;;  %v2288_v5 = vadd.f32 %v4889_v22, %v2208_v27  ;;  %v2402_v0 = vadd.f32 %v5028_v51, %v2322_v49  ;;  %v5549_v51 = vld [vmem:[#allocation69_spill] sm:$0xff] }
 0x537   :  { %2526 = vst [vmem:[#allocation2 + $0x388] sm:$0xff] %v2509_v28 }
 0x538   :  { %2191 = vst [vmem:[#allocation2 + $0x240] sm:$0xff] %v2174_v41 }
 0x539   :  { %2305 = vst [vmem:[#allocation2 + $0x2c0] sm:$0xff] %v2288_v5 }
 0x53a   :  { %2419 = vst [vmem:[#allocation2 + $0x340] sm:$0xff] %v2402_v0 }
 0x53b   :  { %v1886_v62 = vpop.f32.mrf.mxu1 }
 0x53c   :  { %v2079_v58 = vadd.f32 %v5078_v57, %v1886_v62  ;;  %v2209_v19 = vadd.f32 %v5080_v53, %v1886_v62  ;;  %v2323_v34 = vadd.f32 %v5082_v37, %v1886_v62  ;;  %v2437_v32 = vadd.f32 %v5084_v17, %v1886_v62  ;;  %v2462_v21 = vpop.permute.xlu0 %2461 }
 0x53d   :  { %v2512_v22 = vadd.f32 %v2462_v21, %v2432_v52 }
 0x53e   :  { %v2175_v23 = vadd.f32 %v5549_v51, %v2079_v58  ;;  %v2289_v61 = vadd.f32 %v4834_v46, %v2209_v19  ;;  %v2403_v39 = vadd.f32 %v5045_v45, %v2323_v34  ;;  %v2517_v42 = vadd.f32 %v2482_v13, %v2437_v32 }
 0x53f   :  { %2529 = vst [vmem:[#allocation2 + $0x3a0] sm:$0xff] %v2512_v22 }
 0x540   :  { %2192 = vst [vmem:[#allocation2 + $0x248] sm:$0xff] %v2175_v23 }
 0x541   :  { %2306 = vst [vmem:[#allocation2 + $0x2c8] sm:$0xff] %v2289_v61 }
 0x542   :  { %2420 = vst [vmem:[#allocation2 + $0x348] sm:$0xff] %v2403_v39 }
 0x543   :  { %2534 = vst [vmem:[#allocation2 + $0x3c8] sm:$0xff] %v2517_v42  ;;  %v1889_v15 = vpop.f32.mrf.mxu1 }
 0x544   :  { %v2080_v44 = vadd.f32 %v5078_v57, %v1889_v15  ;;  %v2210_v24 = vadd.f32 %v5080_v53, %v1889_v15  ;;  %v2324_v7 = vadd.f32 %v5082_v37, %v1889_v15  ;;  %v2470_v29 = vpop.permute.xlu0 %2469  ;;  %v2438_v27 = vadd.f32 %v5084_v17, %v1889_v15 }
 0x545   :  { %v2514_v46 = vadd.f32 %v2470_v29, %v2434_v55  ;;  %v5552_v55 = vld [vmem:[#allocation65_spill] sm:$0xff] }
 0x546   :  { %v2176_v45 = vadd.f32 %v5550_v56, %v2080_v44  ;;  %v2290_v48 = vadd.f32 %v4903_v30, %v2210_v24  ;;  %v2404_v16 = vadd.f32 %v5042_v43, %v2324_v7  ;;  %v2490_v30 = vpop.permute.xlu2 %2489 }
 0x547   :  { %2531 = vst [vmem:[#allocation2 + $0x3b0] sm:$0xff] %v2514_v46 }
 0x548   :  { %2193 = vst [vmem:[#allocation2 + $0x250] sm:$0xff] %v2176_v45 }
 0x549   :  { %2307 = vst [vmem:[#allocation2 + $0x2d0] sm:$0xff] %v2290_v48 }
 0x54a   :  { %2421 = vst [vmem:[#allocation2 + $0x350] sm:$0xff] %v2404_v16 }
 0x54b   :  { %v1892_v63 = vpop.f32.mrf.mxu1 }
 0x54c   :  { %v2081_v4 = vadd.f32 %v5078_v57, %v1892_v63  ;;  %v2211_v50 = vadd.f32 %v5080_v53, %v1892_v63  ;;  %v2325_v3 = vadd.f32 %v5082_v37, %v1892_v63  ;;  %v2439_v36 = vadd.f32 %v5084_v17, %v1892_v63  ;;  %v2478_v47 = vpop.permute.xlu0 %2477 }
 0x54d   :  { %v2516_v33 = vadd.f32 %v2478_v47, %v2436_v31 }
 0x54e   :  { %v2177_v43 = vadd.f32 %v4706_v26, %v2081_v4  ;;  %v2291_v35 = vadd.f32 %v4859_v12, %v2211_v50  ;;  %v2405_v25 = vadd.f32 %v5059_v60, %v2325_v3  ;;  %v2519_v8 = vadd.f32 %v2490_v30, %v2439_v36  ;;  %v5551_v12 = vld [vmem:[#allocation63_spill] sm:$0xff] }
 0x54f   :  { %2533 = vst [vmem:[#allocation2 + $0x3c0] sm:$0xff] %v2516_v33 }
 0x550   :  { %2194 = vst [vmem:[#allocation2 + $0x258] sm:$0xff] %v2177_v43 }
 0x551   :  { %2308 = vst [vmem:[#allocation2 + $0x2d8] sm:$0xff] %v2291_v35 }
 0x552   :  { %2422 = vst [vmem:[#allocation2 + $0x358] sm:$0xff] %v2405_v25 }
 0x553   :  { %2536 = vst [vmem:[#allocation2 + $0x3d8] sm:$0xff] %v2519_v8  ;;  %v1895_v9 = vpop.f32.mrf.mxu1 }
 0x554   :  { %v2082_v49 = vadd.f32 %v5078_v57, %v1895_v9  ;;  %v2212_v20 = vadd.f32 %v5080_v53, %v1895_v9  ;;  %v2326_v28 = vadd.f32 %v5082_v37, %v1895_v9  ;;  %v2486_v26 = vpop.permute.xlu0 %2485  ;;  %v2440_v62 = vadd.f32 %v5084_v17, %v1895_v9 }
 0x555   :  { %v2518_v54 = vadd.f32 %v2486_v26, %v2438_v27 }
 0x556   :  { %v2178_v41 = vadd.f32 %v5551_v12, %v2082_v49  ;;  %v2292_v60 = vadd.f32 %v4918_v38, %v2212_v20  ;;  %v2406_v5 = vadd.f32 %v5056_v14, %v2326_v28  ;;  %v2498_v38 = vpop.permute.xlu1 %2497 }
 0x557   :  { %2535 = vst [vmem:[#allocation2 + $0x3d0] sm:$0xff] %v2518_v54 }
 0x558   :  { %2195 = vst [vmem:[#allocation2 + $0x260] sm:$0xff] %v2178_v41 }
 0x559   :  { %2309 = vst [vmem:[#allocation2 + $0x2e0] sm:$0xff] %v2292_v60 }
 0x55a   :  { %2423 = vst [vmem:[#allocation2 + $0x360] sm:$0xff] %v2406_v5 }
 0x55b   :  { %v1898_v0 = vpop.f32.mrf.mxu1 }
 0x55c   :  { %v2083_v52 = vadd.f32 %v5078_v57, %v1898_v0  ;;  %v2213_v58 = vadd.f32 %v5080_v53, %v1898_v0  ;;  %v2327_v19 = vadd.f32 %v5082_v37, %v1898_v0  ;;  %v2441_v34 = vadd.f32 %v5084_v17, %v1898_v0  ;;  %v2494_v32 = vpop.permute.xlu0 %2493 }
 0x55d   :  { %v2520_v21 = vadd.f32 %v2494_v32, %v2440_v62 }
 0x55e   :  { %v2179_v14 = vadd.f32 %v4737_v1, %v2083_v52  ;;  %v2293_v22 = vadd.f32 %v4878_v10, %v2213_v58  ;;  %v2407_v13 = vadd.f32 %v5073_v40, %v2327_v19  ;;  %v2521_v51 = vadd.f32 %v2498_v38, %v2441_v34  ;;  %v2502_v1 = vpop.permute.xlu2 %2501 }
 0x55f   :  { %2537 = vst [vmem:[#allocation2 + $0x3e0] sm:$0xff] %v2520_v21 }
 0x560   :  { %2196 = vst [vmem:[#allocation2 + $0x268] sm:$0xff] %v2179_v14 }
 0x561   :  { %2310 = vst [vmem:[#allocation2 + $0x2e8] sm:$0xff] %v2293_v22 }
 0x562   :  { %2424 = vst [vmem:[#allocation2 + $0x368] sm:$0xff] %v2407_v13 }
 0x563   :  { %2538 = vst [vmem:[#allocation2 + $0x3e8] sm:$0xff] %v2521_v51  ;;  %v1901_v23 = vpop.f32.mrf.mxu1 }
 0x564   :  { %v2084_v61 = vadd.f32 %v5078_v57, %v1901_v23  ;;  %v2214_v39 = vadd.f32 %v5080_v53, %v1901_v23  ;;  %v2328_v42 = vadd.f32 %v5082_v37, %v1901_v23  ;;  %v2442_v15 = vadd.f32 %v5084_v17, %v1901_v23 }
 0x566   :  { %v2180_v10 = vadd.f32 %v5552_v55, %v2084_v61  ;;  %v2294_v40 = vadd.f32 %v4943_v18, %v2214_v39  ;;  %v2408_v44 = vadd.f32 %v5075_v2, %v2328_v42  ;;  %v2522_v24 = vadd.f32 %v2502_v1, %v2442_v15  ;;  %v2506_v18 = vpop.permute.xlu0 %2505 }
 0x568   :  { %2197 = vst [vmem:[#allocation2 + $0x270] sm:$0xff] %v2180_v10 }
 0x569   :  { %2311 = vst [vmem:[#allocation2 + $0x2f0] sm:$0xff] %v2294_v40 }
 0x56a   :  { %2425 = vst [vmem:[#allocation2 + $0x370] sm:$0xff] %v2408_v44 }
 0x56b   :  { %2539 = vst [vmem:[#allocation2 + $0x3f0] sm:$0xff] %v2522_v24  ;;  %v1904_v7 = vpop.f32.mrf.mxu1 }
 0x56c   :  { %v2085_v29 = vadd.f32 %v5078_v57, %v1904_v7  ;;  %v2215_v46 = vadd.f32 %v5080_v53, %v1904_v7  ;;  %v2329_v56 = vadd.f32 %v5082_v37, %v1904_v7  ;;  %v2443_v45 = vadd.f32 %v5084_v17, %v1904_v7 }
 0x56e   :  { %v2181_v2 = vadd.f32 %v4763_v59, %v2085_v29  ;;  %v2295_v48 = vadd.f32 %v4892_v6, %v2215_v46  ;;  %v2409_v16 = vadd.f32 %v5087_v11, %v2329_v56  ;;  %v2523_v57 = vadd.f32 %v2506_v18, %v2443_v45 }
 0x570   :  { %2198 = vst [vmem:[#allocation2 + $0x278] sm:$0xff] %v2181_v2 }
 0x571   :  { %2312 = vst [vmem:[#allocation2 + $0x2f8] sm:$0xff] %v2295_v48 }
 0x572   :  { %2426 = vst [vmem:[#allocation2 + $0x378] sm:$0xff] %v2409_v16 }
 0x573   :  { %2540 = vst [vmem:[#allocation2 + $0x3f8] sm:$0xff] %v2523_v57 }
 0x574   :  { %2553 = dma.vmem_to_hbm [thread:$0]  %s2546_s15, 16384, %s2548_s17, [#allocation3], %s2875_s18, %s2875_s18, %s2876_s2  }
 0x575   :  { %2867 = dma.done.wait [#allocation3], 16384  }
 0x576   :  { %2868 = vsyncadd [#allocation3], 4294950912 }
 0x577   :  { %2558 = vsyncpa [#allocation3], 1 }

</bundles_post_ra>
